<compile_context>
chip_gen: v7x
topology: tpu7x:2x2x1
jax: 0.10.0
libtpu: 0.0.40
codegen_flags: <defaults>
</compile_context>

<pallas_src>
import jax
import jax.numpy as jnp
from jax.experimental import pallas as pl
from jax.experimental.pallas import tpu as pltpu

# ---- model dims ---------------------------------------------------------
FEATURE_SIZE = 32          # small synthetic feature size
N_CARDS = 52               # TODO(synk): CARDS not defined in source; assumed 52
LAYER_DIMS = [FEATURE_SIZE, 256, 128, 128, 64, N_CARDS]
# Zero-padded (lane-dense) per-layer widths actually used inside the kernel:
#   layer-4 output 64 -> 128, final output 52 -> 128.
PAD_DIMS = [FEATURE_SIZE, 256, 128, 128, 128, 128]
N_OUT_PAD = PAD_DIMS[-1]

TB_DEFAULT = 1024          # batch tile: amortizes per-step overhead, fills the MXU
TB_QUANTUM = 512           # keep TB a multiple of 512 so grids stay even


def _mlp_kernel(x_ref,
                w1_ref, b1_ref,
                w2_ref, b2_ref,
                w3_ref, b3_ref,
                w4_ref, b4_ref,
                w5_ref, b5_ref,
                o_ref):
    """Fused 5-layer MLP: (linear + ReLU) x4, then final linear.

    Matmul operands are bf16 (full-rate MXU path) with f32 accumulation; the
    bias add + ReLU run in f32 on the VPU (v5e has no bf16 VALU); inter-layer
    activations are stored bf16 to halve vld/vst and vreg pressure.
    """

    def layer(h_bf16, w_ref, b_ref, relu):
        y = jnp.dot(h_bf16, w_ref[...], preferred_element_type=jnp.float32)
        y = y + b_ref[...]
        if relu:
            y = jnp.maximum(y, 0.0)
        return y.astype(jnp.bfloat16)

    h = x_ref[...]                      # already bf16, fed directly to the MXU
    h = layer(h, w1_ref, b1_ref, True)
    h = layer(h, w2_ref, b2_ref, True)
    h = layer(h, w3_ref, b3_ref, True)
    h = layer(h, w4_ref, b4_ref, True)  # padded 64 -> 128 lanes (zeros)
    h = layer(h, w5_ref, b5_ref, False)
    o_ref[...] = h                      # bf16, lane-dense 128-wide store


def _round_up(n, m):
    return ((n + m - 1) // m) * m


def larger_model_forward(x, params, tb=TB_DEFAULT):
    """x: [B, FEATURE_SIZE] float32. params: list of (W_t [in, out] f32, b [out] f32).

    Returns f32 logits [B, N_CARDS]. Internally the padded output is bf16.
    """
    B, F = x.shape
    assert F == FEATURE_SIZE

    # Pick the batch tile: multiple of 512, no bigger than needed for small B.
    tb = min(tb, _round_up(B, TB_QUANTUM))
    B_pad = _round_up(B, tb)

    # Pre-cast x to bf16 (halves input DMA; first dot consumes bf16 anyway) and
    # zero-pad the batch up to a multiple of the batch tile.
    x_bf16 = x.astype(jnp.bfloat16)
    if B_pad != B:
        x_bf16 = jnp.pad(x_bf16, ((0, B_pad - B), (0, 0)))

    # Flatten params: bf16 weights [in_pad, out_pad], f32 biases (1, out_pad).
    # Layer-4 output (64) and the final output (52) are zero-padded to 128 so
    # every intermediate / output is lane-dense and the MXU K dims stay full.
    flat = []
    weight_specs = []
    for li, (w_t, b) in enumerate(params):
        fan_in, fan_out = w_t.shape
        in_pad, out_pad = PAD_DIMS[li], PAD_DIMS[li + 1]
        if (fan_in, fan_out) != (in_pad, out_pad):
            w_t = jnp.pad(w_t, ((0, in_pad - fan_in), (0, out_pad - fan_out)))
            b = jnp.pad(b, (0, out_pad - fan_out))
        flat.append(w_t.astype(jnp.bfloat16))
        flat.append(b.astype(jnp.float32).reshape(1, out_pad))
        # Constant index_map: whole array as one block, DMA'd once and reused
        # across all grid steps (weights are grid-invariant).
        weight_specs.append(pl.BlockSpec((in_pad, out_pad), lambda i: (0, 0)))
        weight_specs.append(pl.BlockSpec((1, out_pad), lambda i: (0, 0)))

    in_specs = [pl.BlockSpec((tb, F), lambda i: (i, 0))] + weight_specs
    out_spec = pl.BlockSpec((tb, N_OUT_PAD), lambda i: (i, 0))
    grid = (B_pad // tb,)

    # Advisory cost estimate so XLA schedules surrounding ops sensibly.
    flops = 2 * B_pad * sum(a * b for a, b in zip(PAD_DIMS[:-1], PAD_DIMS[1:]))
    bytes_accessed = (int(x_bf16.size) * 2
                      + sum(int(a.size) * a.dtype.itemsize for a in flat)
                      + B_pad * N_OUT_PAD * 2)
    cost = pl.CostEstimate(flops=flops, transcendentals=0,
                           bytes_accessed=bytes_accessed)

    out = pl.pallas_call(
        _mlp_kernel,
        out_shape=jax.ShapeDtypeStruct((B_pad, N_OUT_PAD), jnp.bfloat16),
        grid_spec=pltpu.PrefetchScalarGridSpec(
            num_scalar_prefetch=0,
            grid=grid,
            in_specs=in_specs,
            out_specs=out_spec,
        ),
        compiler_params=pltpu.CompilerParams(
            dimension_semantics=("parallel",),   # batch axis shardable across TCs
        ),
        cost_estimate=cost,
    )(x_bf16, *flat)

    return out[:B, :N_CARDS].astype(jnp.float32)


def init_params(key):
    """Deterministic PyTorch-style init: U(-1/sqrt(fan_in), 1/sqrt(fan_in)).
    Returns list of (W_transposed [in, out] f32, b [out] f32)."""
    params = []
    for li in range(len(LAYER_DIMS) - 1):
        fan_in, fan_out = LAYER_DIMS[li], LAYER_DIMS[li + 1]
        key, kw, kb = jax.random.split(key, 3)
        bound = 1.0 / jnp.sqrt(jnp.float32(fan_in))
        # PyTorch stores W as [out, in]; we build it transposed as [in, out].
        w_t = jax.random.uniform(kw, (fan_in, fan_out), jnp.float32, -bound, bound)
        b = jax.random.uniform(kb, (fan_out,), jnp.float32, -bound, bound)
        params.append((w_t, b))
    return params


def reference_forward(x, params):
    """Plain-JAX reference matching the kernel's bf16-operand / f32-accumulate /
    bf16-interlayer math (output passed through bf16 like the kernel's store)."""
    h = x.astype(jnp.bfloat16)
    n = len(params)
    for li, (w_t, b) in enumerate(params):
        y = jnp.dot(h, w_t.astype(jnp.bfloat16),
                    preferred_element_type=jnp.float32) + b
        if li < n - 1:
            y = jnp.maximum(y, 0.0)
        h = y.astype(jnp.bfloat16)
    return h.astype(jnp.float32)


if __name__ == "__main__":
    key = jax.random.PRNGKey(0)
    kp, kx = jax.random.split(key)

    params = init_params(kp)

    # 2 grid steps of TB=1024 -> even grid so v7x uses both TensorCores.
    B = 2048
    x = jax.random.normal(kx, (B, FEATURE_SIZE), jnp.float32)

    out = larger_model_forward(x, params)
    out = jax.block_until_ready(out)

    ref = reference_forward(x, params)
    assert out.shape == (B, N_CARDS), out.shape
    assert jnp.allclose(out, ref, atol=2e-2, rtol=2e-2), \
        float(jnp.max(jnp.abs(out - ref)))

    print("KERNEL_OK")
</pallas_src>

<mosaic_0001>
module attributes {stable_mosaic.version = 11 : i64} {
  func.func @_mlp_kernel(%arg0: i32, %arg1: memref<1024x32xbf16, #tpu.memory_space<vmem>>, %arg2: memref<32x256xbf16, #tpu.memory_space<vmem>>, %arg3: memref<1x256xf32, #tpu.memory_space<vmem>>, %arg4: memref<256x128xbf16, #tpu.memory_space<vmem>>, %arg5: memref<1x128xf32, #tpu.memory_space<vmem>>, %arg6: memref<128x128xbf16, #tpu.memory_space<vmem>>, %arg7: memref<1x128xf32, #tpu.memory_space<vmem>>, %arg8: memref<128x128xbf16, #tpu.memory_space<vmem>>, %arg9: memref<1x128xf32, #tpu.memory_space<vmem>>, %arg10: memref<128x128xbf16, #tpu.memory_space<vmem>>, %arg11: memref<1x128xf32, #tpu.memory_space<vmem>>, %arg12: memref<1024x128xbf16, #tpu.memory_space<vmem>>) attributes {dimension_semantics = [#tpu.dimension_semantics<parallel>], iteration_bounds = array<i64: 2>, scalar_prefetch = 0 : i64, scratch_operands = 0 : i64, tpu.core_type = #tpu.core_type<tc>, window_params = [{transform_indices = @transform_0, window_bounds = array<i64: 1024, 32>}, {pipeline_mode = #tpu.pipeline_mode<synchronous>, transform_indices = @transform_1, window_bounds = array<i64: 32, 256>}, {pipeline_mode = #tpu.pipeline_mode<synchronous>, transform_indices = @transform_2, window_bounds = array<i64: 1, 256>}, {pipeline_mode = #tpu.pipeline_mode<synchronous>, transform_indices = @transform_3, window_bounds = array<i64: 256, 128>}, {pipeline_mode = #tpu.pipeline_mode<synchronous>, transform_indices = @transform_4, window_bounds = array<i64: 1, 128>}, {pipeline_mode = #tpu.pipeline_mode<synchronous>, transform_indices = @transform_5, window_bounds = array<i64: 128, 128>}, {pipeline_mode = #tpu.pipeline_mode<synchronous>, transform_indices = @transform_6, window_bounds = array<i64: 1, 128>}, {pipeline_mode = #tpu.pipeline_mode<synchronous>, transform_indices = @transform_7, window_bounds = array<i64: 128, 128>}, {pipeline_mode = #tpu.pipeline_mode<synchronous>, transform_indices = @transform_8, window_bounds = array<i64: 1, 128>}, {pipeline_mode = #tpu.pipeline_mode<synchronous>, transform_indices = @transform_9, window_bounds = array<i64: 128, 128>}, {pipeline_mode = #tpu.pipeline_mode<synchronous>, transform_indices = @transform_10, window_bounds = array<i64: 1, 128>}, {transform_indices = @transform_11, window_bounds = array<i64: 1024, 128>}]} {
    %c0 = arith.constant 0 : index
    %c0_0 = arith.constant 0 : index
    %0 = vector.load %arg1[%c0, %c0_0] : memref<1024x32xbf16, #tpu.memory_space<vmem>>, vector<1024x32xbf16>
    %c0_1 = arith.constant 0 : index
    %c0_2 = arith.constant 0 : index
    %1 = vector.load %arg2[%c0_1, %c0_2] : memref<32x256xbf16, #tpu.memory_space<vmem>>, vector<32x256xbf16>
    %cst = arith.constant dense<0.000000e+00> : vector<1024x256xf32>
    %2 = tpu.matmul %0, %1, %cst {dimension_numbers = #tpu.dot_dimension_numbers<[1], [0], [0], [1], [0, 0, 1, 1], [], []>} : vector<1024x32xbf16>, vector<32x256xbf16>, vector<1024x256xf32> -> vector<1024x256xf32>
    %c0_3 = arith.constant 0 : index
    %c0_4 = arith.constant 0 : index
    %3 = vector.load %arg3[%c0_3, %c0_4] : memref<1x256xf32, #tpu.memory_space<vmem>>, vector<1x256xf32>
    %4 = vector.broadcast %3 : vector<1x256xf32> to vector<1024x256xf32>
    %5 = arith.addf %2, %4 : vector<1024x256xf32>
    %cst_5 = arith.constant 0.000000e+00 : f32
    %6 = vector.broadcast %cst_5 : f32 to vector<1024x256xf32>
    %7 = arith.maximumf %5, %6 : vector<1024x256xf32>
    %8 = arith.truncf %7 : vector<1024x256xf32> to vector<1024x256xbf16>
    %c0_6 = arith.constant 0 : index
    %c0_7 = arith.constant 0 : index
    %9 = vector.load %arg4[%c0_6, %c0_7] : memref<256x128xbf16, #tpu.memory_space<vmem>>, vector<256x128xbf16>
    %cst_8 = arith.constant dense<0.000000e+00> : vector<1024x128xf32>
    %10 = tpu.matmul %8, %9, %cst_8 {dimension_numbers = #tpu.dot_dimension_numbers<[1], [0], [0], [1], [0, 0, 1, 1], [], []>} : vector<1024x256xbf16>, vector<256x128xbf16>, vector<1024x128xf32> -> vector<1024x128xf32>
    %c0_9 = arith.constant 0 : index
    %c0_10 = arith.constant 0 : index
    %11 = vector.load %arg5[%c0_9, %c0_10] : memref<1x128xf32, #tpu.memory_space<vmem>>, vector<1x128xf32>
    %12 = vector.broadcast %11 : vector<1x128xf32> to vector<1024x128xf32>
    %13 = arith.addf %10, %12 : vector<1024x128xf32>
    %cst_11 = arith.constant 0.000000e+00 : f32
    %14 = vector.broadcast %cst_11 : f32 to vector<1024x128xf32>
    %15 = arith.maximumf %13, %14 : vector<1024x128xf32>
    %16 = arith.truncf %15 : vector<1024x128xf32> to vector<1024x128xbf16>
    %c0_12 = arith.constant 0 : index
    %c0_13 = arith.constant 0 : index
    %17 = vector.load %arg6[%c0_12, %c0_13] : memref<128x128xbf16, #tpu.memory_space<vmem>>, vector<128x128xbf16>
    %cst_14 = arith.constant dense<0.000000e+00> : vector<1024x128xf32>
    %18 = tpu.matmul %16, %17, %cst_14 {dimension_numbers = #tpu.dot_dimension_numbers<[1], [0], [0], [1], [0, 0, 1, 1], [], []>} : vector<1024x128xbf16>, vector<128x128xbf16>, vector<1024x128xf32> -> vector<1024x128xf32>
    %c0_15 = arith.constant 0 : index
    %c0_16 = arith.constant 0 : index
    %19 = vector.load %arg7[%c0_15, %c0_16] : memref<1x128xf32, #tpu.memory_space<vmem>>, vector<1x128xf32>
    %20 = vector.broadcast %19 : vector<1x128xf32> to vector<1024x128xf32>
    %21 = arith.addf %18, %20 : vector<1024x128xf32>
    %cst_17 = arith.constant 0.000000e+00 : f32
    %22 = vector.broadcast %cst_17 : f32 to vector<1024x128xf32>
    %23 = arith.maximumf %21, %22 : vector<1024x128xf32>
    %24 = arith.truncf %23 : vector<1024x128xf32> to vector<1024x128xbf16>
    %c0_18 = arith.constant 0 : index
    %c0_19 = arith.constant 0 : index
    %25 = vector.load %arg8[%c0_18, %c0_19] : memref<128x128xbf16, #tpu.memory_space<vmem>>, vector<128x128xbf16>
    %cst_20 = arith.constant dense<0.000000e+00> : vector<1024x128xf32>
    %26 = tpu.matmul %24, %25, %cst_20 {dimension_numbers = #tpu.dot_dimension_numbers<[1], [0], [0], [1], [0, 0, 1, 1], [], []>} : vector<1024x128xbf16>, vector<128x128xbf16>, vector<1024x128xf32> -> vector<1024x128xf32>
    %c0_21 = arith.constant 0 : index
    %c0_22 = arith.constant 0 : index
    %27 = vector.load %arg9[%c0_21, %c0_22] : memref<1x128xf32, #tpu.memory_space<vmem>>, vector<1x128xf32>
    %28 = vector.broadcast %27 : vector<1x128xf32> to vector<1024x128xf32>
    %29 = arith.addf %26, %28 : vector<1024x128xf32>
    %cst_23 = arith.constant 0.000000e+00 : f32
    %30 = vector.broadcast %cst_23 : f32 to vector<1024x128xf32>
    %31 = arith.maximumf %29, %30 : vector<1024x128xf32>
    %32 = arith.truncf %31 : vector<1024x128xf32> to vector<1024x128xbf16>
    %c0_24 = arith.constant 0 : index
    %c0_25 = arith.constant 0 : index
    %33 = vector.load %arg10[%c0_24, %c0_25] : memref<128x128xbf16, #tpu.memory_space<vmem>>, vector<128x128xbf16>
    %cst_26 = arith.constant dense<0.000000e+00> : vector<1024x128xf32>
    %34 = tpu.matmul %32, %33, %cst_26 {dimension_numbers = #tpu.dot_dimension_numbers<[1], [0], [0], [1], [0, 0, 1, 1], [], []>} : vector<1024x128xbf16>, vector<128x128xbf16>, vector<1024x128xf32> -> vector<1024x128xf32>
    %c0_27 = arith.constant 0 : index
    %c0_28 = arith.constant 0 : index
    %35 = vector.load %arg11[%c0_27, %c0_28] : memref<1x128xf32, #tpu.memory_space<vmem>>, vector<1x128xf32>
    %36 = vector.broadcast %35 : vector<1x128xf32> to vector<1024x128xf32>
    %37 = arith.addf %34, %36 : vector<1024x128xf32>
    %38 = arith.truncf %37 : vector<1024x128xf32> to vector<1024x128xbf16>
    %c0_29 = arith.constant 0 : index
    %c0_30 = arith.constant 0 : index
    %39 = vector.load %arg12[%c0_29, %c0_30] : memref<1024x128xbf16, #tpu.memory_space<vmem>>, vector<1024x128xbf16>
    tpu.vector_store %arg12[%c0_29, %c0_30], %38 {strides = array<i32>} : memref<1024x128xbf16, #tpu.memory_space<vmem>>, vector<1024x128xbf16>,
    return
  }
  func.func @transform_0(%arg0: i32) -> (i32, i32) {
    %c0_i32 = arith.constant 0 : i32
    %c0_i32_0 = arith.constant 0 : i32
    return %arg0, %c0_i32 : i32, i32
  }
  func.func @transform_1(%arg0: i32) -> (i32, i32) {
    %c0_i32 = arith.constant 0 : i32
    %c0_i32_0 = arith.constant 0 : i32
    %c0_i32_1 = arith.constant 0 : i32
    return %c0_i32, %c0_i32_0 : i32, i32
  }
  func.func @transform_2(%arg0: i32) -> (i32, i32) {
    %c0_i32 = arith.constant 0 : i32
    %c0_i32_0 = arith.constant 0 : i32
    %c0_i32_1 = arith.constant 0 : i32
    return %c0_i32, %c0_i32_0 : i32, i32
  }
  func.func @transform_3(%arg0: i32) -> (i32, i32) {
    %c0_i32 = arith.constant 0 : i32
    %c0_i32_0 = arith.constant 0 : i32
    %c0_i32_1 = arith.constant 0 : i32
    return %c0_i32, %c0_i32_0 : i32, i32
  }
  func.func @transform_4(%arg0: i32) -> (i32, i32) {
    %c0_i32 = arith.constant 0 : i32
    %c0_i32_0 = arith.constant 0 : i32
    %c0_i32_1 = arith.constant 0 : i32
    return %c0_i32, %c0_i32_0 : i32, i32
  }
  func.func @transform_5(%arg0: i32) -> (i32, i32) {
    %c0_i32 = arith.constant 0 : i32
    %c0_i32_0 = arith.constant 0 : i32
    %c0_i32_1 = arith.constant 0 : i32
    return %c0_i32, %c0_i32_0 : i32, i32
  }
  func.func @transform_6(%arg0: i32) -> (i32, i32) {
    %c0_i32 = arith.constant 0 : i32
    %c0_i32_0 = arith.constant 0 : i32
    %c0_i32_1 = arith.constant 0 : i32
    return %c0_i32, %c0_i32_0 : i32, i32
  }
  func.func @transform_7(%arg0: i32) -> (i32, i32) {
    %c0_i32 = arith.constant 0 : i32
    %c0_i32_0 = arith.constant 0 : i32
    %c0_i32_1 = arith.constant 0 : i32
    return %c0_i32, %c0_i32_0 : i32, i32
  }
  func.func @transform_8(%arg0: i32) -> (i32, i32) {
    %c0_i32 = arith.constant 0 : i32
    %c0_i32_0 = arith.constant 0 : i32
    %c0_i32_1 = arith.constant 0 : i32
    return %c0_i32, %c0_i32_0 : i32, i32
  }
  func.func @transform_9(%arg0: i32) -> (i32, i32) {
    %c0_i32 = arith.constant 0 : i32
    %c0_i32_0 = arith.constant 0 : i32
    %c0_i32_1 = arith.constant 0 : i32
    return %c0_i32, %c0_i32_0 : i32, i32
  }
  func.func @transform_10(%arg0: i32) -> (i32, i32) {
    %c0_i32 = arith.constant 0 : i32
    %c0_i32_0 = arith.constant 0 : i32
    %c0_i32_1 = arith.constant 0 : i32
    return %c0_i32, %c0_i32_0 : i32, i32
  }
  func.func @transform_11(%arg0: i32) -> (i32, i32) {
    %c0_i32 = arith.constant 0 : i32
    %c0_i32_0 = arith.constant 0 : i32
    return %arg0, %c0_i32 : i32, i32
  }
}

</mosaic_0001>

<bundles_post_ra>
// kernel: tpu_custom_call.1
= control target key start
LH: loop header
LB: loop body
LE: loop exit
PB: predicated region body
PF: predicated region fallthrough
CT: control target
= control target key end

     0   :  { %16 = vsyncpa [#allocation3], 0  ;;  %s9172_s0 = inlined_call_operand.vmem [shape: bf16[2048,32], index: 0, kind: input, shape index: {}]   ;;  %s9173_s1 = inlined_call_operand.vmem [shape: bf16[32,256], index: 1, kind: input, shape index: {}]   ;;  %s9174_s2 = inlined_call_operand.vmem [shape: f32[1,256], index: 2, kind: input, shape index: {}]   ;;  %s9175_s3 = inlined_call_operand.vmem [shape: bf16[256,128], index: 3, kind: input, shape index: {}]   ;;  %s9176_s4 = inlined_call_operand.vmem [shape: f32[1,128], index: 4, kind: input, shape index: {}]   ;;  %s9177_s5 = inlined_call_operand.vmem [shape: bf16[128,128], index: 5, kind: input, shape index: {}]   ;;  %s9178_s6 = inlined_call_operand.vmem [shape: f32[1,128], index: 6, kind: input, shape index: {}]   ;;  %s9179_s7 = inlined_call_operand.vmem [shape: bf16[128,128], index: 7, kind: input, shape index: {}]   ;;  %s9180_s8 = inlined_call_operand.vmem [shape: f32[1,128], index: 8, kind: input, shape index: {}]   ;;  %s9181_s9 = inlined_call_operand.vmem [shape: bf16[128,128], index: 9, kind: input, shape index: {}]   ;;  %s9182_s10 = inlined_call_operand.vmem [shape: f32[1,128], index: 10, kind: input, shape index: {}]   ;;  %s9183_s11 = inlined_call_operand.hbm [shape: bf16[2048,128], index: 11, kind: output, shape index: {}]  }
   0x1   :  { %18 = vsyncpa [#allocation3 + $0x1], 0  ;;  %s7709_s17 = smov 0   ;;  %s7711_s18 = smov 0  }
   0x2   :  { %s7713_s19 = smov 0   ;;  %s7715_s20 = smov 0  }
   0x3 LB: > { %s7730_s21 = sadd.s32 4294967295, %s7643_s20   ;;  %s5943_s22 = sadd.s32 4294967294, %s7643_s20   ;;  %s7643_s20 = sphi %s7715_s20, %s9189_s20   ;;  %s7639_s19 = sphi %s7713_s19, %s9188_s19   ;;  %s7635_s18 = sphi %s7711_s18, %s9187_s18   ;;  %s7631_s17 = sphi %s7709_s17, %s9186_s17  }
   0x4   : > { %s7734_s23 = sadd.s32 1, %s7643_s20   ;;  %s267_s24 = sadd.s32 1, %s7639_s19 }
   0x5   : > { %s264_s25 = ssub.s32 %s7643_s20, %s7734_s23  ;;  %p277_p0 = scmp.ne.s32.totalorder %s7639_s19, %s7635_s18 }
   0x6   : > { %p265_p1 = scmp.eq.s32.totalorder %s264_s25, 0  ;;  %p278_p2 = scmp.eq.s32.totalorder %s7730_s21, 1 }
   0x7   : > { %p283_p3 = scmp.ne.s32.totalorder %s7635_s18, %s7631_s17  ;;  %p284_p4 = scmp.eq.s32.totalorder %s5943_s22, 1 }
   0x8   : > { %s7745_s26 = scalar_select %p265_p1, %s7639_s19, %s267_s24  }
   0x9   : > { %p7747_p5 = por %p278_p2, %p277_p0  ;;  %p7751_p6 = por %p284_p4, %p283_p3 }
   0xa   : > { %p5946_p7 = scmp.ge.s32.totalorder %s7643_s20, 1  ;;  %p341_p8 = scmp.lt.s32.totalorder %s7643_s20, 3 }
   0xc   : > { %p342_p9 = pnand %p5946_p7, %p341_p8 }
   0xd   : > { %v7465_v0 = vld [vmem:[%s9173_s1 + $0x4] ss:$8 sps:$4 sm:$0xff] (!%p342_p9)   ;;  %s5948_s12 = sshll.u32 (!%p342_p9), %s7730_s21, 7  ;;  %v7467_v1 = vld [vmem:[%s9173_s1] ss:$8 sps:$4 sm:$0xff] (!%p342_p9)   ;;  %v7645_v2 = vmov (!%p342_p9), 0  }
   0xe   : > { %345 = sbr.rel (%p342_p9) target bundleno = 1649 (0x671), region = 64  ;;  %1098 = vmatprep.mubr.bf16.mxu0 (!%p342_p9), %v7645_v2  ;;  %p382_p10 = scmp.lt.s32.totalorder (!%p342_p9), %s5948_s12, 255  ;;  %1578 = vmatprep.mubr.bf16.mxu1 (!%p342_p9), %v7645_v2  ;;  %v7468_v3 = vld [vmem:[%s9173_s1 + $0x14] ss:$8 sps:$4 sm:$0xff] (!%p342_p9)   ;;  %v7470_v4 = vld [vmem:[%s9173_s1 + $0x10] ss:$8 sps:$4 sm:$0xff] (!%p342_p9)  }
   0xf   : > { %1066 = vmatprep.subr.bf16.mxu0 (!%p342_p9), %v7465_v0  ;;  %7419 = vmatprep.subr.bf16.mxu1 (!%p342_p9), %v7465_v0  ;;  %vm873_vm0 = vcmask (!%p342_p9), 261120   ;;  %v7484_v7 = vld [vmem:[%s9175_s3] sm:$0xff] (!%p342_p9)   ;;  %v7487_v9 = vld [vmem:[%s9175_s3 + $0x8] sm:$0xff] (!%p342_p9)   ;;  %v7490_v12 = vld [vmem:[%s9175_s3 + $0x10] sm:$0xff] (!%p342_p9)   ;;  %v523_v0 = vlaneseq (!%p342_p9)  ;;  %s378_s14 = sand.u32 (!%p342_p9), 1, %s7635_s18   ;;  %s7646_s30 = smov (!%p342_p9), [#allocation2]  }
  0x10   : > { %1067 = vmatpush1.bf16.msra.mxu0 (!%p342_p9), %v7467_v1  ;;  %7421 = vmatpush1.bf16.msra.mxu1 (!%p342_p9), %v7467_v1  ;;  %v7493_v13 = vld [vmem:[%s9175_s3 + $0x18] sm:$0xff] (!%p342_p9)   ;;  %v7496_v16 = vld [vmem:[%s9175_s3 + $0x20] sm:$0xff] (!%p342_p9)   ;;  %v7499_v18 = vld [vmem:[%s9175_s3 + $0x28] sm:$0xff] (!%p342_p9)   ;;  %s5947_s22 = sshll.u32 (!%p342_p9), %s378_s14, 9 }
  0x11   : > { %1068 = vmatprep.subr.bf16.mxu0 (!%p342_p9), %v7468_v3  ;;  %7420 = vmatprep.subr.bf16.mxu1 (!%p342_p9), %v7468_v3  ;;  %v7502_v20 = vld [vmem:[%s9175_s3 + $0x30] sm:$0xff] (!%p342_p9)   ;;  %v7505_v22 = vld [vmem:[%s9175_s3 + $0x38] sm:$0xff] (!%p342_p9)   ;;  %v7508_v24 = vld [vmem:[%s9175_s3 + $0x40] sm:$0xff] (!%p342_p9)   ;;  %v524_v1 = vshrl.u32 (!%p342_p9), %v523_v0, 7  ;;  %s8871_s29 = scalar_lea.vmem (!%p342_p9), [#allocation2], %s5947_s22 }
  0x12   : > { %v7511_v26 = vld [vmem:[%s9175_s3 + $0x48] sm:$0xff] (!%p342_p9)   ;;  %v7514_v28 = vld [vmem:[%s9175_s3 + $0x50] sm:$0xff] (!%p342_p9)   ;;  %v7517_v30 = vld [vmem:[%s9175_s3 + $0x58] sm:$0xff] (!%p342_p9)   ;;  %s5881_s15 = sshll.u32 (!%p342_p9), %s8871_s29, 4  ;;  %s9125_s15 = int_to_ptr.vmem [resolvable:$true] %s5881_s15 }
  0x13   : > { %v7520_v32 = vld [vmem:[%s9175_s3 + $0x60] sm:$0xff] (!%p342_p9)   ;;  %v7523_v35 = vld [vmem:[%s9175_s3 + $0x68] sm:$0xff] (!%p342_p9)   ;;  %v7526_v38 = vld [vmem:[%s9175_s3 + $0x70] sm:$0xff] (!%p342_p9)  }
  0x14   : > { %1069 = vmatpush1.bf16.msra.mxu0 (!%p342_p9), %v7470_v4  ;;  %7422 = vmatpush1.bf16.msra.mxu1 (!%p342_p9), %v7470_v4  ;;  %v7529_v43 = vld [vmem:[%s9175_s3 + $0x78] sm:$0xff] (!%p342_p9)   ;;  %v7543_v61 = vld [vmem:[%s9177_s5] sm:$0xff] (!%p342_p9)   ;;  %v525_v4 = vsub.s32 (!%p342_p9), 0, %v524_v1 }
  0x15   : > { %s9191_s12 = smov (!%p382_p10, %s5948_s12), 255  ;;  %2258 = vmatprep.subr.bf16.mxu1 %v7645_v2  ;;  %6987 = vmatprep.subr.bf16.mxu0 %v7543_v61 }
  0x16   : > { %s5949_s25 = sshll.u32 %s9191_s12, 2  ;;  %s6387_s12 = sshll.u32 %s7730_s21, 13 }
  0x17   : > { %s7775_s13 = scalar_lea.vmem %s9172_s0, %s5949_s25  ;;  %s9123_s24 = scalar_lea.hbm %s9183_s11, %s6387_s12 }
  0x18   : > { %v7471_v5 = vld [vmem:[%s7775_s13] sm:$0xff]   ;;  %v7472_v6 = vld [vmem:[%s7775_s13 + $0x8] sm:$0xff]   ;;  %v7473_v10 = vld [vmem:[%s7775_s13 + $0x10] sm:$0xff]   ;;  %s9131_s21 = scalar_lea.sflag [#allocation3], %s378_s14  ;;  %s7581_s25 = scalar_lea.vmem %s9125_s15, 8192 }
  0x19   : > { %6018 = vmatmul.mubr.msk.bf16.vlgmr.msra.gmra.mrb[0].mxu0 %vm873_vm0, %v7471_v5  ;;  %v7483_v8 = vld [vmem:[%s7775_s13 + $0x180] sm:$0xff]   ;;  %v7486_v11 = vld [vmem:[%s7775_s13 + $0x188] sm:$0xff]   ;;  %v7474_v14 = vld [vmem:[%s7775_s13 + $0x18] sm:$0xff]   ;;  %p7582_p11 = scmp.ne.s32.totalorder %s9125_s15, %s7581_s25 }
  0x1a   : > { %1108 = vmatprep.mubr.bf16.mxu0 %v7645_v2  ;;  %6066 = vmatmul.mubr.msk.bf16.vlgmr.msra.gmra.mrb[0].mxu1 %vm873_vm0, %v7483_v8  ;;  %v7489_v15 = vld [vmem:[%s7775_s13 + $0x190] sm:$0xff]   ;;  %v7475_v17 = vld [vmem:[%s7775_s13 + $0x20] sm:$0xff]   ;;  %v7492_v19 = vld [vmem:[%s7775_s13 + $0x198] sm:$0xff]  }
  0x1b   : > { %2259 = vmatpush1.bf16.msra.mxu1 %v7484_v7  ;;  %1588 = vmatprep.mubr.bf16.mxu1 %v7645_v2  ;;  %v7476_v21 = vld [vmem:[%s7775_s13 + $0x28] sm:$0xff]   ;;  %v7495_v23 = vld [vmem:[%s7775_s13 + $0x1a0] sm:$0xff]   ;;  %v7477_v25 = vld [vmem:[%s7775_s13 + $0x30] sm:$0xff]   ;;  %p7583_p12 = pnand %p7582_p11, %p7747_p5 }
  0x1c   : > { %2260 = vmatprep.subr.bf16.mxu1 %v7645_v2  ;;  %v7498_v27 = vld [vmem:[%s7775_s13 + $0x1a8] sm:$0xff]   ;;  %v7478_v29 = vld [vmem:[%s7775_s13 + $0x38] sm:$0xff]   ;;  %v7501_v31 = vld [vmem:[%s7775_s13 + $0x1b0] sm:$0xff]   ;;  %6988 = vmatpush3.bf16.msra.mxu0 %v7543_v61 }
  0x1d   : > { %v7479_v33 = vld [vmem:[%s7775_s13 + $0x40] sm:$0xff]   ;;  %v7504_v34 = vld [vmem:[%s7775_s13 + $0x1b8] sm:$0xff]   ;;  %v7480_v36 = vld [vmem:[%s7775_s13 + $0x48] sm:$0xff]   ;;  %p7584_p13 = pneg %p7583_p12 }
  0x1e   : > { %v7507_v37 = vld [vmem:[%s7775_s13 + $0x1c0] sm:$0xff]   ;;  %v7481_v39 = vld [vmem:[%s7775_s13 + $0x50] sm:$0xff]   ;;  %v7510_v40 = vld [vmem:[%s7775_s13 + $0x1c8] sm:$0xff]  }
  0x1f   : > { %2261 = vmatpush1.bf16.msra.mxu1 %v7487_v9  ;;  %v7482_v41 = vld [vmem:[%s7775_s13 + $0x58] sm:$0xff]   ;;  %v7513_v42 = vld [vmem:[%s7775_s13 + $0x1d0] sm:$0xff]   ;;  %v7485_v44 = vld [vmem:[%s7775_s13 + $0x60] sm:$0xff]  }
  0x20   : > { %2262 = vmatprep.subr.bf16.mxu1 %v7645_v2  ;;  %v7516_v45 = vld [vmem:[%s7775_s13 + $0x1d8] sm:$0xff]   ;;  %v7488_v46 = vld [vmem:[%s7775_s13 + $0x68] sm:$0xff]   ;;  %v7519_v47 = vld [vmem:[%s7775_s13 + $0x1e0] sm:$0xff]  }
  0x21   : > { %6019 = vmatmul.mubr.msk.bf16.gmra.mrb[4].mxu0 %vm873_vm0, %v7472_v6  ;;  %v7491_v48 = vld [vmem:[%s7775_s13 + $0x70] sm:$0xff]   ;;  %v7522_v49 = vld [vmem:[%s7775_s13 + $0x1e8] sm:$0xff]   ;;  %v7494_v50 = vld [vmem:[%s7775_s13 + $0x78] sm:$0xff]   ;;  %v529_v6 = vsub.s32 1, %v524_v1 }
  0x22   : > { %1118 = vmatprep.mubr.bf16.mxu0 %v7645_v2  ;;  %6067 = vmatmul.mubr.msk.bf16.gmra.mrb[4].mxu1 %vm873_vm0, %v7486_v11  ;;  %v7525_v51 = vld [vmem:[%s7775_s13 + $0x1f0] sm:$0xff]   ;;  %v7497_v52 = vld [vmem:[%s7775_s13 + $0x80] sm:$0xff]   ;;  %v7528_v53 = vld [vmem:[%s7775_s13 + $0x1f8] sm:$0xff]  }
  0x23   : > { %1598 = vmatprep.mubr.bf16.mxu1 %v7645_v2  ;;  %2263 = vmatpush1.bf16.msra.mxu1 %v7490_v12  ;;  %v7500_v54 = vld [vmem:[%s7775_s13 + $0x88] sm:$0xff]   ;;  %v7503_v55 = vld [vmem:[%s7775_s13 + $0x90] sm:$0xff]   ;;  %v7506_v56 = vld [vmem:[%s7775_s13 + $0x98] sm:$0xff]  }
  0x24   : > { %2264 = vmatprep.subr.bf16.mxu1 %v7645_v2  ;;  %v7509_v57 = vld [vmem:[%s7775_s13 + $0xa0] sm:$0xff]   ;;  %v7512_v58 = vld [vmem:[%s7775_s13 + $0xa8] sm:$0xff]   ;;  %v7515_v59 = vld [vmem:[%s7775_s13 + $0xb0] sm:$0xff]  }
  0x25   : > { %v7518_v60 = vld [vmem:[%s7775_s13 + $0xb8] sm:$0xff]   ;;  %v7521_v62 = vld [vmem:[%s7775_s13 + $0xc0] sm:$0xff]   ;;  %v7524_v63 = vld [vmem:[%s7775_s13 + $0xc8] sm:$0xff]  }
  0x26   : > { %v7527_v3 = vld [vmem:[%s7775_s13 + $0xd0] sm:$0xff]   ;;  %v521_v5 = vld [vmem:[%s9174_s2] sm:$0x3]  ;;  %v7530_v12 = vld [vmem:[%s7775_s13 + $0xd8] sm:$0xff]  }
  0x27   : > { %2265 = vmatpush1.bf16.msra.mxu1 %v7493_v13  ;;  %v7974_v7 = vrot.slane %v521_v5, %v525_v4  ;;  %v7976_v8 = vrot.slane %v521_v5, %v529_v6 }
  0x28   : > { %2266 = vmatprep.subr.bf16.mxu1 %v7645_v2 }
  0x29   : > { %6020 = vmatmul.mubr.msk.bf16.gmra.mrb[8].mxu0 %vm873_vm0, %v7473_v10 }
  0x2a   : > { %1128 = vmatprep.mubr.bf16.mxu0 %v7645_v2  ;;  %6068 = vmatmul.mubr.msk.bf16.gmra.mrb[8].mxu1 %vm873_vm0, %v7489_v15 }
  0x2b   : > { %1608 = vmatprep.mubr.bf16.mxu1 %v7645_v2  ;;  %2267 = vmatpush1.bf16.msra.mxu1 %v7496_v16 }
  0x2c   : > { %2268 = vmatprep.subr.bf16.mxu1 %v7645_v2 }
  0x2f   : > { %2269 = vmatpush1.bf16.msra.mxu1 %v7499_v18 }
  0x30   : > { %2270 = vmatprep.subr.bf16.mxu1 %v7645_v2 }
  0x31   : > { %6021 = vmatmul.mubr.msk.bf16.gmra.mrb[12].mxu0 %vm873_vm0, %v7474_v14 }
  0x32   : > { %1138 = vmatprep.mubr.bf16.mxu0 %v7645_v2  ;;  %6069 = vmatmul.mubr.msk.bf16.gmra.mrb[12].mxu1 %vm873_vm0, %v7492_v19 }
  0x33   : > { %1618 = vmatprep.mubr.bf16.mxu1 %v7645_v2  ;;  %2271 = vmatpush1.bf16.msra.mxu1 %v7502_v20 }
  0x34   : > { %2272 = vmatprep.subr.bf16.mxu1 %v7645_v2 }
  0x37   : > { %2273 = vmatpush1.bf16.msra.mxu1 %v7505_v22 }
  0x38   : > { %2274 = vmatprep.subr.bf16.mxu1 %v7645_v2 }
  0x39   : > { %6022 = vmatmul.mubr.msk.bf16.gmra.mrb[16].mxu0 %vm873_vm0, %v7475_v17 }
  0x3a   : > { %1148 = vmatprep.mubr.bf16.mxu0 %v7645_v2  ;;  %6070 = vmatmul.mubr.msk.bf16.gmra.mrb[16].mxu1 %vm873_vm0, %v7495_v23 }
  0x3b   : > { %1628 = vmatprep.mubr.bf16.mxu1 %v7645_v2  ;;  %2275 = vmatpush1.bf16.msra.mxu1 %v7508_v24 }
  0x3c   : > { %2276 = vmatprep.subr.bf16.mxu1 %v7645_v2 }
  0x3f   : > { %2277 = vmatpush1.bf16.msra.mxu1 %v7511_v26 }
  0x40   : > { %2278 = vmatprep.subr.bf16.mxu1 %v7645_v2 }
  0x41   : > { %6023 = vmatmul.mubr.msk.bf16.gmra.mrb[20].mxu0 %vm873_vm0, %v7476_v21 }
  0x42   : > { %1158 = vmatprep.mubr.bf16.mxu0 %v7645_v2  ;;  %6071 = vmatmul.mubr.msk.bf16.gmra.mrb[20].mxu1 %vm873_vm0, %v7498_v27  ;;  %v7531_v27 = vld [vmem:[%s7775_s13 + $0xe0] sm:$0xff]  }
  0x43   : > { %1638 = vmatprep.mubr.bf16.mxu1 %v7645_v2  ;;  %2279 = vmatpush1.bf16.msra.mxu1 %v7514_v28 }
  0x44   : > { %2280 = vmatprep.subr.bf16.mxu1 %v7645_v2 }
  0x47   : > { %2281 = vmatpush1.bf16.msra.mxu1 %v7517_v30 }
  0x48   : > { %2282 = vmatprep.subr.bf16.mxu1 %v7645_v2 }
  0x49   : > { %6024 = vmatmul.mubr.msk.bf16.gmra.mrb[24].mxu0 %vm873_vm0, %v7477_v25 }
  0x4a   : > { %1168 = vmatprep.mubr.bf16.mxu0 %v7645_v2  ;;  %6072 = vmatmul.mubr.msk.bf16.gmra.mrb[24].mxu1 %vm873_vm0, %v7501_v31 }
  0x4b   : > { %1648 = vmatprep.mubr.bf16.mxu1 %v7645_v2  ;;  %2283 = vmatpush1.bf16.msra.mxu1 %v7520_v32 }
  0x4c   : > { %2284 = vmatprep.subr.bf16.mxu1 %v7645_v2 }
  0x4f   : > { %2285 = vmatpush1.bf16.msra.mxu1 %v7523_v35 }
  0x50   : > { %2286 = vmatprep.subr.bf16.mxu1 %v7645_v2 }
  0x51   : > { %6025 = vmatmul.mubr.msk.bf16.gmra.mrb[28].mxu0 %vm873_vm0, %v7478_v29 }
  0x52   : > { %1178 = vmatprep.mubr.bf16.mxu0 %v7645_v2  ;;  %6073 = vmatmul.mubr.msk.bf16.gmra.mrb[28].mxu1 %vm873_vm0, %v7504_v34 }
  0x53   : > { %1658 = vmatprep.mubr.bf16.mxu1 %v7645_v2  ;;  %2287 = vmatpush1.bf16.msra.mxu1 %v7526_v38 }
  0x54   : > { %2288 = vmatprep.subr.bf16.mxu1 %v7645_v2 }
  0x57   : > { %2289 = vmatpush1.bf16.msra.mxu1 %v7529_v43 }
  0x59   : > { %6026 = vmatmul.mubr.msk.bf16.gmra.mrb[32].mxu0 %vm873_vm0, %v7479_v33 }
  0x5a   : > { %1188 = vmatprep.mubr.bf16.mxu0 %v7645_v2  ;;  %6074 = vmatmul.mubr.msk.bf16.gmra.mrb[32].mxu1 %vm873_vm0, %v7507_v37 }
  0x5b   : > { %1668 = vmatprep.mubr.bf16.mxu1 %v7645_v2 }
  0x61   : > { %6027 = vmatmul.mubr.msk.bf16.gmra.mrb[36].mxu0 %vm873_vm0, %v7480_v36 }
  0x62   : > { %1198 = vmatprep.mubr.bf16.mxu0 %v7645_v2  ;;  %6075 = vmatmul.mubr.msk.bf16.gmra.mrb[36].mxu1 %vm873_vm0, %v7510_v40 }
  0x63   : > { %1678 = vmatprep.mubr.bf16.mxu1 %v7645_v2 }
  0x69   : > { %6028 = vmatmul.mubr.msk.bf16.gmra.mrb[40].mxu0 %vm873_vm0, %v7481_v39 }
  0x6a   : > { %1208 = vmatprep.mubr.bf16.mxu0 %v7645_v2  ;;  %6076 = vmatmul.mubr.msk.bf16.gmra.mrb[40].mxu1 %vm873_vm0, %v7513_v42 }
  0x6b   : > { %1688 = vmatprep.mubr.bf16.mxu1 %v7645_v2 }
  0x71   : > { %6029 = vmatmul.mubr.msk.bf16.gmra.mrb[44].mxu0 %vm873_vm0, %v7482_v41 }
  0x72   : > { %1218 = vmatprep.mubr.bf16.mxu0 %v7645_v2  ;;  %6077 = vmatmul.mubr.msk.bf16.gmra.mrb[44].mxu1 %vm873_vm0, %v7516_v45 }
  0x73   : > { %1698 = vmatprep.mubr.bf16.mxu1 %v7645_v2 }
  0x79   : > { %6030 = vmatmul.mubr.msk.bf16.gmra.mrb[48].mxu0 %vm873_vm0, %v7485_v44 }
  0x7a   : > { %1228 = vmatprep.mubr.bf16.mxu0 %v7645_v2  ;;  %6078 = vmatmul.mubr.msk.bf16.gmra.mrb[48].mxu1 %vm873_vm0, %v7519_v47 }
  0x7b   : > { %1708 = vmatprep.mubr.bf16.mxu1 %v7645_v2 }
  0x81   : > { %6031 = vmatmul.mubr.msk.bf16.gmra.mrb[52].mxu0 %vm873_vm0, %v7488_v46 }
  0x82   : > { %1238 = vmatprep.mubr.bf16.mxu0 %v7645_v2  ;;  %6079 = vmatmul.mubr.msk.bf16.gmra.mrb[52].mxu1 %vm873_vm0, %v7522_v49 }
  0x83   : > { %1718 = vmatprep.mubr.bf16.mxu1 %v7645_v2 }
  0x89   : > { %6032 = vmatmul.mubr.msk.bf16.gmra.mrb[56].mxu0 %vm873_vm0, %v7491_v48 }
  0x8a   : > { %1248 = vmatprep.mubr.bf16.mxu0 %v7645_v2  ;;  %6080 = vmatmul.mubr.msk.bf16.gmra.mrb[56].mxu1 %vm873_vm0, %v7525_v51 }
  0x8b   : > { %1728 = vmatprep.mubr.bf16.mxu1 %v7645_v2 }
  0x91   : > { %6033 = vmatmul.mubr.msk.bf16.gmra.mrb[60].mxu0 %vm873_vm0, %v7494_v50 }
  0x92   : > { %1258 = vmatprep.mubr.bf16.mxu0 %v7645_v2  ;;  %6081 = vmatmul.mubr.msk.bf16.gmra.mrb[60].mxu1 %vm873_vm0, %v7528_v53  ;;  %v7532_v53 = vld [vmem:[%s7775_s13 + $0xe8] sm:$0xff]  }
  0x99   : > { %6034 = vmatmul.mubr.msk.bf16.gmra.mrb[64].mxu0 %vm873_vm0, %v7497_v52 }
  0x9a   : > { %1268 = vmatprep.mubr.bf16.mxu0 %v7645_v2 }
  0xa1   : > { %6035 = vmatmul.mubr.msk.bf16.gmra.mrb[68].mxu0 %vm873_vm0, %v7500_v54 }
  0xa2   : > { %1278 = vmatprep.mubr.bf16.mxu0 %v7645_v2 }
  0xa9   : > { %6036 = vmatmul.mubr.msk.bf16.gmra.mrb[72].mxu0 %vm873_vm0, %v7503_v55 }
  0xaa   : > { %1288 = vmatprep.mubr.bf16.mxu0 %v7645_v2 }
  0xb1   : > { %6037 = vmatmul.mubr.msk.bf16.gmra.mrb[76].mxu0 %vm873_vm0, %v7506_v56 }
  0xb2   : > { %1298 = vmatprep.mubr.bf16.mxu0 %v7645_v2 }
  0xb9   : > { %6038 = vmatmul.mubr.msk.bf16.gmra.mrb[80].mxu0 %vm873_vm0, %v7509_v57 }
  0xba   : > { %1308 = vmatprep.mubr.bf16.mxu0 %v7645_v2 }
  0xc1   : > { %6039 = vmatmul.mubr.msk.bf16.gmra.mrb[84].mxu0 %vm873_vm0, %v7512_v58 }
  0xc2   : > { %1318 = vmatprep.mubr.bf16.mxu0 %v7645_v2 }
  0xc9   : > { %6040 = vmatmul.mubr.msk.bf16.gmra.mrb[88].mxu0 %vm873_vm0, %v7515_v59 }
  0xca   : > { %1328 = vmatprep.mubr.bf16.mxu0 %v7645_v2 }
  0xd1   : > { %6041 = vmatmul.mubr.msk.bf16.gmra.mrb[92].mxu0 %vm873_vm0, %v7518_v60 }
  0xd2   : > { %1338 = vmatprep.mubr.bf16.mxu0 %v7645_v2 }
  0xd9   : > { %6042 = vmatmul.mubr.msk.bf16.gmra.mrb[96].mxu0 %vm873_vm0, %v7521_v62 }
  0xda   : > { %1348 = vmatprep.mubr.bf16.mxu0 %v7645_v2 }
  0xe1   : > { %6043 = vmatmul.mubr.msk.bf16.gmra.mrb[100].mxu0 %vm873_vm0, %v7524_v63 }
  0xe2   : > { %1358 = vmatprep.mubr.bf16.mxu0 %v7645_v2 }
  0xe9   : > { %6044 = vmatmul.mubr.msk.bf16.gmra.mrb[104].mxu0 %vm873_vm0, %v7527_v3 }
  0xea   : > { %1368 = vmatprep.mubr.bf16.mxu0 %v7645_v2 }
  0xec   : > { %v1100_v9 = vpop.f32.mrb[0].mxu0 }
  0xed   : > { %v1101_v10 = vadd.f32 %v1100_v9, %v7974_v7  ;;  %v1102_v11 = vpop.f32.mrb[1].mxu0  ;;  %v1580_v32 = vpop.f32.mrb[0].mxu1 }
  0xee   : > { %v1103_v13 = vadd.f32 %v1102_v11, %v7976_v8  ;;  %v1104_v14 = vpop.f32.mrb[2].mxu0  ;;  %v1581_v34 = vadd.f32 %v1580_v32, %v7974_v7  ;;  %v1582_v35 = vpop.f32.mrb[1].mxu1 }
  0xef   : > { %v1105_v15 = vadd.f32 %v1104_v14, %v7974_v7  ;;  %v1106_v16 = vpop.f32.mrb[3].mxu0  ;;  %v1739_v18 = vmax.f32 %v1101_v10, 0.0  ;;  %v1583_v38 = vadd.f32 %v1582_v35, %v7976_v8  ;;  %v1584_v39 = vpop.f32.mrb[2].mxu1 }
  0xf0   : > { %v1107_v17 = vadd.f32 %v1106_v16, %v7976_v8  ;;  %v1740_v20 = vmax.f32 %v1103_v13, 0.0  ;;  %v1931_v42 = vmax.f32 %v1581_v34, 0.0  ;;  %v1585_v43 = vadd.f32 %v1584_v39, %v7974_v7  ;;  %v1586_v44 = vpop.f32.mrb[3].mxu1  ;;  %v7550_v13 = vld [vmem:[%s9177_s5 + $0x8] sm:$0xff]  }
  0xf1   : > { %v1741_v19 = vmax.f32 %v1105_v15, 0.0  ;;  %6045 = vmatmul.mubr.msk.bf16.gmra.mrb[108].mxu0 %vm873_vm0, %v7530_v12  ;;  %v1932_v46 = vmax.f32 %v1583_v38, 0.0  ;;  %v1587_v47 = vadd.f32 %v1586_v44, %v7976_v8  ;;  %6989 = vmatprep.subr.bf16.mxu0 %v7550_v13 }
  0xf2   : > { %v1742_v21 = vmax.f32 %v1107_v17, 0.0  ;;  %1378 = vmatprep.mubr.bf16.mxu0 %v7645_v2  ;;  %v1933_v50 = vmax.f32 %v1585_v43, 0.0  ;;  %6990 = vmatpush3.bf16.msra.mxu0 %v7550_v13 }
  0xf3   : > { %v1995_v22 = vpack.c.bf16 %v1741_v19, %v1739_v18  ;;  %v1934_v54 = vmax.f32 %v1587_v47, 0.0 }
  0xf4   : > { %v1110_v23 = vpop.f32.mrb[4].mxu0  ;;  %v1996_v24 = vpack.c.bf16 %v1742_v21, %v1740_v20  ;;  %v8000_v57 = vpack.c.bf16 %v1933_v50, %v1931_v42 }
  0xf5   : > { %v1111_v25 = vadd.f32 %v1110_v23, %v7974_v7  ;;  %v1112_v26 = vpop.f32.mrb[5].mxu0  ;;  %v1590_v60 = vpop.f32.mrb[4].mxu1  ;;  %v8003_v61 = vpack.c.bf16 %v1934_v54, %v1932_v46 }
  0xf6   : > { %v1113_v28 = vadd.f32 %v1112_v26, %v7976_v8  ;;  %v1114_v29 = vpop.f32.mrb[6].mxu0  ;;  %2290 = vmatprep.mubr.bf16.mxu1 %v1996_v24  ;;  %v1591_v63 = vadd.f32 %v1590_v60, %v7974_v7  ;;  %v1592_v0 = vpop.f32.mrb[5].mxu1 }
  0xf7   : > { %v1115_v30 = vadd.f32 %v1114_v29, %v7974_v7  ;;  %v1116_v31 = vpop.f32.mrb[7].mxu0  ;;  %2291 = vmatmul.mubr.bf16.vlgmr.msra.gmra.mrb[64].mxu1 %v1995_v22  ;;  %v1743_v36 = vmax.f32 %v1111_v25, 0.0  ;;  %v1593_v4 = vadd.f32 %v1592_v0, %v7976_v8  ;;  %v1594_v5 = vpop.f32.mrb[6].mxu1  ;;  %v7533_v22 = vld [vmem:[%s7775_s13 + $0xf0] sm:$0xff]  }
  0xf8   : > { %v1117_v33 = vadd.f32 %v1116_v31, %v7976_v8  ;;  %v1744_v40 = vmax.f32 %v1113_v28, 0.0  ;;  %v1935_v10 = vmax.f32 %v1591_v63, 0.0  ;;  %v1595_v11 = vadd.f32 %v1594_v5, %v7974_v7  ;;  %v1596_v12 = vpop.f32.mrb[7].mxu1 }
  0xf9   : > { %v1745_v37 = vmax.f32 %v1115_v30, 0.0  ;;  %6046 = vmatmul.mubr.msk.bf16.gmra.mrb[112].mxu0 %vm873_vm0, %v7531_v27  ;;  %v1936_v15 = vmax.f32 %v1593_v4, 0.0  ;;  %v1597_v16 = vadd.f32 %v1596_v12, %v7976_v8 }
  0xfa   : > { %v1746_v41 = vmax.f32 %v1117_v33, 0.0  ;;  %1388 = vmatprep.mubr.bf16.mxu0 %v7645_v2  ;;  %v1937_v19 = vmax.f32 %v1595_v11, 0.0 }
  0xfb   : > { %v1997_v45 = vpack.c.bf16 %v1745_v37, %v1743_v36  ;;  %v1938_v23 = vmax.f32 %v1597_v16, 0.0 }
  0xfc   : > { %v1120_v48 = vpop.f32.mrb[8].mxu0  ;;  %v1998_v49 = vpack.c.bf16 %v1746_v41, %v1744_v40  ;;  %v8018_v26 = vpack.c.bf16 %v1937_v19, %v1935_v10 }
  0xfd   : > { %v1121_v51 = vadd.f32 %v1120_v48, %v7974_v7  ;;  %v1122_v52 = vpop.f32.mrb[9].mxu0  ;;  %v1600_v29 = vpop.f32.mrb[8].mxu1  ;;  %v8021_v30 = vpack.c.bf16 %v1938_v23, %v1936_v15 }
  0xfe   : > { %v1123_v55 = vadd.f32 %v1122_v52, %v7976_v8  ;;  %v1124_v56 = vpop.f32.mrb[10].mxu0  ;;  %2298 = vmatprep.mubr.bf16.mxu1 %v1998_v49  ;;  %v1601_v32 = vadd.f32 %v1600_v29, %v7974_v7  ;;  %v1602_v33 = vpop.f32.mrb[9].mxu1 }
  0xff   : > { %v1125_v58 = vadd.f32 %v1124_v56, %v7974_v7  ;;  %v1126_v59 = vpop.f32.mrb[11].mxu0  ;;  %2299 = vmatmul.mubr.bf16.gmra.mrb[68].mxu1 %v1997_v45  ;;  %v1747_v1 = vmax.f32 %v1121_v51, 0.0  ;;  %v1603_v36 = vadd.f32 %v1602_v33, %v7976_v8  ;;  %v1604_v37 = vpop.f32.mrb[10].mxu1  ;;  %v7534_v51 = vld [vmem:[%s7775_s13 + $0xf8] sm:$0xff]  }
 0x100   : > { %v1127_v62 = vadd.f32 %v1126_v59, %v7976_v8  ;;  %v1748_v6 = vmax.f32 %v1123_v55, 0.0  ;;  %v1939_v40 = vmax.f32 %v1601_v32, 0.0  ;;  %v1605_v41 = vadd.f32 %v1604_v37, %v7974_v7  ;;  %v1606_v42 = vpop.f32.mrb[11].mxu1 }
 0x101   : > { %v1749_v3 = vmax.f32 %v1125_v58, 0.0  ;;  %6047 = vmatmul.mubr.msk.bf16.gmra.mrb[116].mxu0 %vm873_vm0, %v7532_v53  ;;  %v1940_v44 = vmax.f32 %v1603_v36, 0.0  ;;  %v1607_v45 = vadd.f32 %v1606_v42, %v7976_v8 }
 0x102   : > { %v1750_v9 = vmax.f32 %v1127_v62, 0.0  ;;  %1398 = vmatprep.mubr.bf16.mxu0 %v7645_v2  ;;  %v1941_v48 = vmax.f32 %v1605_v41, 0.0 }
 0x103   : > { %v1999_v14 = vpack.c.bf16 %v1749_v3, %v1747_v1  ;;  %v1942_v52 = vmax.f32 %v1607_v45, 0.0 }
 0x104   : > { %v1130_v17 = vpop.f32.mrb[12].mxu0  ;;  %v2000_v18 = vpack.c.bf16 %v1750_v9, %v1748_v6  ;;  %v8033_v55 = vpack.c.bf16 %v1941_v48, %v1939_v40 }
 0x105   : > { %v1131_v20 = vadd.f32 %v1130_v17, %v7974_v7  ;;  %v1132_v21 = vpop.f32.mrb[13].mxu0  ;;  %v1610_v59 = vpop.f32.mrb[12].mxu1  ;;  %v8036_v60 = vpack.c.bf16 %v1942_v52, %v1940_v44  ;;  %v7536_v52 = vld [vmem:[%s7775_s13 + $0x108] sm:$0xff]  }
 0x106   : > { %v1133_v24 = vadd.f32 %v1132_v21, %v7976_v8  ;;  %v1134_v25 = vpop.f32.mrb[14].mxu0  ;;  %2306 = vmatprep.mubr.bf16.mxu1 %v2000_v18  ;;  %v1611_v63 = vadd.f32 %v1610_v59, %v7974_v7  ;;  %v1612_v0 = vpop.f32.mrb[13].mxu1  ;;  %v7535_v21 = vld [vmem:[%s7775_s13 + $0x100] sm:$0xff]  }
 0x107   : > { %v1135_v27 = vadd.f32 %v1134_v25, %v7974_v7  ;;  %v1136_v28 = vpop.f32.mrb[15].mxu0  ;;  %2307 = vmatmul.mubr.bf16.gmra.mrb[72].mxu1 %v1999_v14  ;;  %v1751_v34 = vmax.f32 %v1131_v20, 0.0  ;;  %v1613_v4 = vadd.f32 %v1612_v0, %v7976_v8  ;;  %v1614_v5 = vpop.f32.mrb[14].mxu1 }
 0x108   : > { %v1137_v31 = vadd.f32 %v1136_v28, %v7976_v8  ;;  %v1752_v38 = vmax.f32 %v1133_v24, 0.0  ;;  %v1943_v10 = vmax.f32 %v1611_v63, 0.0  ;;  %v1615_v11 = vadd.f32 %v1614_v5, %v7974_v7  ;;  %v1616_v12 = vpop.f32.mrb[15].mxu1 }
 0x109   : > { %v1753_v35 = vmax.f32 %v1135_v27, 0.0  ;;  %6048 = vmatmul.mubr.msk.bf16.gmra.mrb[120].mxu0 %vm873_vm0, %v7533_v22  ;;  %v1944_v14 = vmax.f32 %v1613_v4, 0.0  ;;  %v1617_v15 = vadd.f32 %v1616_v12, %v7976_v8 }
 0x10a   : > { %v1754_v39 = vmax.f32 %v1137_v31, 0.0  ;;  %1408 = vmatprep.mubr.bf16.mxu0 %v7645_v2  ;;  %v1945_v18 = vmax.f32 %v1615_v11, 0.0 }
 0x10b   : > { %v2001_v43 = vpack.c.bf16 %v1753_v35, %v1751_v34  ;;  %v1946_v22 = vmax.f32 %v1617_v15, 0.0 }
 0x10c   : > { %v1140_v46 = vpop.f32.mrb[16].mxu0  ;;  %v2002_v47 = vpack.c.bf16 %v1754_v39, %v1752_v38  ;;  %v8048_v25 = vpack.c.bf16 %v1945_v18, %v1943_v10 }
 0x10d   : > { %v1141_v49 = vadd.f32 %v1140_v46, %v7974_v7  ;;  %v1142_v50 = vpop.f32.mrb[17].mxu0  ;;  %v1620_v29 = vpop.f32.mrb[16].mxu1  ;;  %v8051_v31 = vpack.c.bf16 %v1946_v22, %v1944_v14 }
 0x10e   : > { %v1143_v53 = vadd.f32 %v1142_v50, %v7976_v8  ;;  %v1144_v54 = vpop.f32.mrb[18].mxu0  ;;  %2314 = vmatprep.mubr.bf16.mxu1 %v2002_v47  ;;  %v1621_v33 = vadd.f32 %v1620_v29, %v7974_v7  ;;  %v1622_v34 = vpop.f32.mrb[17].mxu1 }
 0x10f   : > { %v1145_v56 = vadd.f32 %v1144_v54, %v7974_v7  ;;  %v1146_v58 = vpop.f32.mrb[19].mxu0  ;;  %2315 = vmatmul.mubr.bf16.gmra.mrb[76].mxu1 %v2001_v43  ;;  %v1755_v1 = vmax.f32 %v1141_v49, 0.0  ;;  %v1623_v37 = vadd.f32 %v1622_v34, %v7976_v8  ;;  %v1624_v38 = vpop.f32.mrb[18].mxu1 }
 0x110   : > { %v1147_v62 = vadd.f32 %v1146_v58, %v7976_v8  ;;  %v1756_v6 = vmax.f32 %v1143_v53, 0.0  ;;  %v1947_v41 = vmax.f32 %v1621_v33, 0.0  ;;  %v1625_v42 = vadd.f32 %v1624_v38, %v7974_v7  ;;  %v1626_v43 = vpop.f32.mrb[19].mxu1 }
 0x111   : > { %v1757_v3 = vmax.f32 %v1145_v56, 0.0  ;;  %6049 = vmatmul.mubr.msk.bf16.gmra.mrb[124].mxu0 %vm873_vm0, %v7534_v51  ;;  %v1948_v45 = vmax.f32 %v1623_v37, 0.0  ;;  %v1627_v46 = vadd.f32 %v1626_v43, %v7976_v8 }
 0x112   : > { %v1758_v9 = vmax.f32 %v1147_v62, 0.0  ;;  %1418 = vmatprep.mubr.bf16.mxu0 %v7645_v2  ;;  %v1949_v49 = vmax.f32 %v1625_v42, 0.0 }
 0x113   : > { %v2003_v13 = vpack.c.bf16 %v1757_v3, %v1755_v1  ;;  %v1950_v53 = vmax.f32 %v1627_v46, 0.0 }
 0x114   : > { %v1150_v16 = vpop.f32.mrb[20].mxu0  ;;  %v2004_v17 = vpack.c.bf16 %v1758_v9, %v1756_v6  ;;  %v8063_v58 = vpack.c.bf16 %v1949_v49, %v1947_v41 }
 0x115   : > { %v1151_v19 = vadd.f32 %v1150_v16, %v7974_v7  ;;  %v1152_v20 = vpop.f32.mrb[21].mxu0  ;;  %v1630_v63 = vpop.f32.mrb[20].mxu1  ;;  %v8066_v0 = vpack.c.bf16 %v1950_v53, %v1948_v45 }
 0x116   : > { %v1153_v23 = vadd.f32 %v1152_v20, %v7976_v8  ;;  %v1154_v24 = vpop.f32.mrb[22].mxu0  ;;  %2322 = vmatprep.mubr.bf16.mxu1 %v2004_v17  ;;  %v1631_v3 = vadd.f32 %v1630_v63, %v7974_v7  ;;  %v1632_v4 = vpop.f32.mrb[21].mxu1 }
 0x117   : > { %v1155_v27 = vadd.f32 %v1154_v24, %v7974_v7  ;;  %v1156_v28 = vpop.f32.mrb[23].mxu0  ;;  %2323 = vmatmul.mubr.bf16.gmra.mrb[80].mxu1 %v2003_v13  ;;  %v1759_v35 = vmax.f32 %v1151_v19, 0.0  ;;  %v1633_v9 = vadd.f32 %v1632_v4, %v7976_v8  ;;  %v1634_v10 = vpop.f32.mrb[22].mxu1  ;;  %v7537_v24 = vld [vmem:[%s7775_s13 + $0x110] sm:$0xff]  }
 0x118   : > { %v1157_v32 = vadd.f32 %v1156_v28, %v7976_v8  ;;  %v1760_v39 = vmax.f32 %v1153_v23, 0.0  ;;  %v1951_v13 = vmax.f32 %v1631_v3, 0.0  ;;  %v1635_v14 = vadd.f32 %v1634_v10, %v7974_v7  ;;  %v1636_v15 = vpop.f32.mrb[23].mxu1 }
 0x119   : > { %v1761_v36 = vmax.f32 %v1155_v27, 0.0  ;;  %6050 = vmatmul.mubr.msk.bf16.gmra.mrb[128].mxu0 %vm873_vm0, %v7535_v21  ;;  %v1952_v17 = vmax.f32 %v1633_v9, 0.0  ;;  %v1637_v18 = vadd.f32 %v1636_v15, %v7976_v8 }
 0x11a   : > { %v1762_v40 = vmax.f32 %v1157_v32, 0.0  ;;  %1428 = vmatprep.mubr.bf16.mxu0 %v7645_v2  ;;  %v1953_v21 = vmax.f32 %v1635_v14, 0.0 }
 0x11b   : > { %v2005_v44 = vpack.c.bf16 %v1761_v36, %v1759_v35  ;;  %v1954_v27 = vmax.f32 %v1637_v18, 0.0 }
 0x11c   : > { %v1160_v47 = vpop.f32.mrb[24].mxu0  ;;  %v2006_v48 = vpack.c.bf16 %v1762_v40, %v1760_v39  ;;  %v8078_v32 = vpack.c.bf16 %v1953_v21, %v1951_v13 }
 0x11d   : > { %v1161_v50 = vadd.f32 %v1160_v47, %v7974_v7  ;;  %v1162_v51 = vpop.f32.mrb[25].mxu0  ;;  %v1640_v35 = vpop.f32.mrb[24].mxu1  ;;  %v8081_v36 = vpack.c.bf16 %v1954_v27, %v1952_v17 }
 0x11e   : > { %v1163_v54 = vadd.f32 %v1162_v51, %v7976_v8  ;;  %v1164_v56 = vpop.f32.mrb[26].mxu0  ;;  %2330 = vmatprep.mubr.bf16.mxu1 %v2006_v48  ;;  %v1641_v38 = vadd.f32 %v1640_v35, %v7974_v7  ;;  %v1642_v39 = vpop.f32.mrb[25].mxu1 }
 0x11f   : > { %v1165_v59 = vadd.f32 %v1164_v56, %v7974_v7  ;;  %v1166_v62 = vpop.f32.mrb[27].mxu0  ;;  %2331 = vmatmul.mubr.bf16.gmra.mrb[84].mxu1 %v2005_v44  ;;  %v1763_v5 = vmax.f32 %v1161_v50, 0.0  ;;  %v1643_v42 = vadd.f32 %v1642_v39, %v7976_v8  ;;  %v1644_v43 = vpop.f32.mrb[26].mxu1  ;;  %v7539_v39 = vld [vmem:[%s7775_s13 + $0x120] sm:$0xff]  }
 0x120   : > { %v1167_v1 = vadd.f32 %v1166_v62, %v7976_v8  ;;  %v1764_v11 = vmax.f32 %v1163_v54, 0.0  ;;  %v1955_v46 = vmax.f32 %v1641_v38, 0.0  ;;  %v1645_v47 = vadd.f32 %v1644_v43, %v7974_v7  ;;  %v1646_v48 = vpop.f32.mrb[27].mxu1  ;;  %v7538_v62 = vld [vmem:[%s7775_s13 + $0x118] sm:$0xff]  }
 0x121   : > { %v1765_v6 = vmax.f32 %v1165_v59, 0.0  ;;  %6051 = vmatmul.mubr.msk.bf16.gmra.mrb[132].mxu0 %vm873_vm0, %v7536_v52  ;;  %v1956_v50 = vmax.f32 %v1643_v42, 0.0  ;;  %v1647_v51 = vadd.f32 %v1646_v48, %v7976_v8 }
 0x122   : > { %v1766_v12 = vmax.f32 %v1167_v1, 0.0  ;;  %1438 = vmatprep.mubr.bf16.mxu0 %v7645_v2  ;;  %v1957_v54 = vmax.f32 %v1645_v47, 0.0 }
 0x123   : > { %v2007_v16 = vpack.c.bf16 %v1765_v6, %v1763_v5  ;;  %v1958_v63 = vmax.f32 %v1647_v51, 0.0 }
 0x124   : > { %v1170_v19 = vpop.f32.mrb[28].mxu0  ;;  %v2008_v20 = vpack.c.bf16 %v1766_v12, %v1764_v11  ;;  %v8093_v4 = vpack.c.bf16 %v1957_v54, %v1955_v46 }
 0x125   : > { %v1171_v22 = vadd.f32 %v1170_v19, %v7974_v7  ;;  %v1172_v23 = vpop.f32.mrb[29].mxu0  ;;  %v1650_v9 = vpop.f32.mrb[28].mxu1  ;;  %v8096_v10 = vpack.c.bf16 %v1958_v63, %v1956_v50 }
 0x126   : > { %v1173_v28 = vadd.f32 %v1172_v23, %v7976_v8  ;;  %v1174_v29 = vpop.f32.mrb[30].mxu0  ;;  %2338 = vmatprep.mubr.bf16.mxu1 %v2008_v20  ;;  %v1651_v12 = vadd.f32 %v1650_v9, %v7974_v7  ;;  %v1652_v13 = vpop.f32.mrb[29].mxu1  ;;  %v7553_v23 = vld [vmem:[%s9179_s7] sm:$0xff]  }
 0x127   : > { %v1175_v33 = vadd.f32 %v1174_v29, %v7974_v7  ;;  %v1176_v34 = vpop.f32.mrb[31].mxu0  ;;  %2339 = vmatmul.mubr.bf16.gmra.mrb[88].mxu1 %v2007_v16  ;;  %v1767_v40 = vmax.f32 %v1171_v22, 0.0  ;;  %v1653_v16 = vadd.f32 %v1652_v13, %v7976_v8  ;;  %v1654_v17 = vpop.f32.mrb[30].mxu1  ;;  %7131 = vmatprep.subr.bf16.mxu1 %v7553_v23 }
 0x128   : > { %v1177_v37 = vadd.f32 %v1176_v34, %v7976_v8  ;;  %v1768_v44 = vmax.f32 %v1173_v28, 0.0  ;;  %v1959_v20 = vmax.f32 %v1651_v12, 0.0  ;;  %v1655_v21 = vadd.f32 %v1654_v17, %v7974_v7  ;;  %v1656_v22 = vpop.f32.mrb[31].mxu1  ;;  %7132 = vmatpush3.bf16.msra.mxu1 %v7553_v23 }
 0x129   : > { %v1769_v41 = vmax.f32 %v1175_v33, 0.0  ;;  %6052 = vmatmul.mubr.msk.bf16.gmra.mrb[136].mxu0 %vm873_vm0, %v7537_v24  ;;  %v7554_v24 = vld [vmem:[%s9177_s5 + $0x10] sm:$0xff]   ;;  %v1960_v28 = vmax.f32 %v1653_v16, 0.0  ;;  %v1657_v29 = vadd.f32 %v1656_v22, %v7976_v8 }
 0x12a   : > { %v1770_v45 = vmax.f32 %v1177_v37, 0.0  ;;  %1448 = vmatprep.mubr.bf16.mxu0 %v7645_v2  ;;  %v1961_v35 = vmax.f32 %v1655_v21, 0.0  ;;  %6991 = vmatprep.subr.bf16.mxu0 %v7554_v24 }
 0x12b   : > { %v2009_v49 = vpack.c.bf16 %v1769_v41, %v1767_v40  ;;  %v1962_v40 = vmax.f32 %v1657_v29, 0.0  ;;  %6992 = vmatpush3.bf16.msra.mxu0 %v7554_v24 }
 0x12c   : > { %v1180_v52 = vpop.f32.mrb[32].mxu0  ;;  %v2010_v53 = vpack.c.bf16 %v1770_v45, %v1768_v44  ;;  %v8114_v43 = vpack.c.bf16 %v1961_v35, %v1959_v20 }
 0x12d   : > { %v1181_v56 = vadd.f32 %v1180_v52, %v7974_v7  ;;  %v1182_v59 = vpop.f32.mrb[33].mxu0  ;;  %v1660_v46 = vpop.f32.mrb[32].mxu1  ;;  %v8117_v47 = vpack.c.bf16 %v1962_v40, %v1960_v28 }
 0x12e   : > { %v1183_v1 = vadd.f32 %v1182_v59, %v7976_v8  ;;  %v1184_v3 = vpop.f32.mrb[34].mxu0  ;;  %2346 = vmatprep.mubr.bf16.mxu1 %v2010_v53  ;;  %v1662_v50 = vpop.f32.mrb[33].mxu1 }
 0x12f   : > { %v1185_v5 = vadd.f32 %v1184_v3, %v7974_v7  ;;  %v1186_v6 = vpop.f32.mrb[35].mxu0  ;;  %2347 = vmatmul.mubr.bf16.gmra.mrb[92].mxu1 %v2009_v49  ;;  %v1771_v14 = vmax.f32 %v1181_v56, 0.0  ;;  %v1661_v49 = vadd.f32 %v1660_v46, %v7974_v7  ;;  %v1663_v53 = vadd.f32 %v1662_v50, %v7976_v8  ;;  %v1664_v54 = vpop.f32.mrb[34].mxu1 }
 0x130   : > { %v1187_v11 = vadd.f32 %v1186_v6, %v7976_v8  ;;  %v1772_v18 = vmax.f32 %v1183_v1, 0.0  ;;  %v1665_v63 = vadd.f32 %v1664_v54, %v7974_v7  ;;  %v1666_v1 = vpop.f32.mrb[35].mxu1  ;;  %v7555_v54 = vld [vmem:[%s9177_s5 + $0x18] sm:$0xff]  }
 0x131   : > { %v1773_v15 = vmax.f32 %v1185_v5, 0.0  ;;  %6053 = vmatmul.mubr.msk.bf16.gmra.mrb[140].mxu0 %vm873_vm0, %v7538_v62  ;;  %v1963_v62 = vmax.f32 %v1661_v49, 0.0  ;;  %v1964_v5 = vmax.f32 %v1663_v53, 0.0  ;;  %v1667_v6 = vadd.f32 %v1666_v1, %v7976_v8  ;;  %6993 = vmatprep.subr.bf16.mxu0 %v7555_v54 }
 0x132   : > { %v1774_v19 = vmax.f32 %v1187_v11, 0.0  ;;  %1458 = vmatprep.mubr.bf16.mxu0 %v7645_v2  ;;  %v1965_v12 = vmax.f32 %v1665_v63, 0.0  ;;  %6994 = vmatpush3.bf16.msra.mxu0 %v7555_v54 }
 0x133   : > { %v2011_v27 = vpack.c.bf16 %v1773_v15, %v1771_v14  ;;  %v7540_v15 = vld [vmem:[%s7775_s13 + $0x128] sm:$0xff]   ;;  %v1966_v16 = vmax.f32 %v1667_v6, 0.0 }
 0x134   : > { %v1190_v33 = vpop.f32.mrb[36].mxu0  ;;  %v2012_v34 = vpack.c.bf16 %v1774_v19, %v1772_v18  ;;  %v8129_v19 = vpack.c.bf16 %v1965_v12, %v1963_v62 }
 0x135   : > { %v1191_v37 = vadd.f32 %v1190_v33, %v7974_v7  ;;  %v1192_v38 = vpop.f32.mrb[37].mxu0  ;;  %v1670_v22 = vpop.f32.mrb[36].mxu1  ;;  %v8132_v23 = vpack.c.bf16 %v1966_v16, %v1964_v5  ;;  %v7556_v16 = vld [vmem:[%s9177_s5 + $0x20] sm:$0xff]  }
 0x136   : > { %v1193_v41 = vadd.f32 %v1192_v38, %v7976_v8  ;;  %v1194_v42 = vpop.f32.mrb[38].mxu0  ;;  %2354 = vmatprep.mubr.bf16.mxu1 %v2012_v34  ;;  %v1672_v28 = vpop.f32.mrb[37].mxu1  ;;  %6995 = vmatprep.subr.bf16.mxu0 %v7556_v16 }
 0x137   : > { %v1195_v44 = vadd.f32 %v1194_v42, %v7974_v7  ;;  %v1196_v45 = vpop.f32.mrb[39].mxu0  ;;  %2355 = vmatmul.mubr.bf16.gmra.mrb[96].mxu1 %v2011_v27  ;;  %v1775_v51 = vmax.f32 %v1191_v37, 0.0  ;;  %v1671_v27 = vadd.f32 %v1670_v22, %v7974_v7  ;;  %v1673_v34 = vadd.f32 %v1672_v28, %v7976_v8  ;;  %v1674_v35 = vpop.f32.mrb[38].mxu1  ;;  %6996 = vmatpush3.bf16.msra.mxu0 %v7556_v16 }
 0x138   : > { %v1197_v48 = vadd.f32 %v1196_v45, %v7976_v8  ;;  %v1776_v56 = vmax.f32 %v1193_v41, 0.0  ;;  %v1675_v40 = vadd.f32 %v1674_v35, %v7974_v7  ;;  %v1676_v41 = vpop.f32.mrb[39].mxu1 }
 0x139   : > { %v1777_v52 = vmax.f32 %v1195_v44, 0.0  ;;  %6054 = vmatmul.mubr.msk.bf16.gmra.mrb[144].mxu0 %vm873_vm0, %v7539_v39  ;;  %v1967_v39 = vmax.f32 %v1671_v27, 0.0  ;;  %v1968_v44 = vmax.f32 %v1673_v34, 0.0  ;;  %v1677_v45 = vadd.f32 %v1676_v41, %v7976_v8 }
 0x13a   : > { %v1778_v59 = vmax.f32 %v1197_v48, 0.0  ;;  %1468 = vmatprep.mubr.bf16.mxu0 %v7645_v2  ;;  %v1969_v49 = vmax.f32 %v1675_v40, 0.0  ;;  %v7557_v40 = vld [vmem:[%s9177_s5 + $0x28] sm:$0xff]  }
 0x13b   : > { %v2013_v3 = vpack.c.bf16 %v1777_v52, %v1775_v51  ;;  %v7541_v52 = vld [vmem:[%s7775_s13 + $0x130] sm:$0xff]   ;;  %v1970_v53 = vmax.f32 %v1677_v45, 0.0  ;;  %6997 = vmatprep.subr.bf16.mxu0 %v7557_v40 }
 0x13c   : > { %v1200_v9 = vpop.f32.mrb[40].mxu0  ;;  %v2014_v11 = vpack.c.bf16 %v1778_v59, %v1776_v56  ;;  %v8147_v62 = vpack.c.bf16 %v1969_v49, %v1967_v39  ;;  %6998 = vmatpush3.bf16.msra.mxu0 %v7557_v40 }
 0x13d   : > { %v1201_v13 = vadd.f32 %v1200_v9, %v7974_v7  ;;  %v1202_v14 = vpop.f32.mrb[41].mxu0  ;;  %v8150_v5 = vpack.c.bf16 %v1970_v53, %v1968_v44 }
 0x13e   : > { %v1203_v17 = vadd.f32 %v1202_v14, %v7976_v8  ;;  %v1204_v18 = vpop.f32.mrb[42].mxu0  ;;  %2362 = vmatprep.mubr.bf16.mxu1 %v2014_v11 }
 0x13f   : > { %v1205_v20 = vadd.f32 %v1204_v18, %v7974_v7  ;;  %v1206_v21 = vpop.f32.mrb[43].mxu0  ;;  %2363 = vmatmul.mubr.bf16.gmra.mrb[100].mxu1 %v2013_v3  ;;  %v1779_v29 = vmax.f32 %v1201_v13, 0.0  ;;  %v1680_v3 = vpop.f32.mrb[40].mxu1 }
 0x140   : > { %v1207_v24 = vadd.f32 %v1206_v21, %v7976_v8  ;;  %v1780_v37 = vmax.f32 %v1203_v17, 0.0  ;;  %v1681_v9 = vadd.f32 %v1680_v3, %v7974_v7  ;;  %v1682_v11 = vpop.f32.mrb[41].mxu1 }
 0x141   : > { %v1781_v33 = vmax.f32 %v1205_v20, 0.0  ;;  %6055 = vmatmul.mubr.msk.bf16.gmra.mrb[148].mxu0 %vm873_vm0, %v7540_v15  ;;  %v1683_v14 = vadd.f32 %v1682_v11, %v7976_v8  ;;  %v1684_v15 = vpop.f32.mrb[42].mxu1 }
 0x142   : > { %v1782_v38 = vmax.f32 %v1207_v24, 0.0  ;;  %1478 = vmatprep.mubr.bf16.mxu0 %v7645_v2  ;;  %v1971_v20 = vmax.f32 %v1681_v9, 0.0  ;;  %v1685_v21 = vadd.f32 %v1684_v15, %v7974_v7  ;;  %v1686_v22 = vpop.f32.mrb[43].mxu1 }
 0x143   : > { %v2015_v42 = vpack.c.bf16 %v1781_v33, %v1779_v29  ;;  %v1972_v27 = vmax.f32 %v1683_v14, 0.0  ;;  %v1687_v28 = vadd.f32 %v1686_v22, %v7976_v8 }
 0x144   : > { %v1210_v46 = vpop.f32.mrb[44].mxu0  ;;  %v2016_v48 = vpack.c.bf16 %v1782_v38, %v1780_v37  ;;  %v1973_v34 = vmax.f32 %v1685_v21, 0.0  ;;  %v7542_v38 = vld [vmem:[%s7775_s13 + $0x138] sm:$0xff]   ;;  %v7544_v21 = vld [vmem:[%s7775_s13 + $0x140] sm:$0xff]  }
 0x145   : > { %v1211_v50 = vadd.f32 %v1210_v46, %v7974_v7  ;;  %v1212_v51 = vpop.f32.mrb[45].mxu0  ;;  %v1974_v39 = vmax.f32 %v1687_v28, 0.0 }
 0x146   : > { %v1213_v56 = vadd.f32 %v1212_v51, %v7976_v8  ;;  %v1214_v59 = vpop.f32.mrb[46].mxu0  ;;  %2370 = vmatprep.mubr.bf16.mxu1 %v2016_v48  ;;  %v8168_v44 = vpack.c.bf16 %v1973_v34, %v1971_v20  ;;  %v1690_v48 = vpop.f32.mrb[44].mxu1 }
 0x147   : > { %v1215_v63 = vadd.f32 %v1214_v59, %v7974_v7  ;;  %v1216_v1 = vpop.f32.mrb[47].mxu0  ;;  %2371 = vmatmul.mubr.bf16.gmra.mrb[104].mxu1 %v2015_v42  ;;  %v1783_v12 = vmax.f32 %v1211_v50, 0.0  ;;  %v8171_v49 = vpack.c.bf16 %v1974_v39, %v1972_v27  ;;  %v1691_v51 = vadd.f32 %v1690_v48, %v7974_v7 }
 0x148   : > { %v1217_v6 = vadd.f32 %v1216_v1, %v7976_v8  ;;  %v1784_v17 = vmax.f32 %v1213_v56, 0.0 }
 0x149   : > { %v1785_v13 = vmax.f32 %v1215_v63, 0.0  ;;  %6056 = vmatmul.mubr.msk.bf16.gmra.mrb[152].mxu0 %vm873_vm0, %v7541_v52  ;;  %v1692_v52 = vpop.f32.mrb[45].mxu1  ;;  %v7558_v63 = vld [vmem:[%s9177_s5 + $0x30] sm:$0xff]  }
 0x14a   : > { %v1786_v18 = vmax.f32 %v1217_v6, 0.0  ;;  %1488 = vmatprep.mubr.bf16.mxu0 %v7645_v2  ;;  %v1693_v56 = vadd.f32 %v1692_v52, %v7976_v8  ;;  %v1694_v59 = vpop.f32.mrb[46].mxu1  ;;  %v1975_v6 = vmax.f32 %v1691_v51, 0.0  ;;  %6999 = vmatprep.subr.bf16.mxu0 %v7558_v63 }
 0x14b   : > { %v2017_v24 = vpack.c.bf16 %v1785_v13, %v1783_v12  ;;  %v1695_v9 = vadd.f32 %v1694_v59, %v7974_v7  ;;  %v1696_v11 = vpop.f32.mrb[47].mxu1  ;;  %7000 = vmatpush3.bf16.msra.mxu0 %v7558_v63 }
 0x14c   : > { %v1220_v29 = vpop.f32.mrb[48].mxu0  ;;  %v2018_v33 = vpack.c.bf16 %v1786_v18, %v1784_v17  ;;  %v1976_v13 = vmax.f32 %v1693_v56, 0.0  ;;  %v1697_v14 = vadd.f32 %v1696_v11, %v7976_v8  ;;  %v7545_v11 = vld [vmem:[%s7775_s13 + $0x148] sm:$0xff]  }
 0x14d   : > { %v1221_v35 = vadd.f32 %v1220_v29, %v7974_v7  ;;  %v1222_v37 = vpop.f32.mrb[49].mxu0  ;;  %v1977_v17 = vmax.f32 %v1695_v9, 0.0 }
 0x14e   : > { %v1223_v41 = vadd.f32 %v1222_v37, %v7976_v8  ;;  %v1224_v42 = vpop.f32.mrb[50].mxu0  ;;  %2378 = vmatprep.mubr.bf16.mxu1 %v2018_v33  ;;  %v1978_v22 = vmax.f32 %v1697_v14, 0.0 }
 0x14f   : > { %v1225_v45 = vadd.f32 %v1224_v42, %v7974_v7  ;;  %v1226_v46 = vpop.f32.mrb[51].mxu0  ;;  %2379 = vmatmul.mubr.bf16.gmra.mrb[108].mxu1 %v2017_v24  ;;  %v1787_v53 = vmax.f32 %v1221_v35, 0.0  ;;  %v7559_v24 = vld [vmem:[%s9177_s5 + $0x38] sm:$0xff]   ;;  %v8189_v29 = vpack.c.bf16 %v1977_v17, %v1975_v6  ;;  %v1700_v35 = vpop.f32.mrb[48].mxu1 }
 0x150   : > { %v1227_v50 = vadd.f32 %v1226_v46, %v7976_v8  ;;  %v1788_v1 = vmax.f32 %v1223_v41, 0.0  ;;  %7001 = vmatprep.subr.bf16.mxu0 %v7559_v24  ;;  %v8192_v37 = vpack.c.bf16 %v1978_v22, %v1976_v13  ;;  %v1701_v39 = vadd.f32 %v1700_v35, %v7974_v7  ;;  %v1702_v40 = vpop.f32.mrb[49].mxu1 }
 0x151   : > { %v1789_v54 = vmax.f32 %v1225_v45, 0.0  ;;  %6057 = vmatmul.mubr.msk.bf16.gmra.mrb[156].mxu0 %vm873_vm0, %v7542_v38  ;;  %v1703_v45 = vadd.f32 %v1702_v40, %v7976_v8  ;;  %v1704_v46 = vpop.f32.mrb[50].mxu1 }
 0x152   : > { %v1790_v3 = vmax.f32 %v1227_v50, 0.0  ;;  %1498 = vmatprep.mubr.bf16.mxu0 %v7645_v2  ;;  %7002 = vmatpush3.bf16.msra.mxu0 %v7559_v24  ;;  %v1979_v51 = vmax.f32 %v1701_v39, 0.0  ;;  %v1705_v52 = vadd.f32 %v1704_v46, %v7974_v7 }
 0x153   : > { %v2019_v12 = vpack.c.bf16 %v1789_v54, %v1787_v53  ;;  %v1706_v53 = vpop.f32.mrb[51].mxu1  ;;  %v1980_v56 = vmax.f32 %v1703_v45, 0.0 }
 0x154   : > { %v1230_v15 = vpop.f32.mrb[52].mxu0  ;;  %v2020_v16 = vpack.c.bf16 %v1790_v3, %v1788_v1  ;;  %v1707_v59 = vadd.f32 %v1706_v53, %v7976_v8  ;;  %v1981_v3 = vmax.f32 %v1705_v52, 0.0 }
 0x155   : > { %v1231_v18 = vadd.f32 %v1230_v15, %v7974_v7  ;;  %v1232_v20 = vpop.f32.mrb[53].mxu0 }
 0x156   : > { %v1233_v27 = vadd.f32 %v1232_v20, %v7976_v8  ;;  %v1234_v28 = vpop.f32.mrb[54].mxu0  ;;  %2386 = vmatprep.mubr.bf16.mxu1 %v2020_v16  ;;  %v8204_v15 = vpack.c.bf16 %v1981_v3, %v1979_v51 }
 0x157   : > { %v1235_v33 = vadd.f32 %v1234_v28, %v7974_v7  ;;  %v1236_v34 = vpop.f32.mrb[55].mxu0  ;;  %2387 = vmatmul.mubr.bf16.gmra.mrb[112].mxu1 %v2019_v12  ;;  %v1791_v41 = vmax.f32 %v1231_v18, 0.0  ;;  %v1982_v12 = vmax.f32 %v1707_v59, 0.0  ;;  %v1710_v18 = vpop.f32.mrb[52].mxu1 }
 0x158   : > { %v1237_v38 = vadd.f32 %v1236_v34, %v7976_v8  ;;  %v1792_v48 = vmax.f32 %v1233_v27, 0.0  ;;  %v1711_v22 = vadd.f32 %v1710_v18, %v7974_v7  ;;  %v1712_v24 = vpop.f32.mrb[53].mxu1 }
 0x159   : > { %v1793_v42 = vmax.f32 %v1235_v33, 0.0  ;;  %6058 = vmatmul.mubr.msk.bf16.gmra.mrb[160].mxu0 %vm873_vm0, %v7544_v21  ;;  %v8207_v20 = vpack.c.bf16 %v1982_v12, %v1980_v56  ;;  %v1713_v33 = vadd.f32 %v1712_v24, %v7976_v8  ;;  %v1714_v34 = vpop.f32.mrb[54].mxu1 }
 0x15a   : > { %v1794_v50 = vmax.f32 %v1237_v38, 0.0  ;;  %1508 = vmatprep.mubr.bf16.mxu0 %v7645_v2  ;;  %v1983_v39 = vmax.f32 %v1711_v22, 0.0  ;;  %v1715_v40 = vadd.f32 %v1714_v34, %v7974_v7 }
 0x15b   : > { %v2021_v54 = vpack.c.bf16 %v1793_v42, %v1791_v41  ;;  %v1716_v41 = vpop.f32.mrb[55].mxu1  ;;  %v1984_v45 = vmax.f32 %v1713_v33, 0.0 }
 0x15c   : > { %v1240_v63 = vpop.f32.mrb[56].mxu0  ;;  %v2022_v1 = vpack.c.bf16 %v1794_v50, %v1792_v48  ;;  %v1717_v46 = vadd.f32 %v1716_v41, %v7976_v8  ;;  %v1985_v51 = vmax.f32 %v1715_v40, 0.0 }
 0x15d   : > { %v1241_v6 = vadd.f32 %v1240_v63, %v7974_v7  ;;  %v1242_v9 = vpop.f32.mrb[57].mxu0 }
 0x15e   : > { %v1243_v13 = vadd.f32 %v1242_v9, %v7976_v8  ;;  %v1244_v14 = vpop.f32.mrb[58].mxu0  ;;  %2394 = vmatprep.mubr.bf16.mxu1 %v2022_v1  ;;  %v1986_v56 = vmax.f32 %v1717_v46, 0.0  ;;  %v8219_v1 = vpack.c.bf16 %v1985_v51, %v1983_v39  ;;  %v1720_v9 = vpop.f32.mrb[56].mxu1  ;;  %v7547_v46 = vld [vmem:[%s7775_s13 + $0x158] sm:$0xff]  }
 0x15f   : > { %v1245_v16 = vadd.f32 %v1244_v14, %v7974_v7  ;;  %v1246_v17 = vpop.f32.mrb[59].mxu0  ;;  %2395 = vmatmul.mubr.bf16.gmra.mrb[116].mxu1 %v2021_v54  ;;  %v1795_v27 = vmax.f32 %v1241_v6, 0.0  ;;  %v7546_v54 = vld [vmem:[%s7775_s13 + $0x150] sm:$0xff]   ;;  %v1722_v14 = vpop.f32.mrb[57].mxu1 }
 0x160   : > { %v1247_v21 = vadd.f32 %v1246_v17, %v7976_v8  ;;  %v1796_v35 = vmax.f32 %v1243_v13, 0.0  ;;  %v1721_v13 = vadd.f32 %v1720_v9, %v7974_v7  ;;  %v1723_v18 = vadd.f32 %v1722_v14, %v7976_v8 }
 0x161   : > { %v1797_v28 = vmax.f32 %v1245_v16, 0.0  ;;  %6059 = vmatmul.mubr.msk.bf16.gmra.mrb[164].mxu0 %vm873_vm0, %v7545_v11  ;;  %v8222_v11 = vpack.c.bf16 %v1986_v56, %v1984_v45 }
 0x162   : > { %v1798_v38 = vmax.f32 %v1247_v21, 0.0  ;;  %1518 = vmatprep.mubr.bf16.mxu0 %v7645_v2  ;;  %v1724_v21 = vpop.f32.mrb[58].mxu1 }
 0x163   : > { %v2023_v42 = vpack.c.bf16 %v1797_v28, %v1795_v27  ;;  %v1987_v27 = vmax.f32 %v1721_v13, 0.0  ;;  %v1725_v28 = vadd.f32 %v1724_v21, %v7974_v7  ;;  %v1726_v33 = vpop.f32.mrb[59].mxu1 }
 0x164   : > { %v1250_v48 = vpop.f32.mrb[60].mxu0  ;;  %v2024_v50 = vpack.c.bf16 %v1798_v38, %v1796_v35  ;;  %v1988_v35 = vmax.f32 %v1723_v18, 0.0  ;;  %v1727_v38 = vadd.f32 %v1726_v33, %v7976_v8 }
 0x165   : > { %v1251_v52 = vadd.f32 %v1250_v48, %v7974_v7  ;;  %v1252_v53 = vpop.f32.mrb[61].mxu0  ;;  %v1989_v41 = vmax.f32 %v1725_v28, 0.0  ;;  %v1730_v56 = vpop.f32.mrb[60].mxu1 }
 0x166   : > { %v1253_v59 = vadd.f32 %v1252_v53, %v7976_v8  ;;  %v1254_v63 = vpop.f32.mrb[62].mxu0  ;;  %2402 = vmatprep.mubr.bf16.mxu1 %v2024_v50  ;;  %v1990_v48 = vmax.f32 %v1727_v38, 0.0 }
 0x167   : > { %v1255_v3 = vadd.f32 %v1254_v63, %v7974_v7  ;;  %v1256_v6 = vpop.f32.mrb[63].mxu0  ;;  %2403 = vmatmul.mubr.bf16.gmra.mrb[120].mxu1 %v2023_v42  ;;  %v1799_v16 = vmax.f32 %v1251_v52, 0.0  ;;  %v8234_v52 = vpack.c.bf16 %v1989_v41, %v1987_v27  ;;  %v7548_v41 = vld [vmem:[%s7775_s13 + $0x160] sm:$0xff]  }
 0x168   : > { %v1257_v12 = vadd.f32 %v1256_v6, %v7976_v8  ;;  %v1800_v22 = vmax.f32 %v1253_v59, 0.0  ;;  %v8237_v59 = vpack.c.bf16 %v1990_v48, %v1988_v35  ;;  %v1732_v6 = vpop.f32.mrb[61].mxu1 }
 0x169   : > { %v1801_v17 = vmax.f32 %v1255_v3, 0.0  ;;  %6060 = vmatmul.mubr.msk.bf16.gmra.mrb[168].mxu0 %vm873_vm0, %v7546_v54  ;;  %v1731_v3 = vadd.f32 %v1730_v56, %v7974_v7  ;;  %v1733_v13 = vadd.f32 %v1732_v6, %v7976_v8  ;;  %v1734_v14 = vpop.f32.mrb[62].mxu1 }
 0x16a   : > { %v1802_v24 = vmax.f32 %v1257_v12, 0.0  ;;  %1528 = vmatprep.mubr.bf16.mxu0 %v7645_v2  ;;  %v1735_v21 = vadd.f32 %v1734_v14, %v7974_v7 }
 0x16b   : > { %v2025_v34 = vpack.c.bf16 %v1801_v17, %v1799_v16  ;;  %v1991_v18 = vmax.f32 %v1731_v3, 0.0  ;;  %v1992_v28 = vmax.f32 %v1733_v13, 0.0 }
 0x16c   : > { %v1260_v39 = vpop.f32.mrb[64].mxu0  ;;  %v2026_v40 = vpack.c.bf16 %v1802_v24, %v1800_v22  ;;  %v1736_v22 = vpop.f32.mrb[63].mxu1  ;;  %v7560_v24 = vld [vmem:[%s9179_s7 + $0x8] sm:$0xff]   ;;  %v1993_v38 = vmax.f32 %v1735_v21, 0.0 }
 0x16d   : > { %v1261_v42 = vadd.f32 %v1260_v39, %v7974_v7  ;;  %v1262_v45 = vpop.f32.mrb[65].mxu0  ;;  %v1737_v33 = vadd.f32 %v1736_v22, %v7976_v8  ;;  %7133 = vmatprep.subr.bf16.mxu1 %v7560_v24 }
 0x16e   : > { %v1263_v50 = vadd.f32 %v1262_v45, %v7976_v8  ;;  %v1264_v51 = vpop.f32.mrb[66].mxu0  ;;  %2410 = vmatprep.mubr.bf16.mxu1 %v2026_v40  ;;  %7134 = vmatpush3.bf16.msra.mxu1 %v7560_v24  ;;  %v8252_v48 = vpack.c.bf16 %v1993_v38, %v1991_v18 }
 0x16f   : > { %v1265_v53 = vadd.f32 %v1264_v51, %v7974_v7  ;;  %v1266_v54 = vpop.f32.mrb[67].mxu0  ;;  %2411 = vmatmul.mubr.bf16.gmra.mrb[124].mxu1 %v2025_v34  ;;  %v1803_v9 = vmax.f32 %v1261_v42, 0.0  ;;  %v1994_v42 = vmax.f32 %v1737_v33, 0.0 }
 0x170   : > { %v1267_v63 = vadd.f32 %v1266_v54, %v7976_v8  ;;  %v1804_v16 = vmax.f32 %v1263_v50, 0.0 }
 0x171   : > { %v1805_v12 = vmax.f32 %v1265_v53, 0.0  ;;  %6061 = vmatmul.mubr.msk.bf16.gmra.mrb[172].mxu0 %vm873_vm0, %v7547_v46  ;;  %v8255_v53 = vpack.c.bf16 %v1994_v42, %v1992_v28 }
 0x172   : > { %v1806_v17 = vmax.f32 %v1267_v63, 0.0  ;;  %1538 = vmatprep.mubr.bf16.mxu0 %v7645_v2 }
 0x173   : > { %v2027_v27 = vpack.c.bf16 %v1805_v12, %v1803_v9 }
 0x174   : > { %v1270_v34 = vpop.f32.mrb[68].mxu0  ;;  %v2028_v35 = vpack.c.bf16 %v1806_v17, %v1804_v16  ;;  %v7549_v17 = vld [vmem:[%s7775_s13 + $0x168] sm:$0xff]  }
 0x175   : > { %v1271_v39 = vadd.f32 %v1270_v34, %v7974_v7  ;;  %v1272_v40 = vpop.f32.mrb[69].mxu0 }
 0x176   : > { %v1273_v45 = vadd.f32 %v1272_v40, %v7976_v8  ;;  %v1274_v46 = vpop.f32.mrb[70].mxu0  ;;  %2418 = vmatprep.mubr.bf16.mxu1 %v2028_v35 }
 0x177   : > { %v1275_v50 = vadd.f32 %v1274_v46, %v7974_v7  ;;  %v1276_v51 = vpop.f32.mrb[71].mxu0  ;;  %2419 = vmatmul.mubr.bf16.gmra.mrb[128].mxu1 %v2027_v27  ;;  %v1807_v56 = vmax.f32 %v1271_v39, 0.0 }
 0x178   : > { %v1277_v54 = vadd.f32 %v1276_v51, %v7976_v8  ;;  %v1808_v3 = vmax.f32 %v1273_v45, 0.0  ;;  %v7551_v45 = vld [vmem:[%s7775_s13 + $0x170] sm:$0xff]  }
 0x179   : > { %v1809_v63 = vmax.f32 %v1275_v50, 0.0  ;;  %6062 = vmatmul.mubr.msk.bf16.gmra.mrb[176].mxu0 %vm873_vm0, %v7548_v41 }
 0x17a   : > { %v1810_v6 = vmax.f32 %v1277_v54, 0.0  ;;  %1548 = vmatprep.mubr.bf16.mxu0 %v7645_v2 }
 0x17b   : > { %v2029_v9 = vpack.c.bf16 %v1809_v63, %v1807_v56 }
 0x17c   : > { %v1280_v12 = vpop.f32.mrb[72].mxu0  ;;  %v2030_v13 = vpack.c.bf16 %v1810_v6, %v1808_v3 }
 0x17d   : > { %v1281_v14 = vadd.f32 %v1280_v12, %v7974_v7  ;;  %v1282_v16 = vpop.f32.mrb[73].mxu0 }
 0x17e   : > { %v1283_v18 = vadd.f32 %v1282_v16, %v7976_v8  ;;  %v1284_v21 = vpop.f32.mrb[74].mxu0  ;;  %2426 = vmatprep.mubr.bf16.mxu1 %v2030_v13 }
 0x17f   : > { %v1285_v22 = vadd.f32 %v1284_v21, %v7974_v7  ;;  %v1286_v24 = vpop.f32.mrb[75].mxu0  ;;  %2427 = vmatmul.mubr.bf16.gmra.mrb[132].mxu1 %v2029_v9  ;;  %v1811_v28 = vmax.f32 %v1281_v14, 0.0 }
 0x180   : > { %v1287_v27 = vadd.f32 %v1286_v24, %v7976_v8  ;;  %v1812_v34 = vmax.f32 %v1283_v18, 0.0  ;;  %v7552_v18 = vld [vmem:[%s7775_s13 + $0x178] sm:$0xff]   ;;  %s7585_s13 = sshll.u32 %s7646_s30, 4  ;;  %s7586_s13 = int_to_ptr.vmem [resolvable:$false] %s7585_s13 }
 0x181   : > { %v1813_v33 = vmax.f32 %v1285_v22, 0.0  ;;  %6063 = vmatmul.mubr.msk.bf16.gmra.mrb[180].mxu0 %vm873_vm0, %v7549_v17  ;;  %s7587_s12 = scalar_lea.vmem %s7586_s13, 16384  ;;  %p7588_p0 = scmp.lt.s32.totalorder %s9125_s15, %s7586_s13 }
 0x182   : > { %v1814_v35 = vmax.f32 %v1287_v27, 0.0  ;;  %1558 = vmatprep.mubr.bf16.mxu0 %v7645_v2  ;;  %p7589_p1 = scmp.lt.s32.totalorder %s7587_s12, %s7581_s25 }
 0x183   : > { %v2031_v38 = vpack.c.bf16 %v1813_v33, %v1811_v28 }
 0x184   : > { %v1290_v39 = vpop.f32.mrb[76].mxu0  ;;  %v2032_v40 = vpack.c.bf16 %v1814_v35, %v1812_v34  ;;  %p7590_p2 = por %p7589_p1, %p7588_p0 }
 0x185   : > { %v1291_v41 = vadd.f32 %v1290_v39, %v7974_v7  ;;  %v1292_v42 = vpop.f32.mrb[77].mxu0 }
 0x186   : > { %v1293_v46 = vadd.f32 %v1292_v42, %v7976_v8  ;;  %v1294_v50 = vpop.f32.mrb[78].mxu0  ;;  %2434 = vmatprep.mubr.bf16.mxu1 %v2032_v40  ;;  %p7591_p3 = pnand %p7590_p2, %p7584_p13 }
 0x187   : > { %v1295_v51 = vadd.f32 %v1294_v50, %v7974_v7  ;;  %v1296_v54 = vpop.f32.mrb[79].mxu0  ;;  %2435 = vmatmul.mubr.bf16.gmra.mrb[136].mxu1 %v2031_v38  ;;  %v1815_v63 = vmax.f32 %v1291_v41, 0.0 }
 0x188   : > { %v1297_v56 = vadd.f32 %v1296_v54, %v7976_v8  ;;  %v1816_v6 = vmax.f32 %v1293_v46, 0.0 }
 0x189   : > { %v1817_v3 = vmax.f32 %v1295_v51, 0.0  ;;  %6064 = vmatmul.mubr.msk.bf16.gmra.mrb[184].mxu0 %vm873_vm0, %v7551_v45 }
 0x18a   : > { %v1818_v9 = vmax.f32 %v1297_v56, 0.0  ;;  %1568 = vmatprep.mubr.bf16.mxu0 %v7645_v2 }
 0x18b   : > { %v2033_v12 = vpack.c.bf16 %v1817_v3, %v1815_v63 }
 0x18c   : > { %v1300_v13 = vpop.f32.mrb[80].mxu0  ;;  %v2034_v14 = vpack.c.bf16 %v1818_v9, %v1816_v6 }
 0x18d   : > { %v1301_v16 = vadd.f32 %v1300_v13, %v7974_v7  ;;  %v1302_v17 = vpop.f32.mrb[81].mxu0 }
 0x18e   : > { %v1303_v21 = vadd.f32 %v1302_v17, %v7976_v8  ;;  %v1304_v22 = vpop.f32.mrb[82].mxu0  ;;  %2442 = vmatprep.mubr.bf16.mxu1 %v2034_v14 }
 0x18f   : > { %v1305_v24 = vadd.f32 %v1304_v22, %v7974_v7  ;;  %v1306_v27 = vpop.f32.mrb[83].mxu0  ;;  %2443 = vmatmul.mubr.bf16.gmra.mrb[140].mxu1 %v2033_v12  ;;  %v1819_v33 = vmax.f32 %v1301_v16, 0.0 }
 0x190   : > { %v1307_v28 = vadd.f32 %v1306_v27, %v7976_v8  ;;  %v1820_v2 = vmax.f32 %v1303_v21, 0.0 }
 0x191   : > { %v1821_v34 = vmax.f32 %v1305_v24, 0.0  ;;  %6065 = vmatmul.mubr.msk.bf16.gmra.mrb[188].mxu0 %vm873_vm0, %v7552_v18 }
 0x192   : > { %v1822_v35 = vmax.f32 %v1307_v28, 0.0 }
 0x193   : > { %v2035_v38 = vpack.c.bf16 %v1821_v34, %v1819_v33 }
 0x194   : > { %v1310_v39 = vpop.f32.mrb[84].mxu0  ;;  %v2036_v40 = vpack.c.bf16 %v1822_v35, %v1820_v2 }
 0x195   : > { %v1311_v41 = vadd.f32 %v1310_v39, %v7974_v7  ;;  %v1312_v42 = vpop.f32.mrb[85].mxu0 }
 0x196   : > { %v1313_v45 = vadd.f32 %v1312_v42, %v7976_v8  ;;  %v1314_v46 = vpop.f32.mrb[86].mxu0  ;;  %2450 = vmatprep.mubr.bf16.mxu1 %v2036_v40 }
 0x197   : > { %v1315_v50 = vadd.f32 %v1314_v46, %v7974_v7  ;;  %v1316_v51 = vpop.f32.mrb[87].mxu0  ;;  %2451 = vmatmul.mubr.bf16.gmra.mrb[144].mxu1 %v2035_v38  ;;  %v1823_v56 = vmax.f32 %v1311_v41, 0.0 }
 0x198   : > { %v1317_v54 = vadd.f32 %v1316_v51, %v7976_v8  ;;  %v1824_v3 = vmax.f32 %v1313_v45, 0.0 }
 0x199   : > { %v1825_v63 = vmax.f32 %v1315_v50, 0.0 }
 0x19a   : > { %v1826_v6 = vmax.f32 %v1317_v54, 0.0 }
 0x19b   : > { %v2037_v9 = vpack.c.bf16 %v1825_v63, %v1823_v56 }
 0x19c   : > { %v1320_v12 = vpop.f32.mrb[88].mxu0  ;;  %v2038_v13 = vpack.c.bf16 %v1826_v6, %v1824_v3 }
 0x19d   : > { %v1321_v14 = vadd.f32 %v1320_v12, %v7974_v7  ;;  %v1322_v16 = vpop.f32.mrb[89].mxu0 }
 0x19e   : > { %v1323_v17 = vadd.f32 %v1322_v16, %v7976_v8  ;;  %v1324_v18 = vpop.f32.mrb[90].mxu0  ;;  %2458 = vmatprep.mubr.bf16.mxu1 %v2038_v13 }
 0x19f   : > { %v1325_v21 = vadd.f32 %v1324_v18, %v7974_v7  ;;  %v1326_v22 = vpop.f32.mrb[91].mxu0  ;;  %2459 = vmatmul.mubr.bf16.gmra.mrb[148].mxu1 %v2037_v9  ;;  %v1827_v27 = vmax.f32 %v1321_v14, 0.0 }
 0x1a0   : > { %v1327_v24 = vadd.f32 %v1326_v22, %v7976_v8  ;;  %v1828_v33 = vmax.f32 %v1323_v17, 0.0 }
 0x1a1   : > { %v1829_v28 = vmax.f32 %v1325_v21, 0.0 }
 0x1a2   : > { %v1830_v34 = vmax.f32 %v1327_v24, 0.0 }
 0x1a3   : > { %v2039_v2 = vpack.c.bf16 %v1829_v28, %v1827_v27 }
 0x1a4   : > { %v1330_v35 = vpop.f32.mrb[92].mxu0  ;;  %v2040_v38 = vpack.c.bf16 %v1830_v34, %v1828_v33  ;;  %v7561_v33 = vld [vmem:[%s9179_s7 + $0x10] sm:$0xff]  }
 0x1a5   : > { %v1331_v39 = vadd.f32 %v1330_v35, %v7974_v7  ;;  %v1332_v40 = vpop.f32.mrb[93].mxu0  ;;  %7135 = vmatprep.subr.bf16.mxu1 %v7561_v33 }
 0x1a6   : > { %v1333_v41 = vadd.f32 %v1332_v40, %v7976_v8  ;;  %v1334_v42 = vpop.f32.mrb[94].mxu0  ;;  %2466 = vmatprep.mubr.bf16.mxu1 %v2040_v38  ;;  %7136 = vmatpush3.bf16.msra.mxu1 %v7561_v33 }
 0x1a7   : > { %v1335_v45 = vadd.f32 %v1334_v42, %v7974_v7  ;;  %v1336_v46 = vpop.f32.mrb[95].mxu0  ;;  %2467 = vmatmul.mubr.bf16.gmra.mrb[152].mxu1 %v2039_v2  ;;  %v1831_v51 = vmax.f32 %v1331_v39, 0.0 }
 0x1a8   : > { %v1337_v50 = vadd.f32 %v1336_v46, %v7976_v8  ;;  %v1832_v56 = vmax.f32 %v1333_v41, 0.0 }
 0x1a9   : > { %v1833_v54 = vmax.f32 %v1335_v45, 0.0 }
 0x1aa   : > { %v1834_v63 = vmax.f32 %v1337_v50, 0.0 }
 0x1ab   : > { %v2041_v3 = vpack.c.bf16 %v1833_v54, %v1831_v51 }
 0x1ac   : > { %v1340_v6 = vpop.f32.mrb[96].mxu0  ;;  %v2042_v9 = vpack.c.bf16 %v1834_v63, %v1832_v56 }
 0x1ad   : > { %v1341_v12 = vadd.f32 %v1340_v6, %v7974_v7  ;;  %v1342_v13 = vpop.f32.mrb[97].mxu0 }
 0x1ae   : > { %v1343_v14 = vadd.f32 %v1342_v13, %v7976_v8  ;;  %v1344_v16 = vpop.f32.mrb[98].mxu0  ;;  %2474 = vmatprep.mubr.bf16.mxu1 %v2042_v9 }
 0x1af   : > { %v1345_v17 = vadd.f32 %v1344_v16, %v7974_v7  ;;  %v1346_v18 = vpop.f32.mrb[99].mxu0  ;;  %2475 = vmatmul.mubr.bf16.gmra.mrb[156].mxu1 %v2041_v3  ;;  %v1835_v22 = vmax.f32 %v1341_v12, 0.0 }
 0x1b0   : > { %v1347_v21 = vadd.f32 %v1346_v18, %v7976_v8  ;;  %v1836_v27 = vmax.f32 %v1343_v14, 0.0 }
 0x1b1   : > { %v1837_v24 = vmax.f32 %v1345_v17, 0.0 }
 0x1b2   : > { %v1838_v28 = vmax.f32 %v1347_v21, 0.0 }
 0x1b3   : > { %v2043_v34 = vpack.c.bf16 %v1837_v24, %v1835_v22 }
 0x1b4   : > { %v1350_v2 = vpop.f32.mrb[100].mxu0  ;;  %v2044_v35 = vpack.c.bf16 %v1838_v28, %v1836_v27 }
 0x1b5   : > { %v1351_v38 = vadd.f32 %v1350_v2, %v7974_v7  ;;  %v1352_v39 = vpop.f32.mrb[101].mxu0 }
 0x1b6   : > { %v1353_v40 = vadd.f32 %v1352_v39, %v7976_v8  ;;  %v1354_v41 = vpop.f32.mrb[102].mxu0  ;;  %2482 = vmatprep.mubr.bf16.mxu1 %v2044_v35 }
 0x1b7   : > { %v1355_v42 = vadd.f32 %v1354_v41, %v7974_v7  ;;  %v1356_v45 = vpop.f32.mrb[103].mxu0  ;;  %2483 = vmatmul.mubr.bf16.gmra.mrb[160].mxu1 %v2043_v34  ;;  %v1839_v50 = vmax.f32 %v1351_v38, 0.0 }
 0x1b8   : > { %v1357_v46 = vadd.f32 %v1356_v45, %v7976_v8  ;;  %v1840_v54 = vmax.f32 %v1353_v40, 0.0  ;;  %v8314_v45 = vld [vmem:[%s9176_s4] ss:$0 sm:$0xff] }
 0x1b9   : > { %v1841_v51 = vmax.f32 %v1355_v42, 0.0 }
 0x1ba   : > { %v1842_v56 = vmax.f32 %v1357_v46, 0.0 }
 0x1bb   : > { %v2045_v63 = vpack.c.bf16 %v1841_v51, %v1839_v50 }
 0x1bc   : > { %v1360_v3 = vpop.f32.mrb[104].mxu0  ;;  %v2046_v6 = vpack.c.bf16 %v1842_v56, %v1840_v54 }
 0x1bd   : > { %v1361_v9 = vadd.f32 %v1360_v3, %v7974_v7  ;;  %v1362_v12 = vpop.f32.mrb[105].mxu0 }
 0x1be   : > { %v1363_v13 = vadd.f32 %v1362_v12, %v7976_v8  ;;  %v1364_v14 = vpop.f32.mrb[106].mxu0  ;;  %2490 = vmatprep.mubr.bf16.mxu1 %v2046_v6 }
 0x1bf   : > { %v1365_v16 = vadd.f32 %v1364_v14, %v7974_v7  ;;  %v1366_v17 = vpop.f32.mrb[107].mxu0  ;;  %2491 = vmatmul.mubr.bf16.gmra.mrb[164].mxu1 %v2045_v63  ;;  %v1843_v21 = vmax.f32 %v1361_v9, 0.0 }
 0x1c0   : > { %v1367_v18 = vadd.f32 %v1366_v17, %v7976_v8  ;;  %v1844_v24 = vmax.f32 %v1363_v13, 0.0 }
 0x1c1   : > { %v1845_v22 = vmax.f32 %v1365_v16, 0.0 }
 0x1c2   : > { %v1846_v27 = vmax.f32 %v1367_v18, 0.0 }
 0x1c3   : > { %v2047_v28 = vpack.c.bf16 %v1845_v22, %v1843_v21 }
 0x1c4   : > { %v1370_v33 = vpop.f32.mrb[108].mxu0  ;;  %v2048_v34 = vpack.c.bf16 %v1846_v27, %v1844_v24 }
 0x1c5   : > { %v1371_v2 = vadd.f32 %v1370_v33, %v7974_v7  ;;  %v1372_v35 = vpop.f32.mrb[109].mxu0 }
 0x1c6   : > { %v1373_v38 = vadd.f32 %v1372_v35, %v7976_v8  ;;  %v1374_v39 = vpop.f32.mrb[110].mxu0  ;;  %2498 = vmatprep.mubr.bf16.mxu1 %v2048_v34 }
 0x1c7   : > { %v1375_v40 = vadd.f32 %v1374_v39, %v7974_v7  ;;  %v1376_v41 = vpop.f32.mrb[111].mxu0  ;;  %2499 = vmatmul.mubr.bf16.gmra.mrb[168].mxu1 %v2047_v28  ;;  %v1847_v46 = vmax.f32 %v1371_v2, 0.0 }
 0x1c8   : > { %v1377_v42 = vadd.f32 %v1376_v41, %v7976_v8  ;;  %v1848_v51 = vmax.f32 %v1373_v38, 0.0 }
 0x1c9   : > { %v1849_v50 = vmax.f32 %v1375_v40, 0.0 }
 0x1ca   : > { %v1850_v54 = vmax.f32 %v1377_v42, 0.0  ;;  %v2292_v56 = vpop.f32.mrb[64].mxu1 }
 0x1cb   : > { %v2293_v63 = vadd.f32 %v8314_v45, %v2292_v56  ;;  %v2294_v3 = vpop.f32.mrb[65].mxu1  ;;  %v2049_v6 = vpack.c.bf16 %v1849_v50, %v1847_v46 }
 0x1cc   : > { %v1380_v9 = vpop.f32.mrb[112].mxu0  ;;  %v2295_v12 = vpop.f32.mrb[66].mxu1  ;;  %v2050_v13 = vpack.c.bf16 %v1850_v54, %v1848_v51 }
 0x1cd   : > { %v1381_v14 = vadd.f32 %v1380_v9, %v7974_v7  ;;  %v2296_v16 = vadd.f32 %v8314_v45, %v2295_v12  ;;  %v1382_v17 = vpop.f32.mrb[113].mxu0  ;;  %v2297_v18 = vpop.f32.mrb[67].mxu1  ;;  %v2803_v24 = vmax.f32 %v2293_v63, 0.0 }
 0x1ce   : > { %v1383_v21 = vadd.f32 %v1382_v17, %v7976_v8  ;;  %v1384_v22 = vpop.f32.mrb[114].mxu0  ;;  %2506 = vmatprep.mubr.bf16.mxu1 %v2050_v13 }
 0x1cf   : > { %v2804_v27 = vmax.f32 %v2296_v16, 0.0  ;;  %v1385_v28 = vadd.f32 %v1384_v22, %v7974_v7  ;;  %v1386_v33 = vpop.f32.mrb[115].mxu0  ;;  %2507 = vmatmul.mubr.bf16.gmra.mrb[172].mxu1 %v2049_v6  ;;  %v1851_v2 = vmax.f32 %v1381_v14, 0.0 }
 0x1d0   : > { %v1387_v34 = vadd.f32 %v1386_v33, %v7976_v8  ;;  %v1852_v39 = vmax.f32 %v1383_v21, 0.0 }
 0x1d1   : > { %v1853_v35 = vmax.f32 %v1385_v28, 0.0  ;;  %v2931_v38 = vpack.c.bf16 %v2804_v27, %v2803_v24 }
 0x1d2   : > { %v1854_v40 = vmax.f32 %v1387_v34, 0.0  ;;  %v2300_v41 = vpop.f32.mrb[68].mxu1 }
 0x1d3   : > { %v2301_v42 = vadd.f32 %v8314_v45, %v2300_v41  ;;  %v2302_v46 = vpop.f32.mrb[69].mxu1  ;;  %7003 = vmatprep.mubr.bf16.mxu0 %v2931_v38  ;;  %v2051_v50 = vpack.c.bf16 %v1853_v35, %v1851_v2 }
 0x1d4   : > { %v1390_v51 = vpop.f32.mrb[116].mxu0  ;;  %v2303_v54 = vpop.f32.mrb[70].mxu1  ;;  %v2052_v56 = vpack.c.bf16 %v1854_v40, %v1852_v39 }
 0x1d5   : > { %v1391_v63 = vadd.f32 %v1390_v51, %v7974_v7  ;;  %v2304_v3 = vadd.f32 %v8314_v45, %v2303_v54  ;;  %v1392_v6 = vpop.f32.mrb[117].mxu0  ;;  %v2305_v9 = vpop.f32.mrb[71].mxu1  ;;  %v2805_v14 = vmax.f32 %v2301_v42, 0.0 }
 0x1d6   : > { %v1393_v12 = vadd.f32 %v1392_v6, %v7976_v8  ;;  %v1394_v13 = vpop.f32.mrb[118].mxu0  ;;  %2514 = vmatprep.mubr.bf16.mxu1 %v2052_v56 }
 0x1d7   : > { %v2806_v16 = vmax.f32 %v2304_v3, 0.0  ;;  %v1395_v17 = vadd.f32 %v1394_v13, %v7974_v7  ;;  %v1396_v18 = vpop.f32.mrb[119].mxu0  ;;  %2515 = vmatmul.mubr.bf16.gmra.mrb[176].mxu1 %v2051_v50  ;;  %v1855_v22 = vmax.f32 %v1391_v63, 0.0 }
 0x1d8   : > { %v1397_v21 = vadd.f32 %v1396_v18, %v7976_v8  ;;  %v1856_v28 = vmax.f32 %v1393_v12, 0.0 }
 0x1d9   : > { %v2932_v24 = vpack.c.bf16 %v2806_v16, %v2805_v14  ;;  %v1857_v27 = vmax.f32 %v1395_v17, 0.0 }
 0x1da   : > { %v1858_v33 = vmax.f32 %v1397_v21, 0.0  ;;  %v2308_v34 = vpop.f32.mrb[72].mxu1 }
 0x1db   : > { %v2309_v2 = vadd.f32 %v8314_v45, %v2308_v34  ;;  %v2310_v35 = vpop.f32.mrb[73].mxu1  ;;  %7004 = vmatmul.mubr.bf16.vlgmr.msra.gmra.mrb[192].mxu0 %v2932_v24  ;;  %v2053_v38 = vpack.c.bf16 %v1857_v27, %v1855_v22 }
 0x1dc   : > { %v1400_v39 = vpop.f32.mrb[120].mxu0  ;;  %v2311_v40 = vpop.f32.mrb[74].mxu1  ;;  %v2054_v41 = vpack.c.bf16 %v1858_v33, %v1856_v28 }
 0x1dd   : > { %v1401_v42 = vadd.f32 %v1400_v39, %v7974_v7  ;;  %v2312_v46 = vadd.f32 %v8314_v45, %v2311_v40  ;;  %v1402_v50 = vpop.f32.mrb[121].mxu0  ;;  %v2313_v51 = vpop.f32.mrb[75].mxu1  ;;  %v2807_v63 = vmax.f32 %v2309_v2, 0.0 }
 0x1de   : > { %v1403_v54 = vadd.f32 %v1402_v50, %v7976_v8  ;;  %v1404_v56 = vpop.f32.mrb[122].mxu0  ;;  %2522 = vmatprep.mubr.bf16.mxu1 %v2054_v41 }
 0x1df   : > { %v2808_v3 = vmax.f32 %v2312_v46, 0.0  ;;  %v1405_v6 = vadd.f32 %v1404_v56, %v7974_v7  ;;  %v1406_v9 = vpop.f32.mrb[123].mxu0  ;;  %2523 = vmatmul.mubr.bf16.gmra.mrb[180].mxu1 %v2053_v38  ;;  %v1859_v13 = vmax.f32 %v1401_v42, 0.0 }
 0x1e0   : > { %v1407_v12 = vadd.f32 %v1406_v9, %v7976_v8  ;;  %v1860_v17 = vmax.f32 %v1403_v54, 0.0 }
 0x1e1   : > { %v1861_v14 = vmax.f32 %v1405_v6, 0.0  ;;  %v2933_v16 = vpack.c.bf16 %v2808_v3, %v2807_v63 }
 0x1e2   : > { %v1862_v18 = vmax.f32 %v1407_v12, 0.0  ;;  %v2316_v21 = vpop.f32.mrb[76].mxu1 }
 0x1e3   : > { %v2317_v22 = vadd.f32 %v8314_v45, %v2316_v21  ;;  %v2318_v24 = vpop.f32.mrb[77].mxu1  ;;  %7007 = vmatprep.mubr.bf16.mxu0 %v2933_v16  ;;  %v2055_v27 = vpack.c.bf16 %v1861_v14, %v1859_v13 }
 0x1e4   : > { %v1410_v28 = vpop.f32.mrb[124].mxu0  ;;  %v2319_v33 = vpop.f32.mrb[78].mxu1  ;;  %v2056_v34 = vpack.c.bf16 %v1862_v18, %v1860_v17 }
 0x1e5   : > { %v1411_v2 = vadd.f32 %v1410_v28, %v7974_v7  ;;  %v2320_v35 = vadd.f32 %v8314_v45, %v2319_v33  ;;  %v1412_v38 = vpop.f32.mrb[125].mxu0  ;;  %v2321_v39 = vpop.f32.mrb[79].mxu1  ;;  %v2809_v42 = vmax.f32 %v2317_v22, 0.0 }
 0x1e6   : > { %v1413_v40 = vadd.f32 %v1412_v38, %v7976_v8  ;;  %v1414_v41 = vpop.f32.mrb[126].mxu0  ;;  %2530 = vmatprep.mubr.bf16.mxu1 %v2056_v34 }
 0x1e7   : > { %v2810_v46 = vmax.f32 %v2320_v35, 0.0  ;;  %v1415_v50 = vadd.f32 %v1414_v41, %v7974_v7  ;;  %v1416_v51 = vpop.f32.mrb[127].mxu0  ;;  %2531 = vmatmul.mubr.bf16.gmra.mrb[184].mxu1 %v2055_v27  ;;  %v1863_v56 = vmax.f32 %v1411_v2, 0.0  ;;  %v7562_v41 = vld [vmem:[%s9179_s7 + $0x18] sm:$0xff]  }
 0x1e8   : > { %v1417_v54 = vadd.f32 %v1416_v51, %v7976_v8  ;;  %v1864_v6 = vmax.f32 %v1413_v40, 0.0  ;;  %7137 = vmatprep.subr.bf16.mxu1 %v7562_v41 }
 0x1e9   : > { %v1865_v63 = vmax.f32 %v1415_v50, 0.0  ;;  %v2934_v3 = vpack.c.bf16 %v2810_v46, %v2809_v42  ;;  %7138 = vmatpush3.bf16.msra.mxu1 %v7562_v41 }
 0x1ea   : > { %v1866_v9 = vmax.f32 %v1417_v54, 0.0  ;;  %v2324_v12 = vpop.f32.mrb[80].mxu1 }
 0x1eb   : > { %v2325_v13 = vadd.f32 %v8314_v45, %v2324_v12  ;;  %v2326_v14 = vpop.f32.mrb[81].mxu1  ;;  %7008 = vmatmul.mubr.bf16.gmra.mrb[196].mxu0 %v2934_v3  ;;  %v2057_v16 = vpack.c.bf16 %v1865_v63, %v1863_v56 }
 0x1ec   : > { %v1420_v17 = vpop.f32.mrb[128].mxu0  ;;  %v2327_v18 = vpop.f32.mrb[82].mxu1  ;;  %v2058_v21 = vpack.c.bf16 %v1866_v9, %v1864_v6 }
 0x1ed   : > { %v1421_v22 = vadd.f32 %v1420_v17, %v7974_v7  ;;  %v2328_v24 = vadd.f32 %v8314_v45, %v2327_v18  ;;  %v1422_v27 = vpop.f32.mrb[129].mxu0  ;;  %v2329_v28 = vpop.f32.mrb[83].mxu1  ;;  %v2811_v2 = vmax.f32 %v2325_v13, 0.0 }
 0x1ee   : > { %v1423_v33 = vadd.f32 %v1422_v27, %v7976_v8  ;;  %v1424_v34 = vpop.f32.mrb[130].mxu0  ;;  %2538 = vmatprep.mubr.bf16.mxu1 %v2058_v21 }
 0x1ef   : > { %v2812_v35 = vmax.f32 %v2328_v24, 0.0  ;;  %v1425_v38 = vadd.f32 %v1424_v34, %v7974_v7  ;;  %v1426_v39 = vpop.f32.mrb[131].mxu0  ;;  %2539 = vmatmul.mubr.bf16.gmra.mrb[188].mxu1 %v2057_v16  ;;  %v1867_v42 = vmax.f32 %v1421_v22, 0.0 }
 0x1f0   : > { %v1427_v40 = vadd.f32 %v1426_v39, %v7976_v8  ;;  %v1868_v51 = vmax.f32 %v1423_v33, 0.0 }
 0x1f1   : > { %v1869_v46 = vmax.f32 %v1425_v38, 0.0  ;;  %v2935_v50 = vpack.c.bf16 %v2812_v35, %v2811_v2 }
 0x1f2   : > { %v1870_v54 = vmax.f32 %v1427_v40, 0.0  ;;  %v2332_v56 = vpop.f32.mrb[84].mxu1 }
 0x1f3   : > { %v2333_v63 = vadd.f32 %v8314_v45, %v2332_v56  ;;  %v2334_v3 = vpop.f32.mrb[85].mxu1  ;;  %7011 = vmatprep.mubr.bf16.mxu0 %v2935_v50  ;;  %v2059_v6 = vpack.c.bf16 %v1869_v46, %v1867_v42 }
 0x1f4   : > { %v1430_v9 = vpop.f32.mrb[132].mxu0  ;;  %v2335_v12 = vpop.f32.mrb[86].mxu1  ;;  %v2060_v13 = vpack.c.bf16 %v1870_v54, %v1868_v51 }
 0x1f5   : > { %v1431_v14 = vadd.f32 %v1430_v9, %v7974_v7  ;;  %v2336_v16 = vadd.f32 %v8314_v45, %v2335_v12  ;;  %v1432_v17 = vpop.f32.mrb[133].mxu0  ;;  %v2337_v18 = vpop.f32.mrb[87].mxu1  ;;  %v2813_v24 = vmax.f32 %v2333_v63, 0.0 }
 0x1f6   : > { %v1433_v21 = vadd.f32 %v1432_v17, %v7976_v8  ;;  %v1434_v22 = vpop.f32.mrb[134].mxu0  ;;  %2546 = vmatprep.mubr.bf16.mxu1 %v2060_v13 }
 0x1f7   : > { %v2814_v27 = vmax.f32 %v2336_v16, 0.0  ;;  %v1435_v28 = vadd.f32 %v1434_v22, %v7974_v7  ;;  %v1436_v33 = vpop.f32.mrb[135].mxu0  ;;  %2547 = vmatmul.mubr.bf16.gmra.mrb[192].mxu1 %v2059_v6  ;;  %v1871_v2 = vmax.f32 %v1431_v14, 0.0 }
 0x1f8   : > { %v1437_v34 = vadd.f32 %v1436_v33, %v7976_v8  ;;  %v1872_v39 = vmax.f32 %v1433_v21, 0.0 }
 0x1f9   : > { %v1873_v35 = vmax.f32 %v1435_v28, 0.0  ;;  %v2936_v38 = vpack.c.bf16 %v2814_v27, %v2813_v24 }
 0x1fa   : > { %v1874_v40 = vmax.f32 %v1437_v34, 0.0  ;;  %v2340_v41 = vpop.f32.mrb[88].mxu1 }
 0x1fb   : > { %v2341_v42 = vadd.f32 %v8314_v45, %v2340_v41  ;;  %v2342_v46 = vpop.f32.mrb[89].mxu1  ;;  %7012 = vmatmul.mubr.bf16.gmra.mrb[200].mxu0 %v2936_v38  ;;  %v2061_v50 = vpack.c.bf16 %v1873_v35, %v1871_v2 }
 0x1fc   : > { %v1440_v51 = vpop.f32.mrb[136].mxu0  ;;  %v2343_v54 = vpop.f32.mrb[90].mxu1  ;;  %v2062_v56 = vpack.c.bf16 %v1874_v40, %v1872_v39 }
 0x1fd   : > { %v1441_v63 = vadd.f32 %v1440_v51, %v7974_v7  ;;  %v2344_v3 = vadd.f32 %v8314_v45, %v2343_v54  ;;  %v1442_v6 = vpop.f32.mrb[137].mxu0  ;;  %v2345_v9 = vpop.f32.mrb[91].mxu1  ;;  %v2815_v14 = vmax.f32 %v2341_v42, 0.0 }
 0x1fe   : > { %v1443_v12 = vadd.f32 %v1442_v6, %v7976_v8  ;;  %v1444_v13 = vpop.f32.mrb[138].mxu0  ;;  %2554 = vmatprep.mubr.bf16.mxu1 %v2062_v56 }
 0x1ff   : > { %v2816_v16 = vmax.f32 %v2344_v3, 0.0  ;;  %v1445_v17 = vadd.f32 %v1444_v13, %v7974_v7  ;;  %v1446_v18 = vpop.f32.mrb[139].mxu0  ;;  %2555 = vmatmul.mubr.bf16.gmra.mrb[196].mxu1 %v2061_v50  ;;  %v1875_v22 = vmax.f32 %v1441_v63, 0.0 }
 0x200   : > { %v1447_v21 = vadd.f32 %v1446_v18, %v7976_v8  ;;  %v1876_v28 = vmax.f32 %v1443_v12, 0.0 }
 0x201   : > { %v1877_v24 = vmax.f32 %v1445_v17, 0.0  ;;  %v2937_v27 = vpack.c.bf16 %v2816_v16, %v2815_v14 }
 0x202   : > { %v1878_v33 = vmax.f32 %v1447_v21, 0.0  ;;  %v2348_v34 = vpop.f32.mrb[92].mxu1 }
 0x203   : > { %v2349_v2 = vadd.f32 %v8314_v45, %v2348_v34  ;;  %v2350_v35 = vpop.f32.mrb[93].mxu1  ;;  %7015 = vmatprep.mubr.bf16.mxu0 %v2937_v27  ;;  %v2063_v38 = vpack.c.bf16 %v1877_v24, %v1875_v22 }
 0x204   : > { %v1450_v39 = vpop.f32.mrb[140].mxu0  ;;  %v2351_v40 = vpop.f32.mrb[94].mxu1  ;;  %v2064_v41 = vpack.c.bf16 %v1878_v33, %v1876_v28 }
 0x205   : > { %v1451_v42 = vadd.f32 %v1450_v39, %v7974_v7  ;;  %v2352_v46 = vadd.f32 %v8314_v45, %v2351_v40  ;;  %v1452_v50 = vpop.f32.mrb[141].mxu0  ;;  %v2353_v51 = vpop.f32.mrb[95].mxu1  ;;  %v2817_v63 = vmax.f32 %v2349_v2, 0.0 }
 0x206   : > { %v1453_v54 = vadd.f32 %v1452_v50, %v7976_v8  ;;  %v1454_v56 = vpop.f32.mrb[142].mxu0  ;;  %2562 = vmatprep.mubr.bf16.mxu1 %v2064_v41 }
 0x207   : > { %v2818_v3 = vmax.f32 %v2352_v46, 0.0  ;;  %v1455_v6 = vadd.f32 %v1454_v56, %v7974_v7  ;;  %v1456_v9 = vpop.f32.mrb[143].mxu0  ;;  %2563 = vmatmul.mubr.bf16.gmra.mrb[200].mxu1 %v2063_v38  ;;  %v1879_v13 = vmax.f32 %v1451_v42, 0.0 }
 0x208   : > { %v1457_v12 = vadd.f32 %v1456_v9, %v7976_v8  ;;  %v1880_v17 = vmax.f32 %v1453_v54, 0.0 }
 0x209   : > { %v1881_v14 = vmax.f32 %v1455_v6, 0.0  ;;  %v2938_v16 = vpack.c.bf16 %v2818_v3, %v2817_v63 }
 0x20a   : > { %v1882_v18 = vmax.f32 %v1457_v12, 0.0  ;;  %v2356_v21 = vpop.f32.mrb[96].mxu1 }
 0x20b   : > { %v2357_v22 = vadd.f32 %v8314_v45, %v2356_v21  ;;  %v2358_v24 = vpop.f32.mrb[97].mxu1  ;;  %7016 = vmatmul.mubr.bf16.gmra.mrb[204].mxu0 %v2938_v16  ;;  %v2065_v27 = vpack.c.bf16 %v1881_v14, %v1879_v13 }
 0x20c   : > { %v1460_v28 = vpop.f32.mrb[144].mxu0  ;;  %v2359_v33 = vpop.f32.mrb[98].mxu1  ;;  %v2066_v34 = vpack.c.bf16 %v1882_v18, %v1880_v17 }
 0x20d   : > { %v1461_v2 = vadd.f32 %v1460_v28, %v7974_v7  ;;  %v2360_v35 = vadd.f32 %v8314_v45, %v2359_v33  ;;  %v1462_v38 = vpop.f32.mrb[145].mxu0  ;;  %v2361_v39 = vpop.f32.mrb[99].mxu1  ;;  %v2819_v42 = vmax.f32 %v2357_v22, 0.0 }
 0x20e   : > { %v1463_v40 = vadd.f32 %v1462_v38, %v7976_v8  ;;  %v1464_v41 = vpop.f32.mrb[146].mxu0  ;;  %2570 = vmatprep.mubr.bf16.mxu1 %v2066_v34 }
 0x20f   : > { %v2820_v46 = vmax.f32 %v2360_v35, 0.0  ;;  %v1465_v50 = vadd.f32 %v1464_v41, %v7974_v7  ;;  %v1466_v51 = vpop.f32.mrb[147].mxu0  ;;  %2571 = vmatmul.mubr.bf16.gmra.mrb[204].mxu1 %v2065_v27  ;;  %v1883_v56 = vmax.f32 %v1461_v2, 0.0 }
 0x210   : > { %v1467_v54 = vadd.f32 %v1466_v51, %v7976_v8  ;;  %v1884_v6 = vmax.f32 %v1463_v40, 0.0 }
 0x211   : > { %v1885_v63 = vmax.f32 %v1465_v50, 0.0  ;;  %v2939_v3 = vpack.c.bf16 %v2820_v46, %v2819_v42 }
 0x212   : > { %v1886_v9 = vmax.f32 %v1467_v54, 0.0  ;;  %v2364_v12 = vpop.f32.mrb[100].mxu1 }
 0x213   : > { %v2365_v13 = vadd.f32 %v8314_v45, %v2364_v12  ;;  %v2366_v14 = vpop.f32.mrb[101].mxu1  ;;  %7019 = vmatprep.mubr.bf16.mxu0 %v2939_v3  ;;  %v2067_v16 = vpack.c.bf16 %v1885_v63, %v1883_v56 }
 0x214   : > { %v1470_v17 = vpop.f32.mrb[148].mxu0  ;;  %v2367_v18 = vpop.f32.mrb[102].mxu1  ;;  %v2068_v21 = vpack.c.bf16 %v1886_v9, %v1884_v6 }
 0x215   : > { %v1471_v22 = vadd.f32 %v1470_v17, %v7974_v7  ;;  %v2368_v24 = vadd.f32 %v8314_v45, %v2367_v18  ;;  %v1472_v27 = vpop.f32.mrb[149].mxu0  ;;  %v2369_v28 = vpop.f32.mrb[103].mxu1  ;;  %v2821_v2 = vmax.f32 %v2365_v13, 0.0 }
 0x216   : > { %v1473_v33 = vadd.f32 %v1472_v27, %v7976_v8  ;;  %v1474_v34 = vpop.f32.mrb[150].mxu0  ;;  %2578 = vmatprep.mubr.bf16.mxu1 %v2068_v21 }
 0x217   : > { %v2822_v35 = vmax.f32 %v2368_v24, 0.0  ;;  %v1475_v38 = vadd.f32 %v1474_v34, %v7974_v7  ;;  %v1476_v39 = vpop.f32.mrb[151].mxu0  ;;  %2579 = vmatmul.mubr.bf16.gmra.mrb[208].mxu1 %v2067_v16  ;;  %v1887_v41 = vmax.f32 %v1471_v22, 0.0 }
 0x218   : > { %v1477_v40 = vadd.f32 %v1476_v39, %v7976_v8  ;;  %v1888_v50 = vmax.f32 %v1473_v33, 0.0 }
 0x219   : > { %v1889_v42 = vmax.f32 %v1475_v38, 0.0  ;;  %v2940_v46 = vpack.c.bf16 %v2822_v35, %v2821_v2 }
 0x21a   : > { %v1890_v51 = vmax.f32 %v1477_v40, 0.0  ;;  %v2372_v54 = vpop.f32.mrb[104].mxu1 }
 0x21b   : > { %v2373_v56 = vadd.f32 %v8314_v45, %v2372_v54  ;;  %v2374_v63 = vpop.f32.mrb[105].mxu1  ;;  %7020 = vmatmul.mubr.bf16.gmra.mrb[208].mxu0 %v2940_v46  ;;  %v2069_v3 = vpack.c.bf16 %v1889_v42, %v1887_v41 }
 0x21c   : > { %v1480_v6 = vpop.f32.mrb[152].mxu0  ;;  %v2375_v9 = vpop.f32.mrb[106].mxu1  ;;  %v2070_v12 = vpack.c.bf16 %v1890_v51, %v1888_v50 }
 0x21d   : > { %v1481_v13 = vadd.f32 %v1480_v6, %v7974_v7  ;;  %v2376_v14 = vadd.f32 %v8314_v45, %v2375_v9  ;;  %v1482_v16 = vpop.f32.mrb[153].mxu0  ;;  %v2377_v17 = vpop.f32.mrb[107].mxu1  ;;  %v2823_v22 = vmax.f32 %v2373_v56, 0.0 }
 0x21e   : > { %v1483_v18 = vadd.f32 %v1482_v16, %v7976_v8  ;;  %v1484_v21 = vpop.f32.mrb[154].mxu0  ;;  %2586 = vmatprep.mubr.bf16.mxu1 %v2070_v12 }
 0x21f   : > { %v2824_v24 = vmax.f32 %v2376_v14, 0.0  ;;  %v1485_v27 = vadd.f32 %v1484_v21, %v7974_v7  ;;  %v1486_v28 = vpop.f32.mrb[155].mxu0  ;;  %2587 = vmatmul.mubr.bf16.gmra.mrb[212].mxu1 %v2069_v3  ;;  %v1891_v34 = vmax.f32 %v1481_v13, 0.0 }
 0x220   : > { %v1487_v33 = vadd.f32 %v1486_v28, %v7976_v8  ;;  %v1892_v38 = vmax.f32 %v1483_v18, 0.0 }
 0x221   : > { %v1893_v2 = vmax.f32 %v1485_v27, 0.0  ;;  %v2941_v35 = vpack.c.bf16 %v2824_v24, %v2823_v22 }
 0x222   : > { %v1894_v39 = vmax.f32 %v1487_v33, 0.0  ;;  %v2380_v40 = vpop.f32.mrb[108].mxu1 }
 0x223   : > { %v2381_v41 = vadd.f32 %v8314_v45, %v2380_v40  ;;  %v2382_v42 = vpop.f32.mrb[109].mxu1  ;;  %7023 = vmatprep.mubr.bf16.mxu0 %v2941_v35  ;;  %v2071_v46 = vpack.c.bf16 %v1893_v2, %v1891_v34 }
 0x224   : > { %v1490_v50 = vpop.f32.mrb[156].mxu0  ;;  %v2383_v51 = vpop.f32.mrb[110].mxu1  ;;  %v2072_v54 = vpack.c.bf16 %v1894_v39, %v1892_v38 }
 0x225   : > { %v1491_v56 = vadd.f32 %v1490_v50, %v7974_v7  ;;  %v2384_v63 = vadd.f32 %v8314_v45, %v2383_v51  ;;  %v1492_v3 = vpop.f32.mrb[157].mxu0  ;;  %v2385_v6 = vpop.f32.mrb[111].mxu1  ;;  %v2825_v13 = vmax.f32 %v2381_v41, 0.0 }
 0x226   : > { %v1493_v9 = vadd.f32 %v1492_v3, %v7976_v8  ;;  %v1494_v12 = vpop.f32.mrb[158].mxu0  ;;  %2594 = vmatprep.mubr.bf16.mxu1 %v2072_v54 }
 0x227   : > { %v2826_v14 = vmax.f32 %v2384_v63, 0.0  ;;  %v1495_v16 = vadd.f32 %v1494_v12, %v7974_v7  ;;  %v1496_v17 = vpop.f32.mrb[159].mxu0  ;;  %2595 = vmatmul.mubr.bf16.gmra.mrb[216].mxu1 %v2071_v46  ;;  %v1895_v21 = vmax.f32 %v1491_v56, 0.0 }
 0x228   : > { %v1497_v18 = vadd.f32 %v1496_v17, %v7976_v8  ;;  %v1896_v27 = vmax.f32 %v1493_v9, 0.0 }
 0x229   : > { %v1897_v22 = vmax.f32 %v1495_v16, 0.0  ;;  %v2942_v24 = vpack.c.bf16 %v2826_v14, %v2825_v13 }
 0x22a   : > { %v1898_v28 = vmax.f32 %v1497_v18, 0.0  ;;  %v2388_v33 = vpop.f32.mrb[112].mxu1 }
 0x22b   : > { %v2389_v34 = vadd.f32 %v8314_v45, %v2388_v33  ;;  %v2390_v2 = vpop.f32.mrb[113].mxu1  ;;  %7024 = vmatmul.mubr.bf16.gmra.mrb[212].mxu0 %v2942_v24  ;;  %v2073_v35 = vpack.c.bf16 %v1897_v22, %v1895_v21 }
 0x22c   : > { %v1500_v38 = vpop.f32.mrb[160].mxu0  ;;  %v2391_v39 = vpop.f32.mrb[114].mxu1  ;;  %v2074_v40 = vpack.c.bf16 %v1898_v28, %v1896_v27 }
 0x22d   : > { %v1501_v41 = vadd.f32 %v1500_v38, %v7974_v7  ;;  %v2392_v42 = vadd.f32 %v8314_v45, %v2391_v39  ;;  %v1502_v46 = vpop.f32.mrb[161].mxu0  ;;  %v2393_v50 = vpop.f32.mrb[115].mxu1  ;;  %v2827_v56 = vmax.f32 %v2389_v34, 0.0  ;;  %v7563_v39 = vld [vmem:[%s9179_s7 + $0x20] sm:$0xff]  }
 0x22e   : > { %v1503_v51 = vadd.f32 %v1502_v46, %v7976_v8  ;;  %v1504_v54 = vpop.f32.mrb[162].mxu0  ;;  %2602 = vmatprep.mubr.bf16.mxu1 %v2074_v40  ;;  %7139 = vmatprep.subr.bf16.mxu1 %v7563_v39 }
 0x22f   : > { %v2828_v63 = vmax.f32 %v2392_v42, 0.0  ;;  %v1505_v3 = vadd.f32 %v1504_v54, %v7974_v7  ;;  %v1506_v6 = vpop.f32.mrb[163].mxu0  ;;  %2603 = vmatmul.mubr.bf16.gmra.mrb[220].mxu1 %v2073_v35  ;;  %v1899_v12 = vmax.f32 %v1501_v41, 0.0 }
 0x230   : > { %v1507_v9 = vadd.f32 %v1506_v6, %v7976_v8  ;;  %v1900_v16 = vmax.f32 %v1503_v51, 0.0  ;;  %7140 = vmatpush3.bf16.msra.mxu1 %v7563_v39 }
 0x231   : > { %v1901_v13 = vmax.f32 %v1505_v3, 0.0  ;;  %v2943_v14 = vpack.c.bf16 %v2828_v63, %v2827_v56 }
 0x232   : > { %v1902_v17 = vmax.f32 %v1507_v9, 0.0  ;;  %v2396_v18 = vpop.f32.mrb[116].mxu1 }
 0x233   : > { %v2397_v21 = vadd.f32 %v8314_v45, %v2396_v18  ;;  %v2398_v22 = vpop.f32.mrb[117].mxu1  ;;  %7027 = vmatprep.mubr.bf16.mxu0 %v2943_v14  ;;  %v2075_v24 = vpack.c.bf16 %v1901_v13, %v1899_v12 }
 0x234   : > { %v1510_v27 = vpop.f32.mrb[164].mxu0  ;;  %v2399_v28 = vpop.f32.mrb[118].mxu1  ;;  %v2076_v33 = vpack.c.bf16 %v1902_v17, %v1900_v16 }
 0x235   : > { %v1511_v34 = vadd.f32 %v1510_v27, %v7974_v7  ;;  %v2400_v2 = vadd.f32 %v8314_v45, %v2399_v28  ;;  %v1512_v35 = vpop.f32.mrb[165].mxu0  ;;  %v2401_v38 = vpop.f32.mrb[119].mxu1  ;;  %v2829_v42 = vmax.f32 %v2397_v21, 0.0 }
 0x236   : > { %v1513_v40 = vadd.f32 %v1512_v35, %v7976_v8  ;;  %v1514_v41 = vpop.f32.mrb[166].mxu0  ;;  %2610 = vmatprep.mubr.bf16.mxu1 %v2076_v33 }
 0x237   : > { %v2830_v46 = vmax.f32 %v2400_v2, 0.0  ;;  %v1515_v50 = vadd.f32 %v1514_v41, %v7974_v7  ;;  %v1516_v51 = vpop.f32.mrb[167].mxu0  ;;  %2611 = vmatmul.mubr.bf16.gmra.mrb[224].mxu1 %v2075_v24  ;;  %v1903_v56 = vmax.f32 %v1511_v34, 0.0 }
 0x238   : > { %v1517_v54 = vadd.f32 %v1516_v51, %v7976_v8  ;;  %v1904_v6 = vmax.f32 %v1513_v40, 0.0 }
 0x239   : > { %v1905_v63 = vmax.f32 %v1515_v50, 0.0  ;;  %v2944_v3 = vpack.c.bf16 %v2830_v46, %v2829_v42 }
 0x23a   : > { %v1906_v9 = vmax.f32 %v1517_v54, 0.0  ;;  %v2404_v12 = vpop.f32.mrb[120].mxu1 }
 0x23b   : > { %v2405_v13 = vadd.f32 %v8314_v45, %v2404_v12  ;;  %v2406_v14 = vpop.f32.mrb[121].mxu1  ;;  %7028 = vmatmul.mubr.bf16.gmra.mrb[216].mxu0 %v2944_v3  ;;  %v2077_v16 = vpack.c.bf16 %v1905_v63, %v1903_v56 }
 0x23c   : > { %v1520_v17 = vpop.f32.mrb[168].mxu0  ;;  %v2407_v18 = vpop.f32.mrb[122].mxu1  ;;  %v2078_v21 = vpack.c.bf16 %v1906_v9, %v1904_v6 }
 0x23d   : > { %v1521_v22 = vadd.f32 %v1520_v17, %v7974_v7  ;;  %v2408_v24 = vadd.f32 %v8314_v45, %v2407_v18  ;;  %v1522_v27 = vpop.f32.mrb[169].mxu0  ;;  %v2409_v28 = vpop.f32.mrb[123].mxu1  ;;  %v2831_v2 = vmax.f32 %v2405_v13, 0.0 }
 0x23e   : > { %v1523_v33 = vadd.f32 %v1522_v27, %v7976_v8  ;;  %v1524_v34 = vpop.f32.mrb[170].mxu0  ;;  %2618 = vmatprep.mubr.bf16.mxu1 %v2078_v21 }
 0x23f   : > { %v2832_v35 = vmax.f32 %v2408_v24, 0.0  ;;  %v1525_v38 = vadd.f32 %v1524_v34, %v7974_v7  ;;  %v1526_v39 = vpop.f32.mrb[171].mxu0  ;;  %2619 = vmatmul.mubr.bf16.gmra.mrb[228].mxu1 %v2077_v16  ;;  %v1907_v41 = vmax.f32 %v1521_v22, 0.0 }
 0x240   : > { %v1527_v40 = vadd.f32 %v1526_v39, %v7976_v8  ;;  %v1908_v50 = vmax.f32 %v1523_v33, 0.0 }
 0x241   : > { %v1909_v42 = vmax.f32 %v1525_v38, 0.0  ;;  %v2945_v46 = vpack.c.bf16 %v2832_v35, %v2831_v2 }
 0x242   : > { %v1910_v51 = vmax.f32 %v1527_v40, 0.0  ;;  %v2412_v54 = vpop.f32.mrb[124].mxu1 }
 0x243   : > { %v2413_v56 = vadd.f32 %v8314_v45, %v2412_v54  ;;  %v2414_v63 = vpop.f32.mrb[125].mxu1  ;;  %7031 = vmatprep.mubr.bf16.mxu0 %v2945_v46  ;;  %v2079_v3 = vpack.c.bf16 %v1909_v42, %v1907_v41 }
 0x244   : > { %v1530_v6 = vpop.f32.mrb[172].mxu0  ;;  %v2415_v9 = vpop.f32.mrb[126].mxu1  ;;  %v2080_v12 = vpack.c.bf16 %v1910_v51, %v1908_v50 }
 0x245   : > { %v1531_v13 = vadd.f32 %v1530_v6, %v7974_v7  ;;  %v2416_v14 = vadd.f32 %v8314_v45, %v2415_v9  ;;  %v1532_v16 = vpop.f32.mrb[173].mxu0  ;;  %v2417_v17 = vpop.f32.mrb[127].mxu1  ;;  %v2833_v22 = vmax.f32 %v2413_v56, 0.0 }
 0x246   : > { %v1533_v18 = vadd.f32 %v1532_v16, %v7976_v8  ;;  %v1534_v21 = vpop.f32.mrb[174].mxu0  ;;  %2626 = vmatprep.mubr.bf16.mxu1 %v2080_v12 }
 0x247   : > { %v2834_v24 = vmax.f32 %v2416_v14, 0.0  ;;  %v1535_v27 = vadd.f32 %v1534_v21, %v7974_v7  ;;  %v1536_v28 = vpop.f32.mrb[175].mxu0  ;;  %2627 = vmatmul.mubr.bf16.gmra.mrb[232].mxu1 %v2079_v3  ;;  %v1911_v34 = vmax.f32 %v1531_v13, 0.0 }
 0x248   : > { %v1537_v33 = vadd.f32 %v1536_v28, %v7976_v8  ;;  %v1912_v38 = vmax.f32 %v1533_v18, 0.0 }
 0x249   : > { %v1913_v2 = vmax.f32 %v1535_v27, 0.0  ;;  %v2946_v35 = vpack.c.bf16 %v2834_v24, %v2833_v22 }
 0x24a   : > { %v1914_v39 = vmax.f32 %v1537_v33, 0.0  ;;  %v2420_v40 = vpop.f32.mrb[128].mxu1 }
 0x24b   : > { %v2421_v41 = vadd.f32 %v8314_v45, %v2420_v40  ;;  %v2422_v42 = vpop.f32.mrb[129].mxu1  ;;  %7032 = vmatmul.mubr.bf16.gmra.mrb[220].mxu0 %v2946_v35  ;;  %v2081_v46 = vpack.c.bf16 %v1913_v2, %v1911_v34 }
 0x24c   : > { %v1540_v50 = vpop.f32.mrb[176].mxu0  ;;  %v2423_v51 = vpop.f32.mrb[130].mxu1  ;;  %v2082_v54 = vpack.c.bf16 %v1914_v39, %v1912_v38 }
 0x24d   : > { %v1541_v56 = vadd.f32 %v1540_v50, %v7974_v7  ;;  %v2424_v63 = vadd.f32 %v8314_v45, %v2423_v51  ;;  %v1542_v3 = vpop.f32.mrb[177].mxu0  ;;  %v2425_v6 = vpop.f32.mrb[131].mxu1  ;;  %v2835_v13 = vmax.f32 %v2421_v41, 0.0 }
 0x24e   : > { %v1543_v9 = vadd.f32 %v1542_v3, %v7976_v8  ;;  %v1544_v12 = vpop.f32.mrb[178].mxu0  ;;  %2634 = vmatprep.mubr.bf16.mxu1 %v2082_v54 }
 0x24f   : > { %v2836_v14 = vmax.f32 %v2424_v63, 0.0  ;;  %v1545_v16 = vadd.f32 %v1544_v12, %v7974_v7  ;;  %v1546_v17 = vpop.f32.mrb[179].mxu0  ;;  %2635 = vmatmul.mubr.bf16.gmra.mrb[236].mxu1 %v2081_v46  ;;  %v1915_v21 = vmax.f32 %v1541_v56, 0.0 }
 0x250   : > { %v1547_v18 = vadd.f32 %v1546_v17, %v7976_v8  ;;  %v1916_v27 = vmax.f32 %v1543_v9, 0.0 }
 0x251   : > { %v1917_v22 = vmax.f32 %v1545_v16, 0.0  ;;  %v2947_v24 = vpack.c.bf16 %v2836_v14, %v2835_v13 }
 0x252   : > { %v1918_v28 = vmax.f32 %v1547_v18, 0.0  ;;  %v2428_v33 = vpop.f32.mrb[132].mxu1 }
 0x253   : > { %v2429_v34 = vadd.f32 %v8314_v45, %v2428_v33  ;;  %v2430_v2 = vpop.f32.mrb[133].mxu1  ;;  %7035 = vmatprep.mubr.bf16.mxu0 %v2947_v24  ;;  %v2083_v35 = vpack.c.bf16 %v1917_v22, %v1915_v21 }
 0x254   : > { %v1550_v38 = vpop.f32.mrb[180].mxu0  ;;  %v2431_v39 = vpop.f32.mrb[134].mxu1  ;;  %v2084_v40 = vpack.c.bf16 %v1918_v28, %v1916_v27 }
 0x255   : > { %v1551_v41 = vadd.f32 %v1550_v38, %v7974_v7  ;;  %v2432_v42 = vadd.f32 %v8314_v45, %v2431_v39  ;;  %v1552_v46 = vpop.f32.mrb[181].mxu0  ;;  %v2433_v50 = vpop.f32.mrb[135].mxu1  ;;  %v2837_v56 = vmax.f32 %v2429_v34, 0.0 }
 0x256   : > { %v1553_v51 = vadd.f32 %v1552_v46, %v7976_v8  ;;  %v1554_v54 = vpop.f32.mrb[182].mxu0  ;;  %2642 = vmatprep.mubr.bf16.mxu1 %v2084_v40 }
 0x257   : > { %v2838_v63 = vmax.f32 %v2432_v42, 0.0  ;;  %v1555_v3 = vadd.f32 %v1554_v54, %v7974_v7  ;;  %v1556_v6 = vpop.f32.mrb[183].mxu0  ;;  %2643 = vmatmul.mubr.bf16.gmra.mrb[240].mxu1 %v2083_v35  ;;  %v1919_v12 = vmax.f32 %v1551_v41, 0.0 }
 0x258   : > { %v1557_v9 = vadd.f32 %v1556_v6, %v7976_v8  ;;  %v1920_v16 = vmax.f32 %v1553_v51, 0.0 }
 0x259   : > { %v1921_v13 = vmax.f32 %v1555_v3, 0.0  ;;  %v2948_v14 = vpack.c.bf16 %v2838_v63, %v2837_v56 }
 0x25a   : > { %v1922_v17 = vmax.f32 %v1557_v9, 0.0  ;;  %v2436_v18 = vpop.f32.mrb[136].mxu1 }
 0x25b   : > { %v2437_v21 = vadd.f32 %v8314_v45, %v2436_v18  ;;  %v2438_v22 = vpop.f32.mrb[137].mxu1  ;;  %7036 = vmatmul.mubr.bf16.gmra.mrb[224].mxu0 %v2948_v14  ;;  %v2085_v24 = vpack.c.bf16 %v1921_v13, %v1919_v12 }
 0x25c   : > { %v1560_v27 = vpop.f32.mrb[184].mxu0  ;;  %v2439_v28 = vpop.f32.mrb[138].mxu1  ;;  %v2086_v33 = vpack.c.bf16 %v1922_v17, %v1920_v16  ;;  %v8441_v22 = vld [vmem:[%s9176_s4] ss:$0 sm:$0xff] }
 0x25d   : > { %v1561_v34 = vadd.f32 %v1560_v27, %v7974_v7  ;;  %v2440_v2 = vadd.f32 %v8314_v45, %v2439_v28  ;;  %v1562_v35 = vpop.f32.mrb[185].mxu0  ;;  %v2441_v38 = vpop.f32.mrb[139].mxu1  ;;  %v2839_v41 = vmax.f32 %v2437_v21, 0.0 }
 0x25e   : > { %v1563_v39 = vadd.f32 %v1562_v35, %v7976_v8  ;;  %v1564_v40 = vpop.f32.mrb[186].mxu0  ;;  %2650 = vmatprep.mubr.bf16.mxu1 %v2086_v33 }
 0x25f   : > { %v2840_v42 = vmax.f32 %v2440_v2, 0.0  ;;  %v1565_v46 = vadd.f32 %v1564_v40, %v7974_v7  ;;  %v1566_v50 = vpop.f32.mrb[187].mxu0  ;;  %2651 = vmatmul.mubr.bf16.gmra.mrb[244].mxu1 %v2085_v24  ;;  %v1923_v54 = vmax.f32 %v1561_v34, 0.0 }
 0x260   : > { %v1567_v51 = vadd.f32 %v1566_v50, %v7976_v8  ;;  %v1924_v3 = vmax.f32 %v1563_v39, 0.0 }
 0x261   : > { %v1925_v56 = vmax.f32 %v1565_v46, 0.0  ;;  %v2949_v63 = vpack.c.bf16 %v2840_v42, %v2839_v41  ;;  %v7564_v46 = vld [vmem:[%s9179_s7 + $0x28] sm:$0xff]  }
 0x262   : > { %v1926_v6 = vmax.f32 %v1567_v51, 0.0  ;;  %v2444_v9 = vpop.f32.mrb[140].mxu1  ;;  %7141 = vmatprep.subr.bf16.mxu1 %v7564_v46 }
 0x263   : > { %v2445_v12 = vadd.f32 %v8314_v45, %v2444_v9  ;;  %v2446_v13 = vpop.f32.mrb[141].mxu1  ;;  %7039 = vmatprep.mubr.bf16.mxu0 %v2949_v63  ;;  %v2087_v14 = vpack.c.bf16 %v1925_v56, %v1923_v54  ;;  %7142 = vmatpush3.bf16.msra.mxu1 %v7564_v46 }
 0x264   : > { %v1570_v16 = vpop.f32.mrb[188].mxu0  ;;  %v2447_v17 = vpop.f32.mrb[142].mxu1  ;;  %v2088_v18 = vpack.c.bf16 %v1926_v6, %v1924_v3 }
 0x265   : > { %v1571_v21 = vadd.f32 %v1570_v16, %v7974_v7  ;;  %v2448_v24 = vadd.f32 %v8441_v22, %v2447_v17  ;;  %v1572_v27 = vpop.f32.mrb[189].mxu0  ;;  %v2449_v28 = vpop.f32.mrb[143].mxu1  ;;  %v2841_v34 = vmax.f32 %v2445_v12, 0.0  ;;  %v7565_v12 = vld [vmem:[%s9179_s7 + $0x30] sm:$0xff]   ;;  %v7566_v17 = vld [vmem:[%s9179_s7 + $0x38] sm:$0xff]  }
 0x266   : > { %v1573_v33 = vadd.f32 %v1572_v27, %v7976_v8  ;;  %v1574_v45 = vpop.f32.mrb[190].mxu0  ;;  %2658 = vmatprep.mubr.bf16.mxu1 %v2088_v18  ;;  %7143 = vmatprep.subr.bf16.mxu1 %v7565_v12 }
 0x267   : > { %v2842_v2 = vmax.f32 %v2448_v24, 0.0  ;;  %v1575_v35 = vadd.f32 %v1574_v45, %v7974_v7  ;;  %v1576_v38 = vpop.f32.mrb[191].mxu0  ;;  %2659 = vmatmul.mubr.bf16.gmra.mrb[248].mxu1 %v2087_v14  ;;  %v1927_v40 = vmax.f32 %v1571_v21, 0.0 }
 0x268   : > { %v1577_v39 = vadd.f32 %v1576_v38, %v7976_v8  ;;  %v1928_v50 = vmax.f32 %v1573_v33, 0.0  ;;  %7144 = vmatpush3.bf16.msra.mxu1 %v7565_v12 }
 0x269   : > { %v1929_v41 = vmax.f32 %v1575_v35, 0.0  ;;  %v2950_v42 = vpack.c.bf16 %v2842_v2, %v2841_v34  ;;  %7145 = vmatprep.subr.bf16.mxu1 %v7566_v17 }
 0x26a   : > { %v1930_v51 = vmax.f32 %v1577_v39, 0.0  ;;  %v2452_v54 = vpop.f32.mrb[144].mxu1 }
 0x26b   : > { %v2453_v56 = vadd.f32 %v8441_v22, %v2452_v54  ;;  %v2454_v63 = vpop.f32.mrb[145].mxu1  ;;  %7040 = vmatmul.mubr.bf16.gmra.mrb[228].mxu0 %v2950_v42  ;;  %v2089_v3 = vpack.c.bf16 %v1929_v41, %v1927_v40 }
 0x26c   : > { %v2455_v7 = vpop.f32.mrb[146].mxu1  ;;  %v2090_v6 = vpack.c.bf16 %v1930_v51, %v1928_v50  ;;  %7146 = vmatpush3.bf16.msra.mxu1 %v7566_v17 }
 0x26d   : > { %v2456_v8 = vadd.f32 %v8441_v22, %v2455_v7  ;;  %v2457_v9 = vpop.f32.mrb[147].mxu1  ;;  %v2843_v13 = vmax.f32 %v2453_v56, 0.0 }
 0x26e   : > { %2666 = vmatprep.mubr.bf16.mxu1 %v2090_v6 }
 0x26f   : > { %v2844_v14 = vmax.f32 %v2456_v8, 0.0  ;;  %2667 = vmatmul.mubr.bf16.gmra.mrb[252].mxu1 %v2089_v3 }
 0x270   : > { %2674 = vmatprep.mubr.bf16.mxu1 %v8003_v61 }
 0x271   : > { %v2951_v16 = vpack.c.bf16 %v2844_v14, %v2843_v13 }
 0x272   : > { %v2460_v18 = vpop.f32.mrb[148].mxu1 }
 0x273   : > { %v2461_v21 = vadd.f32 %v8441_v22, %v2460_v18  ;;  %v2462_v24 = vpop.f32.mrb[149].mxu1  ;;  %7043 = vmatprep.mubr.bf16.mxu0 %v2951_v16 }
 0x274   : > { %v2463_v27 = vpop.f32.mrb[150].mxu1 }
 0x275   : > { %v2464_v28 = vadd.f32 %v8441_v22, %v2463_v27  ;;  %v2465_v33 = vpop.f32.mrb[151].mxu1  ;;  %v2845_v45 = vmax.f32 %v2461_v21, 0.0 }
 0x277   : > { %v2846_v34 = vmax.f32 %v2464_v28, 0.0  ;;  %2675 = vmatmul.mubr.bf16.gmra.mrb[0].mxu1 %v8000_v57 }
 0x278   : > { %2682 = vmatprep.mubr.bf16.mxu1 %v8021_v30 }
 0x279   : > { %v2952_v61 = vpack.c.bf16 %v2846_v34, %v2845_v45 }
 0x27a   : > { %v2468_v2 = vpop.f32.mrb[152].mxu1 }
 0x27b   : > { %v2469_v35 = vadd.f32 %v8441_v22, %v2468_v2  ;;  %v2470_v38 = vpop.f32.mrb[153].mxu1  ;;  %7044 = vmatmul.mubr.bf16.gmra.mrb[232].mxu0 %v2952_v61 }
 0x27c   : > { %v2471_v39 = vpop.f32.mrb[154].mxu1 }
 0x27d   : > { %v2472_v40 = vadd.f32 %v8441_v22, %v2471_v39  ;;  %v2473_v41 = vpop.f32.mrb[155].mxu1  ;;  %v2847_v42 = vmax.f32 %v2469_v35, 0.0 }
 0x27f   : > { %v2848_v46 = vmax.f32 %v2472_v40, 0.0  ;;  %2683 = vmatmul.mubr.bf16.gmra.mrb[4].mxu1 %v8018_v26 }
 0x280   : > { %2690 = vmatprep.mubr.bf16.mxu1 %v8036_v60 }
 0x281   : > { %v2953_v50 = vpack.c.bf16 %v2848_v46, %v2847_v42 }
 0x282   : > { %v2476_v57 = vpop.f32.mrb[156].mxu1 }
 0x283   : > { %v2477_v30 = vadd.f32 %v8441_v22, %v2476_v57  ;;  %v2478_v51 = vpop.f32.mrb[157].mxu1  ;;  %7047 = vmatprep.mubr.bf16.mxu0 %v2953_v50 }
 0x284   : > { %v2479_v54 = vpop.f32.mrb[158].mxu1 }
 0x285   : > { %v2480_v56 = vadd.f32 %v8441_v22, %v2479_v54  ;;  %v2481_v63 = vpop.f32.mrb[159].mxu1  ;;  %v2849_v3 = vmax.f32 %v2477_v30, 0.0 }
 0x286   : > { %v8491_v63 = vld [vmem:[%s9178_s6] ss:$0 sm:$0xff] }
 0x287   : > { %v2850_v7 = vmax.f32 %v2480_v56, 0.0  ;;  %2691 = vmatmul.mubr.bf16.gmra.mrb[8].mxu1 %v8033_v55 }
 0x288   : > { %2698 = vmatprep.mubr.bf16.mxu1 %v8051_v31 }
 0x289   : > { %v2954_v6 = vpack.c.bf16 %v2850_v7, %v2849_v3 }
 0x28a   : > { %v2484_v26 = vpop.f32.mrb[160].mxu1 }
 0x28b   : > { %v2485_v60 = vadd.f32 %v8441_v22, %v2484_v26  ;;  %v2486_v8 = vpop.f32.mrb[161].mxu1  ;;  %7048 = vmatmul.mubr.bf16.gmra.mrb[236].mxu0 %v2954_v6 }
 0x28c   : > { %v2487_v9 = vpop.f32.mrb[162].mxu1 }
 0x28d   : > { %v2488_v12 = vadd.f32 %v8441_v22, %v2487_v9  ;;  %v2489_v13 = vpop.f32.mrb[163].mxu1  ;;  %v2851_v14 = vmax.f32 %v2485_v60, 0.0 }
 0x28f   : > { %v2852_v16 = vmax.f32 %v2488_v12, 0.0  ;;  %2699 = vmatmul.mubr.bf16.gmra.mrb[12].mxu1 %v8048_v25 }
 0x290   : > { %2706 = vmatprep.mubr.bf16.mxu1 %v8066_v0 }
 0x291   : > { %v2955_v17 = vpack.c.bf16 %v2852_v16, %v2851_v14 }
 0x292   : > { %v2492_v55 = vpop.f32.mrb[164].mxu1 }
 0x293   : > { %v2493_v31 = vadd.f32 %v8441_v22, %v2492_v55  ;;  %v2494_v18 = vpop.f32.mrb[165].mxu1  ;;  %7051 = vmatprep.mubr.bf16.mxu0 %v2955_v17 }
 0x294   : > { %v2495_v21 = vpop.f32.mrb[166].mxu1 }
 0x295   : > { %v2496_v24 = vadd.f32 %v8441_v22, %v2495_v21  ;;  %v2497_v27 = vpop.f32.mrb[167].mxu1  ;;  %v2853_v28 = vmax.f32 %v2493_v31, 0.0 }
 0x297   : > { %v2854_v33 = vmax.f32 %v2496_v24, 0.0  ;;  %2707 = vmatmul.mubr.bf16.gmra.mrb[16].mxu1 %v8063_v58 }
 0x298   : > { %2714 = vmatprep.mubr.bf16.mxu1 %v8081_v36 }
 0x299   : > { %v2956_v45 = vpack.c.bf16 %v2854_v33, %v2853_v28 }
 0x29a   : > { %v2500_v25 = vpop.f32.mrb[168].mxu1 }
 0x29b   : > { %v2501_v0 = vadd.f32 %v8441_v22, %v2500_v25  ;;  %v2502_v34 = vpop.f32.mrb[169].mxu1  ;;  %7052 = vmatmul.mubr.bf16.gmra.mrb[240].mxu0 %v2956_v45 }
 0x29c   : > { %v2503_v61 = vpop.f32.mrb[170].mxu1 }
 0x29d   : > { %v2504_v2 = vadd.f32 %v8441_v22, %v2503_v61  ;;  %v2505_v35 = vpop.f32.mrb[171].mxu1  ;;  %v2855_v38 = vmax.f32 %v2501_v0, 0.0 }
 0x29f   : > { %v2856_v39 = vmax.f32 %v2504_v2, 0.0  ;;  %2715 = vmatmul.mubr.bf16.gmra.mrb[20].mxu1 %v8078_v32 }
 0x2a0   : > { %2722 = vmatprep.mubr.bf16.mxu1 %v8096_v10 }
 0x2a1   : > { %v2957_v40 = vpack.c.bf16 %v2856_v39, %v2855_v38 }
 0x2a2   : > { %v2508_v58 = vpop.f32.mrb[172].mxu1 }
 0x2a3   : > { %v2509_v36 = vadd.f32 %v8441_v22, %v2508_v58  ;;  %v2510_v41 = vpop.f32.mrb[173].mxu1  ;;  %7055 = vmatprep.mubr.bf16.mxu0 %v2957_v40 }
 0x2a4   : > { %v2511_v42 = vpop.f32.mrb[174].mxu1 }
 0x2a5   : > { %v2512_v46 = vadd.f32 %v8441_v22, %v2511_v42  ;;  %v2513_v50 = vpop.f32.mrb[175].mxu1  ;;  %v2857_v57 = vmax.f32 %v2509_v36, 0.0 }
 0x2a7   : > { %v2858_v30 = vmax.f32 %v2512_v46, 0.0  ;;  %2723 = vmatmul.mubr.bf16.gmra.mrb[24].mxu1 %v8093_v4 }
 0x2a8   : > { %2730 = vmatprep.mubr.bf16.mxu1 %v8117_v47 }
 0x2a9   : > { %v2958_v51 = vpack.c.bf16 %v2858_v30, %v2857_v57 }
 0x2aa   : > { %v2516_v32 = vpop.f32.mrb[176].mxu1 }
 0x2ab   : > { %v2517_v10 = vadd.f32 %v8441_v22, %v2516_v32  ;;  %v2518_v54 = vpop.f32.mrb[177].mxu1  ;;  %7056 = vmatmul.mubr.bf16.gmra.mrb[244].mxu0 %v2958_v51 }
 0x2ac   : > { %v2519_v56 = vpop.f32.mrb[178].mxu1 }
 0x2ad   : > { %v2520_v3 = vadd.f32 %v8441_v22, %v2519_v56  ;;  %v2521_v7 = vpop.f32.mrb[179].mxu1  ;;  %v2859_v26 = vmax.f32 %v2517_v10, 0.0 }
 0x2ae   : > { %v7005_v6 = vpop.f32.mrb[192].mxu0 }
 0x2af   : > { %v2860_v4 = vmax.f32 %v2520_v3, 0.0  ;;  %v3109_v47 = vadd.f32 %v7005_v6, %v8491_v63  ;;  %2731 = vmatmul.mubr.bf16.gmra.mrb[28].mxu1 %v8114_v43  ;;  %v3100_v60 = vpop.f32.mrb[193].mxu0 }
 0x2b0   : > { %v3101_v8 = vadd.f32 %v8491_v63, %v3100_v60  ;;  %2738 = vmatprep.mubr.bf16.mxu1 %v8132_v23  ;;  %v7006_v9 = vpop.f32.mrb[194].mxu0 }
 0x2b1   : > { %v3112_v12 = vadd.f32 %v7006_v9, %v8491_v63  ;;  %v3103_v13 = vpop.f32.mrb[195].mxu0  ;;  %v2959_v14 = vpack.c.bf16 %v2860_v4, %v2859_v26  ;;  %v3613_v55 = vmax.f32 %v3109_v47, 0.0 }
 0x2b2   : > { %v3104_v16 = vadd.f32 %v8491_v63, %v3103_v13  ;;  %v2524_v17 = vpop.f32.mrb[180].mxu1  ;;  %v3611_v43 = vmax.f32 %v3101_v8, 0.0 }
 0x2b3   : > { %v3614_v31 = vmax.f32 %v3112_v12, 0.0  ;;  %v2525_v18 = vadd.f32 %v8441_v22, %v2524_v17  ;;  %v2526_v21 = vpop.f32.mrb[181].mxu1  ;;  %7059 = vmatprep.mubr.bf16.mxu0 %v2959_v14 }
 0x2b4   : > { %v3612_v24 = vmax.f32 %v3104_v16, 0.0  ;;  %v2527_v27 = vpop.f32.mrb[182].mxu1 }
 0x2b5   : > { %v8501_v28 = vpack.c.bf16 %v3614_v31, %v3613_v55  ;;  %v2528_v23 = vadd.f32 %v8441_v22, %v2527_v27  ;;  %v2529_v33 = vpop.f32.mrb[183].mxu1  ;;  %v2861_v25 = vmax.f32 %v2525_v18, 0.0 }
 0x2b6   : > { %v8504_v45 = vpack.c.bf16 %v3612_v24, %v3611_v43 }
 0x2b7   : > { %v2862_v0 = vmax.f32 %v2528_v23, 0.0  ;;  %2739 = vmatmul.mubr.bf16.gmra.mrb[32].mxu1 %v8129_v19 }
 0x2b8   : > { %2746 = vmatprep.mubr.bf16.mxu1 %v8150_v5 }
 0x2b9   : > { %v2960_v34 = vpack.c.bf16 %v2862_v0, %v2861_v25 }
 0x2ba   : > { %v2532_v61 = vpop.f32.mrb[184].mxu1 }
 0x2bb   : > { %v2533_v2 = vadd.f32 %v8441_v22, %v2532_v61  ;;  %v2534_v35 = vpop.f32.mrb[185].mxu1  ;;  %7060 = vmatmul.mubr.bf16.gmra.mrb[248].mxu0 %v2960_v34 }
 0x2bc   : > { %v2535_v38 = vpop.f32.mrb[186].mxu1 }
 0x2bd   : > { %v2536_v39 = vadd.f32 %v8441_v22, %v2535_v38  ;;  %v2537_v40 = vpop.f32.mrb[187].mxu1  ;;  %v2863_v36 = vmax.f32 %v2533_v2, 0.0 }
 0x2be   : > { %v7009_v58 = vpop.f32.mrb[196].mxu0 }
 0x2bf   : > { %v2864_v41 = vmax.f32 %v2536_v39, 0.0  ;;  %v3125_v42 = vadd.f32 %v7009_v58, %v8491_v63  ;;  %2747 = vmatmul.mubr.bf16.gmra.mrb[36].mxu1 %v8147_v62  ;;  %v3116_v19 = vpop.f32.mrb[197].mxu0 }
 0x2c0   : > { %v3117_v5 = vadd.f32 %v8491_v63, %v3116_v19  ;;  %2754 = vmatprep.mubr.bf16.mxu1 %v8171_v49  ;;  %v7010_v46 = vpop.f32.mrb[198].mxu0 }
 0x2c1   : > { %v3128_v50 = vadd.f32 %v7010_v46, %v8491_v63  ;;  %v3119_v57 = vpop.f32.mrb[199].mxu0  ;;  %v2961_v30 = vpack.c.bf16 %v2864_v41, %v2863_v36  ;;  %v3617_v10 = vmax.f32 %v3125_v42, 0.0 }
 0x2c2   : > { %v3120_v51 = vadd.f32 %v8491_v63, %v3119_v57  ;;  %v2540_v32 = vpop.f32.mrb[188].mxu1  ;;  %v3615_v62 = vmax.f32 %v3117_v5, 0.0 }
 0x2c3   : > { %v3618_v54 = vmax.f32 %v3128_v50, 0.0  ;;  %v2541_v56 = vadd.f32 %v8441_v22, %v2540_v32  ;;  %v2542_v3 = vpop.f32.mrb[189].mxu1  ;;  %7063 = vmatprep.mubr.bf16.mxu0 %v2961_v30 }
 0x2c4   : > { %v3616_v7 = vmax.f32 %v3120_v51, 0.0  ;;  %v2543_v6 = vpop.f32.mrb[190].mxu1 }
 0x2c5   : > { %v8517_v26 = vpack.c.bf16 %v3618_v54, %v3617_v10  ;;  %v2544_v49 = vadd.f32 %v8441_v22, %v2543_v6  ;;  %v2545_v4 = vpop.f32.mrb[191].mxu1  ;;  %v2865_v60 = vmax.f32 %v2541_v56, 0.0 }
 0x2c6   : > { %v8520_v47 = vpack.c.bf16 %v3616_v7, %v3615_v62 }
 0x2c7   : > { %v2866_v8 = vmax.f32 %v2544_v49, 0.0  ;;  %2755 = vmatmul.mubr.bf16.gmra.mrb[40].mxu1 %v8168_v44 }
 0x2c8   : > { %2762 = vmatprep.mubr.bf16.mxu1 %v8192_v37 }
 0x2c9   : > { %v2962_v9 = vpack.c.bf16 %v2866_v8, %v2865_v60 }
 0x2ca   : > { %v2548_v12 = vpop.f32.mrb[192].mxu1 }
 0x2cb   : > { %v2549_v13 = vadd.f32 %v8441_v22, %v2548_v12  ;;  %v2550_v14 = vpop.f32.mrb[193].mxu1  ;;  %7064 = vmatmul.mubr.bf16.gmra.mrb[252].mxu0 %v2962_v9 }
 0x2cc   : > { %v2551_v16 = vpop.f32.mrb[194].mxu1 }
 0x2cd   : > { %v2552_v17 = vadd.f32 %v8441_v22, %v2551_v16  ;;  %v2553_v55 = vpop.f32.mrb[195].mxu1  ;;  %v2867_v18 = vmax.f32 %v2549_v13, 0.0 }
 0x2ce   : > { %v7013_v31 = vpop.f32.mrb[200].mxu0 }
 0x2cf   : > { %v2868_v21 = vmax.f32 %v2552_v17, 0.0  ;;  %v3141_v43 = vadd.f32 %v7013_v31, %v8491_v63  ;;  %2763 = vmatmul.mubr.bf16.gmra.mrb[44].mxu1 %v8189_v29  ;;  %v3132_v44 = vpop.f32.mrb[201].mxu0 }
 0x2d0   : > { %v3133_v37 = vadd.f32 %v8491_v63, %v3132_v44  ;;  %2770 = vmatprep.mubr.bf16.mxu1 %v8207_v20  ;;  %v7014_v24 = vpop.f32.mrb[202].mxu0 }
 0x2d1   : > { %v2963_v27 = vpack.c.bf16 %v2868_v21, %v2867_v18  ;;  %v3144_v23 = vadd.f32 %v7014_v24, %v8491_v63  ;;  %v3135_v33 = vpop.f32.mrb[203].mxu0  ;;  %v3621_v34 = vmax.f32 %v3141_v43, 0.0 }
 0x2d2   : > { %v3136_v25 = vadd.f32 %v8491_v63, %v3135_v33  ;;  %v2556_v0 = vpop.f32.mrb[196].mxu1  ;;  %v3619_v29 = vmax.f32 %v3133_v37, 0.0 }
 0x2d3   : > { %v3622_v61 = vmax.f32 %v3144_v23, 0.0  ;;  %v2557_v2 = vadd.f32 %v8441_v22, %v2556_v0  ;;  %v2558_v35 = vpop.f32.mrb[197].mxu1  ;;  %7067 = vmatprep.mubr.bf16.mxu0 %v2963_v27 }
 0x2d4   : > { %v3620_v38 = vmax.f32 %v3136_v25, 0.0  ;;  %v2559_v39 = vpop.f32.mrb[198].mxu1 }
 0x2d5   : > { %v8533_v40 = vpack.c.bf16 %v3622_v61, %v3621_v34  ;;  %v2560_v20 = vadd.f32 %v8441_v22, %v2559_v39  ;;  %v2561_v58 = vpop.f32.mrb[199].mxu1  ;;  %v2869_v41 = vmax.f32 %v2557_v2, 0.0 }
 0x2d6   : > { %v8536_v36 = vpack.c.bf16 %v3620_v38, %v3619_v29 }
 0x2d7   : > { %v2870_v42 = vmax.f32 %v2560_v20, 0.0  ;;  %2771 = vmatmul.mubr.bf16.gmra.mrb[48].mxu1 %v8204_v15 }
 0x2d8   : > { %2778 = vmatprep.mubr.bf16.mxu1 %v8222_v11 }
 0x2d9   : > { %v2964_v19 = vpack.c.bf16 %v2870_v42, %v2869_v41 }
 0x2da   : > { %v2564_v5 = vpop.f32.mrb[200].mxu1 }
 0x2db   : > { %v2565_v46 = vadd.f32 %v8441_v22, %v2564_v5  ;;  %v2566_v50 = vpop.f32.mrb[201].mxu1  ;;  %7068 = vmatmul.mubr.bf16.gmra.mrb[0].mxu0 %v2964_v19 }
 0x2dc   : > { %v2567_v57 = vpop.f32.mrb[202].mxu1 }
 0x2dd   : > { %v2568_v30 = vadd.f32 %v8441_v22, %v2567_v57  ;;  %v2569_v51 = vpop.f32.mrb[203].mxu1  ;;  %v2871_v10 = vmax.f32 %v2565_v46, 0.0 }
 0x2de   : > { %v7017_v32 = vpop.f32.mrb[204].mxu0 }
 0x2df   : > { %v2872_v54 = vmax.f32 %v2568_v30, 0.0  ;;  %v3157_v56 = vadd.f32 %v7017_v32, %v8491_v63  ;;  %2779 = vmatmul.mubr.bf16.gmra.mrb[52].mxu1 %v8219_v1  ;;  %v3148_v15 = vpop.f32.mrb[205].mxu0 }
 0x2e0   : > { %v3149_v11 = vadd.f32 %v8491_v63, %v3148_v15  ;;  %2786 = vmatprep.mubr.bf16.mxu1 %v8237_v59  ;;  %v7018_v3 = vpop.f32.mrb[206].mxu0 }
 0x2e1   : > { %v2965_v62 = vpack.c.bf16 %v2872_v54, %v2871_v10  ;;  %v3160_v7 = vadd.f32 %v7018_v3, %v8491_v63  ;;  %v3151_v6 = vpop.f32.mrb[207].mxu0  ;;  %v3625_v60 = vmax.f32 %v3157_v56, 0.0 }
 0x2e2   : > { %v3152_v49 = vadd.f32 %v8491_v63, %v3151_v6  ;;  %v2572_v4 = vpop.f32.mrb[204].mxu1  ;;  %v3623_v1 = vmax.f32 %v3149_v11, 0.0 }
 0x2e3   : > { %v3626_v8 = vmax.f32 %v3160_v7, 0.0  ;;  %v2573_v9 = vadd.f32 %v8441_v22, %v2572_v4  ;;  %v2574_v12 = vpop.f32.mrb[205].mxu1  ;;  %7071 = vmatprep.mubr.bf16.mxu0 %v2965_v62 }
 0x2e4   : > { %v3624_v13 = vmax.f32 %v3152_v49, 0.0  ;;  %v2575_v14 = vpop.f32.mrb[206].mxu1 }
 0x2e5   : > { %v8549_v16 = vpack.c.bf16 %v3626_v8, %v3625_v60  ;;  %v2576_v59 = vadd.f32 %v8441_v22, %v2575_v14  ;;  %v2577_v17 = vpop.f32.mrb[207].mxu1  ;;  %v2873_v31 = vmax.f32 %v2573_v9, 0.0 }
 0x2e6   : > { %v8552_v55 = vpack.c.bf16 %v3624_v13, %v3623_v1 }
 0x2e7   : > { %v2874_v18 = vmax.f32 %v2576_v59, 0.0  ;;  %2787 = vmatmul.mubr.bf16.gmra.mrb[56].mxu1 %v8234_v52 }
 0x2e8   : > { %2794 = vmatprep.mubr.bf16.mxu1 %v8255_v53 }
 0x2e9   : > { %v2966_v21 = vpack.c.bf16 %v2874_v18, %v2873_v31 }
 0x2ea   : > { %v2580_v43 = vpop.f32.mrb[208].mxu1 }
 0x2eb   : > { %v2581_v44 = vadd.f32 %v8441_v22, %v2580_v43  ;;  %v2582_v37 = vpop.f32.mrb[209].mxu1  ;;  %7072 = vmatmul.mubr.bf16.gmra.mrb[4].mxu0 %v2966_v21 }
 0x2ec   : > { %v2583_v24 = vpop.f32.mrb[210].mxu1 }
 0x2ed   : > { %v2584_v27 = vadd.f32 %v8441_v22, %v2583_v24  ;;  %v2585_v23 = vpop.f32.mrb[211].mxu1  ;;  %v2875_v25 = vmax.f32 %v2581_v44, 0.0 }
 0x2ee   : > { %v7021_v33 = vpop.f32.mrb[208].mxu0 }
 0x2ef   : > { %v2876_v0 = vmax.f32 %v2584_v27, 0.0  ;;  %v3173_v34 = vadd.f32 %v7021_v33, %v8491_v63  ;;  %2795 = vmatmul.mubr.bf16.gmra.mrb[60].mxu1 %v8252_v48  ;;  %v3164_v52 = vpop.f32.mrb[209].mxu0 }
 0x2f0   : > { %v3165_v53 = vadd.f32 %v8491_v63, %v3164_v52  ;;  %v7022_v61 = vpop.f32.mrb[210].mxu0  ;;  %7147 = vmatprep.mubr.bf16.mxu1 %v8504_v45 }
 0x2f1   : > { %v2967_v2 = vpack.c.bf16 %v2876_v0, %v2875_v25  ;;  %v3176_v35 = vadd.f32 %v7022_v61, %v8491_v63  ;;  %v3167_v29 = vpop.f32.mrb[211].mxu0  ;;  %v3629_v20 = vmax.f32 %v3173_v34, 0.0 }
 0x2f2   : > { %v3168_v38 = vadd.f32 %v8491_v63, %v3167_v29  ;;  %v2588_v39 = vpop.f32.mrb[212].mxu1  ;;  %v3627_v48 = vmax.f32 %v3165_v53, 0.0 }
 0x2f3   : > { %v3630_v58 = vmax.f32 %v3176_v35, 0.0  ;;  %v2589_v41 = vadd.f32 %v8441_v22, %v2588_v39  ;;  %v2590_v42 = vpop.f32.mrb[213].mxu1  ;;  %7075 = vmatprep.mubr.bf16.mxu0 %v2967_v2 }
 0x2f4   : > { %v3628_v19 = vmax.f32 %v3168_v38, 0.0  ;;  %v2591_v5 = vpop.f32.mrb[214].mxu1 }
 0x2f5   : > { %v8565_v46 = vpack.c.bf16 %v3630_v58, %v3629_v20  ;;  %v2592_v45 = vadd.f32 %v8441_v22, %v2591_v5  ;;  %v2593_v50 = vpop.f32.mrb[215].mxu1  ;;  %v2877_v30 = vmax.f32 %v2589_v41, 0.0  ;;  %v7567_v58 = vld [vmem:[%s9181_s9] sm:$0xff]  }
 0x2f6   : > { %v3747_v57 = vpack.c.bf16 %v3628_v19, %v3627_v48  ;;  %7275 = vmatprep.subr.bf16.mxu0 %v7567_v58 }
 0x2f7   : > { %v2878_v51 = vmax.f32 %v2592_v45, 0.0  ;;  %7148 = vmatmul.mubr.bf16.vlgmr.msra.gmra.mrb[64].mxu1 %v8501_v28  ;;  %7276 = vmatpush3.bf16.msra.mxu0 %v7567_v58 }
 0x2f8   : > { %7151 = vmatprep.mubr.bf16.mxu1 %v8520_v47 }
 0x2f9   : > { %v2968_v32 = vpack.c.bf16 %v2878_v51, %v2877_v30 }
 0x2fa   : > { %v2596_v10 = vpop.f32.mrb[216].mxu1 }
 0x2fb   : > { %v2597_v54 = vadd.f32 %v8441_v22, %v2596_v10  ;;  %v2598_v56 = vpop.f32.mrb[217].mxu1  ;;  %7076 = vmatmul.mubr.bf16.gmra.mrb[8].mxu0 %v2968_v32 }
 0x2fc   : > { %v2599_v15 = vpop.f32.mrb[218].mxu1 }
 0x2fd   : > { %v2600_v11 = vadd.f32 %v8441_v22, %v2599_v15  ;;  %v2601_v3 = vpop.f32.mrb[219].mxu1  ;;  %v2879_v7 = vmax.f32 %v2597_v54, 0.0 }
 0x2fe   : > { %v7025_v62 = vpop.f32.mrb[212].mxu0 }
 0x2ff   : > { %v2880_v6 = vmax.f32 %v2600_v11, 0.0  ;;  %v3189_v49 = vadd.f32 %v7025_v62, %v8491_v63  ;;  %v3180_v4 = vpop.f32.mrb[213].mxu0  ;;  %7152 = vmatmul.mubr.bf16.gmra.mrb[68].mxu1 %v8517_v26 }
 0x300   : > { %v3181_v28 = vadd.f32 %v8491_v63, %v3180_v4  ;;  %v7026_v47 = vpop.f32.mrb[214].mxu0  ;;  %7155 = vmatprep.mubr.bf16.mxu1 %v8536_v36 }
 0x301   : > { %v2969_v60 = vpack.c.bf16 %v2880_v6, %v2879_v7  ;;  %v3192_v8 = vadd.f32 %v7026_v47, %v8491_v63  ;;  %v3183_v9 = vpop.f32.mrb[215].mxu0  ;;  %v3633_v13 = vmax.f32 %v3189_v49, 0.0 }
 0x302   : > { %v3184_v12 = vadd.f32 %v8491_v63, %v3183_v9  ;;  %v2604_v1 = vpop.f32.mrb[220].mxu1  ;;  %v3631_v31 = vmax.f32 %v3181_v28, 0.0 }
 0x303   : > { %v3634_v14 = vmax.f32 %v3192_v8, 0.0  ;;  %v2605_v59 = vadd.f32 %v8441_v22, %v2604_v1  ;;  %v2606_v17 = vpop.f32.mrb[221].mxu1  ;;  %7079 = vmatprep.mubr.bf16.mxu0 %v2969_v60 }
 0x304   : > { %v3632_v26 = vmax.f32 %v3184_v12, 0.0  ;;  %v2607_v18 = vpop.f32.mrb[222].mxu1 }
 0x305   : > { %v3750_v21 = vpack.c.bf16 %v3634_v14, %v3633_v13  ;;  %v2608_v43 = vadd.f32 %v8441_v22, %v2607_v18  ;;  %v2609_v36 = vpop.f32.mrb[223].mxu1  ;;  %v2881_v37 = vmax.f32 %v2605_v59, 0.0 }
 0x306   : > { %v3749_v44 = vpack.c.bf16 %v3632_v26, %v3631_v31 }
 0x307   : > { %v2882_v24 = vmax.f32 %v2608_v43, 0.0  ;;  %7156 = vmatmul.mubr.bf16.gmra.mrb[72].mxu1 %v8533_v40 }
 0x308   : > { %7159 = vmatprep.mubr.bf16.mxu1 %v8552_v55 }
 0x309   : > { %v2970_v27 = vpack.c.bf16 %v2882_v24, %v2881_v37 }
 0x30a   : > { %v2612_v23 = vpop.f32.mrb[224].mxu1 }
 0x30b   : > { %v2613_v33 = vadd.f32 %v8441_v22, %v2612_v23  ;;  %v2614_v25 = vpop.f32.mrb[225].mxu1  ;;  %7080 = vmatmul.mubr.bf16.gmra.mrb[12].mxu0 %v2970_v27 }
 0x30c   : > { %v2615_v0 = vpop.f32.mrb[226].mxu1 }
 0x30d   : > { %v2616_v34 = vadd.f32 %v8441_v22, %v2615_v0  ;;  %v2617_v52 = vpop.f32.mrb[227].mxu1  ;;  %v2883_v61 = vmax.f32 %v2613_v33, 0.0 }
 0x30e   : > { %v7029_v53 = vpop.f32.mrb[216].mxu0 }
 0x30f   : > { %v2884_v2 = vmax.f32 %v2616_v34, 0.0  ;;  %v3205_v35 = vadd.f32 %v7029_v53, %v8491_v63  ;;  %v3196_v29 = vpop.f32.mrb[217].mxu0  ;;  %7160 = vmatmul.mubr.bf16.gmra.mrb[76].mxu1 %v8549_v16 }
 0x310   : > { %v3197_v40 = vadd.f32 %v8491_v63, %v3196_v29  ;;  %v7030_v55 = vpop.f32.mrb[218].mxu0  ;;  %7163 = vmatprep.mubr.bf16.mxu1 %v3747_v57 }
 0x311   : > { %v2971_v38 = vpack.c.bf16 %v2884_v2, %v2883_v61  ;;  %v3208_v39 = vadd.f32 %v7030_v55, %v8491_v63  ;;  %v3199_v20 = vpop.f32.mrb[219].mxu0  ;;  %v3637_v48 = vmax.f32 %v3205_v35, 0.0 }
 0x312   : > { %v3200_v41 = vadd.f32 %v8491_v63, %v3199_v20  ;;  %v2620_v42 = vpop.f32.mrb[228].mxu1  ;;  %v3635_v45 = vmax.f32 %v3197_v40, 0.0 }
 0x313   : > { %v3638_v19 = vmax.f32 %v3208_v39, 0.0  ;;  %v2621_v5 = vadd.f32 %v8441_v22, %v2620_v42  ;;  %v2622_v16 = vpop.f32.mrb[229].mxu1  ;;  %7083 = vmatprep.mubr.bf16.mxu0 %v2971_v38 }
 0x314   : > { %v3636_v50 = vmax.f32 %v3200_v41, 0.0  ;;  %v2623_v57 = vpop.f32.mrb[230].mxu1 }
 0x315   : > { %v3752_v30 = vpack.c.bf16 %v3638_v19, %v3637_v48  ;;  %v2624_v51 = vadd.f32 %v8441_v22, %v2623_v57  ;;  %v2625_v32 = vpop.f32.mrb[231].mxu1  ;;  %v2885_v54 = vmax.f32 %v2621_v5, 0.0  ;;  %v7568_v48 = vld [vmem:[%s9181_s9 + $0x8] sm:$0xff]  }
 0x316   : > { %v3751_v10 = vpack.c.bf16 %v3636_v50, %v3635_v45  ;;  %7277 = vmatprep.subr.bf16.mxu0 %v7568_v48 }
 0x317   : > { %v2886_v56 = vmax.f32 %v2624_v51, 0.0  ;;  %7164 = vmatmul.mubr.bf16.gmra.mrb[80].mxu1 %v8565_v46  ;;  %7278 = vmatpush3.bf16.msra.mxu0 %v7568_v48 }
 0x318   : > { %7167 = vmatprep.mubr.bf16.mxu1 %v3749_v44 }
 0x319   : > { %v2972_v15 = vpack.c.bf16 %v2886_v56, %v2885_v54 }
 0x31a   : > { %v2628_v11 = vpop.f32.mrb[232].mxu1 }
 0x31b   : > { %v2629_v3 = vadd.f32 %v8441_v22, %v2628_v11  ;;  %v2630_v62 = vpop.f32.mrb[233].mxu1  ;;  %7084 = vmatmul.mubr.bf16.gmra.mrb[16].mxu0 %v2972_v15 }
 0x31c   : > { %v2631_v7 = vpop.f32.mrb[234].mxu1 }
 0x31d   : > { %v2632_v6 = vadd.f32 %v8441_v22, %v2631_v7  ;;  %v2633_v49 = vpop.f32.mrb[235].mxu1  ;;  %v2887_v28 = vmax.f32 %v2629_v3, 0.0 }
 0x31e   : > { %v7033_v4 = vpop.f32.mrb[220].mxu0 }
 0x31f   : > { %v2888_v47 = vmax.f32 %v2632_v6, 0.0  ;;  %v3221_v60 = vadd.f32 %v7033_v4, %v8491_v63  ;;  %v3212_v8 = vpop.f32.mrb[221].mxu0  ;;  %7168 = vmatmul.mubr.bf16.gmra.mrb[84].mxu1 %v3750_v21  ;;  %v7569_v4 = vld [vmem:[%s9181_s9 + $0x10] sm:$0xff]  }
 0x320   : > { %v3213_v46 = vadd.f32 %v8491_v63, %v3212_v8  ;;  %v7034_v9 = vpop.f32.mrb[222].mxu0  ;;  %7171 = vmatprep.mubr.bf16.mxu1 %v3751_v10  ;;  %7279 = vmatprep.subr.bf16.mxu0 %v7569_v4 }
 0x321   : > { %v2973_v12 = vpack.c.bf16 %v2888_v47, %v2887_v28  ;;  %v3224_v1 = vadd.f32 %v7034_v9, %v8491_v63  ;;  %v3215_v13 = vpop.f32.mrb[223].mxu0  ;;  %v3641_v17 = vmax.f32 %v3221_v60, 0.0  ;;  %7280 = vmatpush3.bf16.msra.mxu0 %v7569_v4 }
 0x322   : > { %v3216_v14 = vadd.f32 %v8491_v63, %v3215_v13  ;;  %v2636_v59 = vpop.f32.mrb[236].mxu1  ;;  %v3639_v43 = vmax.f32 %v3213_v46, 0.0  ;;  %v7570_v13 = vld [vmem:[%s9181_s9 + $0x18] sm:$0xff]  }
 0x323   : > { %v3642_v31 = vmax.f32 %v3224_v1, 0.0  ;;  %v2637_v26 = vadd.f32 %v8441_v22, %v2636_v59  ;;  %v2638_v18 = vpop.f32.mrb[237].mxu1  ;;  %7087 = vmatprep.mubr.bf16.mxu0 %v2973_v12  ;;  %7281 = vmatprep.subr.bf16.mxu0 %v7570_v13 }
 0x324   : > { %v3640_v36 = vmax.f32 %v3216_v14, 0.0  ;;  %v2639_v21 = vpop.f32.mrb[238].mxu1 }
 0x325   : > { %v3754_v44 = vpack.c.bf16 %v3642_v31, %v3641_v17  ;;  %v2640_v37 = vadd.f32 %v8441_v22, %v2639_v21  ;;  %v2641_v24 = vpop.f32.mrb[239].mxu1  ;;  %v2889_v23 = vmax.f32 %v2637_v26, 0.0  ;;  %7282 = vmatpush3.bf16.msra.mxu0 %v7570_v13 }
 0x326   : > { %v3753_v27 = vpack.c.bf16 %v3640_v36, %v3639_v43  ;;  %v7571_v24 = vld [vmem:[%s9181_s9 + $0x20] sm:$0xff]  }
 0x327   : > { %v2890_v33 = vmax.f32 %v2640_v37, 0.0  ;;  %7172 = vmatmul.mubr.bf16.gmra.mrb[88].mxu1 %v3752_v30  ;;  %7283 = vmatprep.subr.bf16.mxu0 %v7571_v24 }
 0x328   : > { %7175 = vmatprep.mubr.bf16.mxu1 %v3753_v27 }
 0x329   : > { %v2974_v25 = vpack.c.bf16 %v2890_v33, %v2889_v23  ;;  %7284 = vmatpush3.bf16.msra.mxu0 %v7571_v24 }
 0x32a   : > { %v2644_v0 = vpop.f32.mrb[240].mxu1 }
 0x32b   : > { %v2645_v34 = vadd.f32 %v8441_v22, %v2644_v0  ;;  %v2646_v52 = vpop.f32.mrb[241].mxu1  ;;  %7088 = vmatmul.mubr.bf16.gmra.mrb[20].mxu0 %v2974_v25 }
 0x32c   : > { %v2647_v53 = vpop.f32.mrb[242].mxu1 }
 0x32d   : > { %v2648_v61 = vadd.f32 %v8441_v22, %v2647_v53  ;;  %v2649_v2 = vpop.f32.mrb[243].mxu1  ;;  %v2891_v29 = vmax.f32 %v2645_v34, 0.0 }
 0x32e   : > { %v7037_v35 = vpop.f32.mrb[224].mxu0  ;;  %v7572_v2 = vld [vmem:[%s9181_s9 + $0x28] sm:$0xff]  }
 0x32f   : > { %v2892_v40 = vmax.f32 %v2648_v61, 0.0  ;;  %v3237_v55 = vadd.f32 %v7037_v35, %v8491_v63  ;;  %v3228_v38 = vpop.f32.mrb[225].mxu0  ;;  %7176 = vmatmul.mubr.bf16.gmra.mrb[92].mxu1 %v3754_v44  ;;  %7285 = vmatprep.subr.bf16.mxu0 %v7572_v2 }
 0x330   : > { %v3229_v39 = vadd.f32 %v8491_v63, %v3228_v38  ;;  %v7038_v20 = vpop.f32.mrb[226].mxu0  ;;  %7286 = vmatpush3.bf16.msra.mxu0 %v7572_v2  ;;  %v7573_v38 = vld [vmem:[%s9181_s9 + $0x30] sm:$0xff]  }
 0x331   : > { %v2975_v58 = vpack.c.bf16 %v2892_v40, %v2891_v29  ;;  %v3240_v41 = vadd.f32 %v7038_v20, %v8491_v63  ;;  %v3231_v42 = vpop.f32.mrb[227].mxu0  ;;  %v3645_v16 = vmax.f32 %v3237_v55, 0.0  ;;  %7287 = vmatprep.subr.bf16.mxu0 %v7573_v38 }
 0x332   : > { %v3232_v19 = vadd.f32 %v8491_v63, %v3231_v42  ;;  %v2652_v5 = vpop.f32.mrb[244].mxu1  ;;  %v3643_v30 = vmax.f32 %v3229_v39, 0.0 }
 0x333   : > { %v3646_v45 = vmax.f32 %v3240_v41, 0.0  ;;  %v2653_v50 = vadd.f32 %v8441_v22, %v2652_v5  ;;  %v2654_v57 = vpop.f32.mrb[245].mxu1  ;;  %7091 = vmatprep.mubr.bf16.mxu0 %v2975_v58 }
 0x334   : > { %v3644_v51 = vmax.f32 %v3232_v19, 0.0  ;;  %v2655_v32 = vpop.f32.mrb[246].mxu1  ;;  %7288 = vmatpush3.bf16.msra.mxu0 %v7573_v38 }
 0x335   : > { %v3756_v10 = vpack.c.bf16 %v3646_v45, %v3645_v16  ;;  %v2656_v54 = vadd.f32 %v8441_v22, %v2655_v32  ;;  %v2657_v56 = vpop.f32.mrb[247].mxu1  ;;  %v2893_v11 = vmax.f32 %v2653_v50, 0.0  ;;  %v7574_v16 = vld [vmem:[%s9181_s9 + $0x38] sm:$0xff]  }
 0x336   : > { %v3755_v15 = vpack.c.bf16 %v3644_v51, %v3643_v30  ;;  %7289 = vmatprep.subr.bf16.mxu0 %v7574_v16 }
 0x337   : > { %v2894_v3 = vmax.f32 %v2656_v54, 0.0 }
 0x338   : > { %7179 = vmatprep.mubr.bf16.mxu1 %v3755_v15  ;;  %7290 = vmatpush3.bf16.msra.mxu0 %v7574_v16 }
 0x339   : > { %v2976_v62 = vpack.c.bf16 %v2894_v3, %v2893_v11  ;;  %7180 = vmatmul.mubr.bf16.gmra.mrb[96].mxu1 %v3756_v10 }
 0x33a   : > { %v2660_v7 = vpop.f32.mrb[248].mxu1 }
 0x33b   : > { %v2661_v6 = vadd.f32 %v8441_v22, %v2660_v7  ;;  %v2662_v49 = vpop.f32.mrb[249].mxu1  ;;  %7092 = vmatmul.mubr.bf16.gmra.mrb[24].mxu0 %v2976_v62 }
 0x33c   : > { %v2663_v28 = vpop.f32.mrb[250].mxu1 }
 0x33d   : > { %v2664_v47 = vadd.f32 %v8441_v22, %v2663_v28  ;;  %v2665_v60 = vpop.f32.mrb[251].mxu1  ;;  %v2895_v46 = vmax.f32 %v2661_v6, 0.0 }
 0x33e   : > { %v7041_v8 = vpop.f32.mrb[228].mxu0 }
 0x33f   : > { %v2896_v9 = vmax.f32 %v2664_v47, 0.0  ;;  %v3253_v12 = vadd.f32 %v7041_v8, %v8491_v63  ;;  %v3244_v1 = vpop.f32.mrb[229].mxu0 }
 0x340   : > { %v3245_v14 = vadd.f32 %v8491_v63, %v3244_v1  ;;  %v7042_v59 = vpop.f32.mrb[230].mxu0 }
 0x341   : > { %v2977_v17 = vpack.c.bf16 %v2896_v9, %v2895_v46  ;;  %v3256_v31 = vadd.f32 %v7042_v59, %v8491_v63  ;;  %v3247_v26 = vpop.f32.mrb[231].mxu0  ;;  %v3649_v36 = vmax.f32 %v3253_v12, 0.0 }
 0x342   : > { %v3248_v18 = vadd.f32 %v8491_v63, %v3247_v26  ;;  %v2668_v43 = vpop.f32.mrb[252].mxu1  ;;  %v3647_v27 = vmax.f32 %v3245_v14, 0.0 }
 0x343   : > { %v3650_v21 = vmax.f32 %v3256_v31, 0.0  ;;  %v2669_v44 = vadd.f32 %v8441_v22, %v2668_v43  ;;  %v2670_v37 = vpop.f32.mrb[253].mxu1  ;;  %7095 = vmatprep.mubr.bf16.mxu0 %v2977_v17 }
 0x344   : > { %v3648_v23 = vmax.f32 %v3248_v18, 0.0  ;;  %v2671_v33 = vpop.f32.mrb[254].mxu1 }
 0x345   : > { %v3758_v25 = vpack.c.bf16 %v3650_v21, %v3649_v36  ;;  %v2672_v0 = vadd.f32 %v8441_v22, %v2671_v33  ;;  %v2673_v34 = vpop.f32.mrb[255].mxu1  ;;  %v2897_v53 = vmax.f32 %v2669_v44, 0.0  ;;  %v8637_v22 = vld [vmem:[%s9176_s4] ss:$0 sm:$0xff] }
 0x346   : > { %v3757_v52 = vpack.c.bf16 %v3648_v23, %v3647_v27 }
 0x347   : > { %v2898_v61 = vmax.f32 %v2672_v0, 0.0 }
 0x348   : > { %7183 = vmatprep.mubr.bf16.mxu1 %v3757_v52 }
 0x349   : > { %v2978_v35 = vpack.c.bf16 %v2898_v61, %v2897_v53  ;;  %7184 = vmatmul.mubr.bf16.gmra.mrb[100].mxu1 %v3758_v25 }
 0x34a   : > { %v2676_v29 = vpop.f32.mrb[0].mxu1 }
 0x34b   : > { %v2677_v40 = vadd.f32 %v8637_v22, %v2676_v29  ;;  %v2678_v55 = vpop.f32.mrb[1].mxu1  ;;  %7096 = vmatmul.mubr.bf16.gmra.mrb[28].mxu0 %v2978_v35 }
 0x34c   : > { %v2679_v39 = vpop.f32.mrb[2].mxu1 }
 0x34d   : > { %v2680_v20 = vadd.f32 %v8637_v22, %v2679_v39  ;;  %v2681_v58 = vpop.f32.mrb[3].mxu1  ;;  %v2899_v42 = vmax.f32 %v2677_v40, 0.0 }
 0x34e   : > { %v7045_v41 = vpop.f32.mrb[232].mxu0 }
 0x34f   : > { %v2900_v48 = vmax.f32 %v2680_v20, 0.0  ;;  %v3269_v19 = vadd.f32 %v7045_v41, %v8491_v63  ;;  %v3260_v5 = vpop.f32.mrb[233].mxu0 }
 0x350   : > { %v3261_v45 = vadd.f32 %v8491_v63, %v3260_v5  ;;  %v7046_v50 = vpop.f32.mrb[234].mxu0 }
 0x351   : > { %v2979_v57 = vpack.c.bf16 %v2900_v48, %v2899_v42  ;;  %v3272_v30 = vadd.f32 %v7046_v50, %v8491_v63  ;;  %v3263_v51 = vpop.f32.mrb[235].mxu0  ;;  %v3653_v54 = vmax.f32 %v3269_v19, 0.0 }
 0x352   : > { %v3264_v32 = vadd.f32 %v8491_v63, %v3263_v51  ;;  %v2684_v10 = vpop.f32.mrb[4].mxu1  ;;  %v3651_v3 = vmax.f32 %v3261_v45, 0.0 }
 0x353   : > { %v3654_v56 = vmax.f32 %v3272_v30, 0.0  ;;  %v2685_v15 = vadd.f32 %v8637_v22, %v2684_v10  ;;  %v2686_v11 = vpop.f32.mrb[5].mxu1  ;;  %7099 = vmatprep.mubr.bf16.mxu0 %v2979_v57 }
 0x354   : > { %v3652_v62 = vmax.f32 %v3264_v32, 0.0  ;;  %v2687_v7 = vpop.f32.mrb[6].mxu1 }
 0x355   : > { %v3760_v6 = vpack.c.bf16 %v3654_v56, %v3653_v54  ;;  %v2688_v49 = vadd.f32 %v8637_v22, %v2687_v7  ;;  %v2689_v4 = vpop.f32.mrb[7].mxu1  ;;  %v2901_v47 = vmax.f32 %v2685_v15, 0.0 }
 0x356   : > { %v3759_v28 = vpack.c.bf16 %v3652_v62, %v3651_v3 }
 0x357   : > { %v2902_v60 = vmax.f32 %v2688_v49, 0.0 }
 0x358   : > { %7187 = vmatprep.mubr.bf16.mxu1 %v3759_v28 }
 0x359   : > { %v2980_v8 = vpack.c.bf16 %v2902_v60, %v2901_v47  ;;  %7188 = vmatmul.mubr.bf16.gmra.mrb[104].mxu1 %v3760_v6 }
 0x35a   : > { %v2692_v46 = vpop.f32.mrb[8].mxu1 }
 0x35b   : > { %v2693_v9 = vadd.f32 %v8637_v22, %v2692_v46  ;;  %v2694_v12 = vpop.f32.mrb[9].mxu1  ;;  %7100 = vmatmul.mubr.bf16.gmra.mrb[32].mxu0 %v2980_v8 }
 0x35c   : > { %v2695_v1 = vpop.f32.mrb[10].mxu1 }
 0x35d   : > { %v2696_v13 = vadd.f32 %v8637_v22, %v2695_v1  ;;  %v2697_v14 = vpop.f32.mrb[11].mxu1  ;;  %v2903_v17 = vmax.f32 %v2693_v9, 0.0 }
 0x35e   : > { %v7049_v59 = vpop.f32.mrb[236].mxu0 }
 0x35f   : > { %v2904_v31 = vmax.f32 %v2696_v13, 0.0  ;;  %v3285_v26 = vadd.f32 %v7049_v59, %v8491_v63  ;;  %v3276_v18 = vpop.f32.mrb[237].mxu0 }
 0x360   : > { %v3277_v43 = vadd.f32 %v8491_v63, %v3276_v18  ;;  %v7050_v36 = vpop.f32.mrb[238].mxu0  ;;  %v8674_v18 = vld [vmem:[%s9178_s6] ss:$0 sm:$0xff] }
 0x361   : > { %v2981_v21 = vpack.c.bf16 %v2904_v31, %v2903_v17  ;;  %v3288_v44 = vadd.f32 %v7050_v36, %v8491_v63  ;;  %v3279_v37 = vpop.f32.mrb[239].mxu0  ;;  %v3657_v23 = vmax.f32 %v3285_v26, 0.0 }
 0x362   : > { %v3280_v24 = vadd.f32 %v8491_v63, %v3279_v37  ;;  %v2700_v27 = vpop.f32.mrb[12].mxu1  ;;  %v3655_v34 = vmax.f32 %v3277_v43, 0.0 }
 0x363   : > { %v3658_v33 = vmax.f32 %v3288_v44, 0.0  ;;  %v2701_v25 = vadd.f32 %v8637_v22, %v2700_v27  ;;  %v2702_v0 = vpop.f32.mrb[13].mxu1  ;;  %7103 = vmatprep.mubr.bf16.mxu0 %v2981_v21 }
 0x364   : > { %v3656_v52 = vmax.f32 %v3280_v24, 0.0  ;;  %v2703_v53 = vpop.f32.mrb[14].mxu1 }
 0x365   : > { %v3762_v61 = vpack.c.bf16 %v3658_v33, %v3657_v23  ;;  %v2704_v2 = vadd.f32 %v8637_v22, %v2703_v53  ;;  %v2705_v35 = vpop.f32.mrb[15].mxu1  ;;  %v2905_v40 = vmax.f32 %v2701_v25, 0.0 }
 0x366   : > { %v3761_v29 = vpack.c.bf16 %v3656_v52, %v3655_v34 }
 0x367   : > { %v2906_v55 = vmax.f32 %v2704_v2, 0.0 }
 0x368   : > { %7191 = vmatprep.mubr.bf16.mxu1 %v3761_v29 }
 0x369   : > { %v2982_v38 = vpack.c.bf16 %v2906_v55, %v2905_v40  ;;  %7192 = vmatmul.mubr.bf16.gmra.mrb[108].mxu1 %v3762_v61 }
 0x36a   : > { %v2708_v39 = vpop.f32.mrb[16].mxu1 }
 0x36b   : > { %v2709_v20 = vadd.f32 %v8637_v22, %v2708_v39  ;;  %v2710_v58 = vpop.f32.mrb[17].mxu1  ;;  %7104 = vmatmul.mubr.bf16.gmra.mrb[36].mxu0 %v2982_v38 }
 0x36c   : > { %v2711_v41 = vpop.f32.mrb[18].mxu1 }
 0x36d   : > { %v2712_v42 = vadd.f32 %v8637_v22, %v2711_v41  ;;  %v2713_v48 = vpop.f32.mrb[19].mxu1  ;;  %v2907_v5 = vmax.f32 %v2709_v20, 0.0 }
 0x36e   : > { %v7053_v19 = vpop.f32.mrb[240].mxu0 }
 0x36f   : > { %v2908_v16 = vmax.f32 %v2712_v42, 0.0  ;;  %v3301_v45 = vadd.f32 %v7053_v19, %v8491_v63  ;;  %v3292_v50 = vpop.f32.mrb[241].mxu0 }
 0x370   : > { %v3293_v57 = vadd.f32 %v8491_v63, %v3292_v50  ;;  %v7054_v30 = vpop.f32.mrb[242].mxu0 }
 0x371   : > { %v2983_v51 = vpack.c.bf16 %v2908_v16, %v2907_v5  ;;  %v3304_v32 = vadd.f32 %v7054_v30, %v8491_v63  ;;  %v3295_v10 = vpop.f32.mrb[243].mxu0  ;;  %v3661_v15 = vmax.f32 %v3301_v45, 0.0 }
 0x372   : > { %v3296_v54 = vadd.f32 %v8491_v63, %v3295_v10  ;;  %v2716_v56 = vpop.f32.mrb[20].mxu1  ;;  %v3659_v7 = vmax.f32 %v3293_v57, 0.0 }
 0x373   : > { %v3662_v11 = vmax.f32 %v3304_v32, 0.0  ;;  %v2717_v3 = vadd.f32 %v8637_v22, %v2716_v56  ;;  %v2718_v62 = vpop.f32.mrb[21].mxu1  ;;  %7107 = vmatprep.mubr.bf16.mxu0 %v2983_v51 }
 0x374   : > { %v3660_v6 = vmax.f32 %v3296_v54, 0.0  ;;  %v2719_v49 = vpop.f32.mrb[22].mxu1 }
 0x375   : > { %v3764_v4 = vpack.c.bf16 %v3662_v11, %v3661_v15  ;;  %v2720_v28 = vadd.f32 %v8637_v22, %v2719_v49  ;;  %v2721_v47 = vpop.f32.mrb[23].mxu1  ;;  %v2909_v8 = vmax.f32 %v2717_v3, 0.0 }
 0x376   : > { %v3763_v60 = vpack.c.bf16 %v3660_v6, %v3659_v7 }
 0x377   : > { %v2910_v46 = vmax.f32 %v2720_v28, 0.0 }
 0x378   : > { %7195 = vmatprep.mubr.bf16.mxu1 %v3763_v60 }
 0x379   : > { %v2984_v9 = vpack.c.bf16 %v2910_v46, %v2909_v8  ;;  %7196 = vmatmul.mubr.bf16.gmra.mrb[112].mxu1 %v3764_v4 }
 0x37a   : > { %v2724_v63 = vpop.f32.mrb[24].mxu1 }
 0x37b   : > { %v2725_v12 = vadd.f32 %v8637_v22, %v2724_v63  ;;  %v2726_v1 = vpop.f32.mrb[25].mxu1  ;;  %7108 = vmatmul.mubr.bf16.gmra.mrb[40].mxu0 %v2984_v9 }
 0x37c   : > { %v2727_v13 = vpop.f32.mrb[26].mxu1 }
 0x37d   : > { %v2728_v14 = vadd.f32 %v8637_v22, %v2727_v13  ;;  %v2729_v59 = vpop.f32.mrb[27].mxu1  ;;  %v2911_v31 = vmax.f32 %v2725_v12, 0.0 }
 0x37e   : > { %v7057_v17 = vpop.f32.mrb[244].mxu0 }
 0x37f   : > { %v2912_v26 = vmax.f32 %v2728_v14, 0.0  ;;  %v3317_v43 = vadd.f32 %v8674_v18, %v7057_v17  ;;  %v3308_v36 = vpop.f32.mrb[245].mxu0 }
 0x380   : > { %v3309_v21 = vadd.f32 %v8674_v18, %v3308_v36  ;;  %v7058_v44 = vpop.f32.mrb[246].mxu0 }
 0x381   : > { %v2985_v37 = vpack.c.bf16 %v2912_v26, %v2911_v31  ;;  %v3320_v24 = vadd.f32 %v8674_v18, %v7058_v44  ;;  %v3311_v27 = vpop.f32.mrb[247].mxu0  ;;  %v3665_v25 = vmax.f32 %v3317_v43, 0.0 }
 0x382   : > { %v3312_v23 = vadd.f32 %v8674_v18, %v3311_v27  ;;  %v2732_v33 = vpop.f32.mrb[28].mxu1  ;;  %v3663_v53 = vmax.f32 %v3309_v21, 0.0 }
 0x383   : > { %v3666_v0 = vmax.f32 %v3320_v24, 0.0  ;;  %v2733_v34 = vadd.f32 %v8637_v22, %v2732_v33  ;;  %v2734_v52 = vpop.f32.mrb[29].mxu1  ;;  %7111 = vmatprep.mubr.bf16.mxu0 %v2985_v37 }
 0x384   : > { %v3664_v61 = vmax.f32 %v3312_v23, 0.0  ;;  %v2735_v2 = vpop.f32.mrb[30].mxu1 }
 0x385   : > { %v3766_v35 = vpack.c.bf16 %v3666_v0, %v3665_v25  ;;  %v2736_v29 = vadd.f32 %v8637_v22, %v2735_v2  ;;  %v2737_v40 = vpop.f32.mrb[31].mxu1  ;;  %v2913_v38 = vmax.f32 %v2733_v34, 0.0 }
 0x386   : > { %v3765_v55 = vpack.c.bf16 %v3664_v61, %v3663_v53 }
 0x387   : > { %v2914_v39 = vmax.f32 %v2736_v29, 0.0 }
 0x388   : > { %7199 = vmatprep.mubr.bf16.mxu1 %v3765_v55 }
 0x389   : > { %v2986_v20 = vpack.c.bf16 %v2914_v39, %v2913_v38  ;;  %7200 = vmatmul.mubr.bf16.gmra.mrb[116].mxu1 %v3766_v35 }
 0x38a   : > { %v2740_v58 = vpop.f32.mrb[32].mxu1 }
 0x38b   : > { %v2741_v41 = vadd.f32 %v8637_v22, %v2740_v58  ;;  %v2742_v42 = vpop.f32.mrb[33].mxu1  ;;  %7112 = vmatmul.mubr.bf16.gmra.mrb[44].mxu0 %v2986_v20 }
 0x38c   : > { %v2743_v48 = vpop.f32.mrb[34].mxu1 }
 0x38d   : > { %v2744_v19 = vadd.f32 %v8637_v22, %v2743_v48  ;;  %v2745_v5 = vpop.f32.mrb[35].mxu1  ;;  %v2915_v45 = vmax.f32 %v2741_v41, 0.0 }
 0x38e   : > { %v7061_v16 = vpop.f32.mrb[248].mxu0 }
 0x38f   : > { %v2916_v50 = vmax.f32 %v2744_v19, 0.0  ;;  %v3333_v57 = vadd.f32 %v8674_v18, %v7061_v16  ;;  %v3324_v30 = vpop.f32.mrb[249].mxu0 }
 0x390   : > { %v3325_v51 = vadd.f32 %v8674_v18, %v3324_v30  ;;  %v7062_v32 = vpop.f32.mrb[250].mxu0 }
 0x391   : > { %v2987_v10 = vpack.c.bf16 %v2916_v50, %v2915_v45  ;;  %v3336_v54 = vadd.f32 %v8674_v18, %v7062_v32  ;;  %v3327_v56 = vpop.f32.mrb[251].mxu0  ;;  %v3669_v3 = vmax.f32 %v3333_v57, 0.0 }
 0x392   : > { %v3328_v15 = vadd.f32 %v8674_v18, %v3327_v56  ;;  %v2748_v11 = vpop.f32.mrb[36].mxu1  ;;  %v3667_v49 = vmax.f32 %v3325_v51, 0.0 }
 0x393   : > { %v3670_v62 = vmax.f32 %v3336_v54, 0.0  ;;  %v2749_v7 = vadd.f32 %v8637_v22, %v2748_v11  ;;  %v2750_v6 = vpop.f32.mrb[37].mxu1  ;;  %7115 = vmatprep.mubr.bf16.mxu0 %v2987_v10 }
 0x394   : > { %v3668_v4 = vmax.f32 %v3328_v15, 0.0  ;;  %v2751_v28 = vpop.f32.mrb[38].mxu1 }
 0x395   : > { %v3768_v47 = vpack.c.bf16 %v3670_v62, %v3669_v3  ;;  %v2752_v60 = vadd.f32 %v8637_v22, %v2751_v28  ;;  %v2753_v8 = vpop.f32.mrb[39].mxu1  ;;  %v2917_v9 = vmax.f32 %v2749_v7, 0.0 }
 0x396   : > { %v3767_v46 = vpack.c.bf16 %v3668_v4, %v3667_v49 }
 0x397   : > { %v2918_v63 = vmax.f32 %v2752_v60, 0.0 }
 0x398   : > { %7203 = vmatprep.mubr.bf16.mxu1 %v3767_v46 }
 0x399   : > { %v2988_v12 = vpack.c.bf16 %v2918_v63, %v2917_v9  ;;  %7204 = vmatmul.mubr.bf16.gmra.mrb[120].mxu1 %v3768_v47 }
 0x39a   : > { %v2756_v1 = vpop.f32.mrb[40].mxu1 }
 0x39b   : > { %v2757_v13 = vadd.f32 %v8637_v22, %v2756_v1  ;;  %v2758_v14 = vpop.f32.mrb[41].mxu1  ;;  %7116 = vmatmul.mubr.bf16.gmra.mrb[48].mxu0 %v2988_v12 }
 0x39c   : > { %v2759_v59 = vpop.f32.mrb[42].mxu1 }
 0x39d   : > { %v2760_v17 = vadd.f32 %v8637_v22, %v2759_v59  ;;  %v2761_v31 = vpop.f32.mrb[43].mxu1  ;;  %v2919_v43 = vmax.f32 %v2757_v13, 0.0 }
 0x39e   : > { %v7065_v26 = vpop.f32.mrb[252].mxu0 }
 0x39f   : > { %v2920_v36 = vmax.f32 %v2760_v17, 0.0  ;;  %v3349_v21 = vadd.f32 %v8674_v18, %v7065_v26  ;;  %v3340_v44 = vpop.f32.mrb[253].mxu0 }
 0x3a0   : > { %v3341_v37 = vadd.f32 %v8674_v18, %v3340_v44  ;;  %v7066_v24 = vpop.f32.mrb[254].mxu0 }
 0x3a1   : > { %v2989_v27 = vpack.c.bf16 %v2920_v36, %v2919_v43  ;;  %v3352_v23 = vadd.f32 %v8674_v18, %v7066_v24  ;;  %v3343_v33 = vpop.f32.mrb[255].mxu0  ;;  %v3673_v34 = vmax.f32 %v3349_v21, 0.0 }
 0x3a2   : > { %v3344_v25 = vadd.f32 %v8674_v18, %v3343_v33  ;;  %v2764_v0 = vpop.f32.mrb[44].mxu1  ;;  %v3671_v2 = vmax.f32 %v3341_v37, 0.0 }
 0x3a3   : > { %v3674_v52 = vmax.f32 %v3352_v23, 0.0  ;;  %v2765_v53 = vadd.f32 %v8637_v22, %v2764_v0  ;;  %v2766_v61 = vpop.f32.mrb[45].mxu1  ;;  %7119 = vmatprep.mubr.bf16.mxu0 %v2989_v27 }
 0x3a4   : > { %v3672_v35 = vmax.f32 %v3344_v25, 0.0  ;;  %v2767_v29 = vpop.f32.mrb[46].mxu1 }
 0x3a5   : > { %v3770_v40 = vpack.c.bf16 %v3674_v52, %v3673_v34  ;;  %v2768_v55 = vadd.f32 %v8637_v22, %v2767_v29  ;;  %v2769_v38 = vpop.f32.mrb[47].mxu1  ;;  %v2921_v20 = vmax.f32 %v2765_v53, 0.0 }
 0x3a6   : > { %v3769_v39 = vpack.c.bf16 %v3672_v35, %v3671_v2 }
 0x3a7   : > { %v2922_v58 = vmax.f32 %v2768_v55, 0.0 }
 0x3a8   : > { %7207 = vmatprep.mubr.bf16.mxu1 %v3769_v39 }
 0x3a9   : > { %v2990_v41 = vpack.c.bf16 %v2922_v58, %v2921_v20  ;;  %7208 = vmatmul.mubr.bf16.gmra.mrb[124].mxu1 %v3770_v40 }
 0x3aa   : > { %v2772_v42 = vpop.f32.mrb[48].mxu1 }
 0x3ab   : > { %v2773_v48 = vadd.f32 %v8637_v22, %v2772_v42  ;;  %v2774_v19 = vpop.f32.mrb[49].mxu1  ;;  %7120 = vmatmul.mubr.bf16.gmra.mrb[52].mxu0 %v2990_v41 }
 0x3ac   : > { %v2775_v5 = vpop.f32.mrb[50].mxu1 }
 0x3ad   : > { %v2776_v16 = vadd.f32 %v8637_v22, %v2775_v5  ;;  %v2777_v45 = vpop.f32.mrb[51].mxu1  ;;  %v2923_v57 = vmax.f32 %v2773_v48, 0.0  ;;  %v8717_v48 = vld [vmem:[%s9180_s8] ss:$0 sm:$0xff] }
 0x3ae   : > { %v7069_v50 = vpop.f32.mrb[0].mxu0 }
 0x3af   : > { %v2924_v30 = vmax.f32 %v2776_v16, 0.0  ;;  %v3365_v51 = vadd.f32 %v8674_v18, %v7069_v50  ;;  %v3356_v32 = vpop.f32.mrb[1].mxu0 }
 0x3b0   : > { %v3357_v10 = vadd.f32 %v8674_v18, %v3356_v32  ;;  %v7070_v54 = vpop.f32.mrb[2].mxu0 }
 0x3b1   : > { %v2991_v56 = vpack.c.bf16 %v2924_v30, %v2923_v57  ;;  %v3368_v15 = vadd.f32 %v8674_v18, %v7070_v54  ;;  %v3359_v11 = vpop.f32.mrb[3].mxu0  ;;  %v3677_v7 = vmax.f32 %v3365_v51, 0.0 }
 0x3b2   : > { %v3360_v3 = vadd.f32 %v8674_v18, %v3359_v11  ;;  %v2780_v62 = vpop.f32.mrb[52].mxu1  ;;  %v3675_v28 = vmax.f32 %v3357_v10, 0.0 }
 0x3b3   : > { %v3678_v6 = vmax.f32 %v3368_v15, 0.0  ;;  %v2781_v49 = vadd.f32 %v8637_v22, %v2780_v62  ;;  %v2782_v4 = vpop.f32.mrb[53].mxu1  ;;  %7123 = vmatprep.mubr.bf16.mxu0 %v2991_v56 }
 0x3b4   : > { %v3676_v47 = vmax.f32 %v3360_v3, 0.0  ;;  %v2783_v60 = vpop.f32.mrb[54].mxu1 }
 0x3b5   : > { %v3772_v8 = vpack.c.bf16 %v3678_v6, %v3677_v7  ;;  %v2784_v46 = vadd.f32 %v8637_v22, %v2783_v60  ;;  %v2785_v9 = vpop.f32.mrb[55].mxu1  ;;  %v2925_v12 = vmax.f32 %v2781_v49, 0.0 }
 0x3b6   : > { %v3771_v63 = vpack.c.bf16 %v3676_v47, %v3675_v28 }
 0x3b7   : > { %v2926_v1 = vmax.f32 %v2784_v46, 0.0 }
 0x3b8   : > { %7211 = vmatprep.mubr.bf16.mxu1 %v3771_v63 }
 0x3b9   : > { %v2992_v13 = vpack.c.bf16 %v2926_v1, %v2925_v12  ;;  %7212 = vmatmul.mubr.bf16.gmra.mrb[128].mxu1 %v3772_v8 }
 0x3ba   : > { %v2788_v14 = vpop.f32.mrb[56].mxu1 }
 0x3bb   : > { %v2789_v59 = vadd.f32 %v8637_v22, %v2788_v14  ;;  %v2790_v17 = vpop.f32.mrb[57].mxu1  ;;  %7124 = vmatmul.mubr.bf16.gmra.mrb[56].mxu0 %v2992_v13 }
 0x3bc   : > { %v2791_v31 = vpop.f32.mrb[58].mxu1 }
 0x3bd   : > { %v2792_v26 = vadd.f32 %v8637_v22, %v2791_v31  ;;  %v2793_v43 = vpop.f32.mrb[59].mxu1  ;;  %v2927_v21 = vmax.f32 %v2789_v59, 0.0 }
 0x3be   : > { %v7073_v36 = vpop.f32.mrb[4].mxu0 }
 0x3bf   : > { %v2928_v44 = vmax.f32 %v2792_v26, 0.0  ;;  %v3381_v37 = vadd.f32 %v8674_v18, %v7073_v36  ;;  %v3372_v24 = vpop.f32.mrb[5].mxu0 }
 0x3c0   : > { %v3373_v27 = vadd.f32 %v8674_v18, %v3372_v24  ;;  %v7074_v23 = vpop.f32.mrb[6].mxu0 }
 0x3c1   : > { %v2993_v33 = vpack.c.bf16 %v2928_v44, %v2927_v21  ;;  %v3384_v25 = vadd.f32 %v8674_v18, %v7074_v23  ;;  %v3375_v0 = vpop.f32.mrb[7].mxu0  ;;  %v3681_v53 = vmax.f32 %v3381_v37, 0.0 }
 0x3c2   : > { %v3376_v34 = vadd.f32 %v8674_v18, %v3375_v0  ;;  %v2796_v52 = vpop.f32.mrb[60].mxu1  ;;  %v3679_v29 = vmax.f32 %v3373_v27, 0.0 }
 0x3c3   : > { %v3682_v61 = vmax.f32 %v3384_v25, 0.0  ;;  %v2797_v2 = vadd.f32 %v8637_v22, %v2796_v52  ;;  %v2798_v35 = vpop.f32.mrb[61].mxu1  ;;  %7127 = vmatprep.mubr.bf16.mxu0 %v2993_v33 }
 0x3c4   : > { %v3680_v40 = vmax.f32 %v3376_v34, 0.0  ;;  %v2799_v55 = vpop.f32.mrb[62].mxu1 }
 0x3c5   : > { %v3774_v38 = vpack.c.bf16 %v3682_v61, %v3681_v53  ;;  %v2800_v39 = vadd.f32 %v8637_v22, %v2799_v55  ;;  %v2801_v20 = vpop.f32.mrb[63].mxu1  ;;  %v2929_v41 = vmax.f32 %v2797_v2, 0.0 }
 0x3c6   : > { %v3773_v58 = vpack.c.bf16 %v3680_v40, %v3679_v29 }
 0x3c7   : > { %v2930_v42 = vmax.f32 %v2800_v39, 0.0 }
 0x3c8   : > { %7215 = vmatprep.mubr.bf16.mxu1 %v3773_v58 }
 0x3c9   : > { %v2994_v19 = vpack.c.bf16 %v2930_v42, %v2929_v41  ;;  %7216 = vmatmul.mubr.bf16.gmra.mrb[132].mxu1 %v3774_v38 }
 0x3ca   : > { %v7149_v5 = vpop.f32.mrb[64].mxu1 }
 0x3cb   : > { %v3917_v16 = vadd.f32 %v7149_v5, %v8717_v48  ;;  %7128 = vmatmul.mubr.bf16.gmra.mrb[60].mxu0 %v2994_v19  ;;  %v3908_v45 = vpop.f32.mrb[65].mxu1 }
 0x3cc   : > { %v3909_v50 = vadd.f32 %v8717_v48, %v3908_v45  ;;  %v7150_v22 = vpop.f32.mrb[66].mxu1 }
 0x3cd   : > { %v3920_v57 = vadd.f32 %v7150_v22, %v8717_v48  ;;  %v3911_v30 = vpop.f32.mrb[67].mxu1  ;;  %v4421_v10 = vmax.f32 %v3917_v16, 0.0 }
 0x3ce   : > { %v3912_v51 = vadd.f32 %v8717_v48, %v3911_v30  ;;  %v7077_v32 = vpop.f32.mrb[8].mxu0  ;;  %v4419_v11 = vmax.f32 %v3909_v50, 0.0 }
 0x3cf   : > { %v4422_v54 = vmax.f32 %v3920_v57, 0.0  ;;  %v3397_v56 = vadd.f32 %v8674_v18, %v7077_v32  ;;  %v3388_v15 = vpop.f32.mrb[9].mxu0 }
 0x3d0   : > { %v4420_v3 = vmax.f32 %v3912_v51, 0.0  ;;  %v3389_v62 = vadd.f32 %v8674_v18, %v3388_v15  ;;  %v7078_v7 = vpop.f32.mrb[10].mxu0 }
 0x3d1   : > { %v4548_v6 = vpack.c.bf16 %v4422_v54, %v4421_v10  ;;  %v3400_v49 = vadd.f32 %v8674_v18, %v7078_v7  ;;  %v3391_v4 = vpop.f32.mrb[11].mxu0  ;;  %v3685_v8 = vmax.f32 %v3397_v56, 0.0 }
 0x3d2   : > { %v4547_v28 = vpack.c.bf16 %v4420_v3, %v4419_v11  ;;  %v3392_v47 = vadd.f32 %v8674_v18, %v3391_v4  ;;  %v7153_v60 = vpop.f32.mrb[68].mxu1  ;;  %v3683_v12 = vmax.f32 %v3389_v62, 0.0 }
 0x3d3   : > { %v3686_v46 = vmax.f32 %v3400_v49, 0.0  ;;  %v3933_v9 = vadd.f32 %v7153_v60, %v8717_v48  ;;  %v3924_v63 = vpop.f32.mrb[69].mxu1 }
 0x3d4   : > { %v3684_v1 = vmax.f32 %v3392_v47, 0.0  ;;  %v3925_v13 = vadd.f32 %v8717_v48, %v3924_v63  ;;  %v7154_v14 = vpop.f32.mrb[70].mxu1  ;;  %7291 = vmatprep.mubr.bf16.mxu0 %v4547_v28 }
 0x3d5   : > { %v3776_v59 = vpack.c.bf16 %v3686_v46, %v3685_v8  ;;  %v3936_v17 = vadd.f32 %v7154_v14, %v8717_v48  ;;  %v3927_v31 = vpop.f32.mrb[71].mxu1  ;;  %7292 = vmatmul.mubr.bf16.vlgmr.msra.gmra.mrb[64].mxu0 %v4548_v6  ;;  %v4425_v36 = vmax.f32 %v3933_v9, 0.0 }
 0x3d6   : > { %v3775_v26 = vpack.c.bf16 %v3684_v1, %v3683_v12  ;;  %v3928_v43 = vadd.f32 %v8717_v48, %v3927_v31  ;;  %v4423_v44 = vmax.f32 %v3925_v13, 0.0 }
 0x3d7   : > { %v4426_v21 = vmax.f32 %v3936_v17, 0.0 }
 0x3d8   : > { %v4424_v37 = vmax.f32 %v3928_v43, 0.0  ;;  %7219 = vmatprep.mubr.bf16.mxu1 %v3775_v26 }
 0x3d9   : > { %v4550_v24 = vpack.c.bf16 %v4426_v21, %v4425_v36  ;;  %7220 = vmatmul.mubr.bf16.gmra.mrb[136].mxu1 %v3776_v59 }
 0x3da   : > { %v4549_v27 = vpack.c.bf16 %v4424_v37, %v4423_v44  ;;  %v7157_v23 = vpop.f32.mrb[72].mxu1 }
 0x3db   : > { %v3949_v33 = vadd.f32 %v7157_v23, %v8717_v48  ;;  %v3940_v25 = vpop.f32.mrb[73].mxu1 }
 0x3dc   : > { %v3941_v0 = vadd.f32 %v8717_v48, %v3940_v25  ;;  %v7158_v34 = vpop.f32.mrb[74].mxu1  ;;  %7295 = vmatprep.mubr.bf16.mxu0 %v4549_v27 }
 0x3dd   : > { %v3952_v52 = vadd.f32 %v7158_v34, %v8717_v48  ;;  %v3943_v53 = vpop.f32.mrb[75].mxu1  ;;  %7296 = vmatmul.mubr.bf16.gmra.mrb[68].mxu0 %v4550_v24  ;;  %v4429_v35 = vmax.f32 %v3949_v33, 0.0 }
 0x3de   : > { %v3944_v61 = vadd.f32 %v8717_v48, %v3943_v53  ;;  %v7081_v2 = vpop.f32.mrb[12].mxu0  ;;  %v4427_v38 = vmax.f32 %v3941_v0, 0.0 }
 0x3df   : > { %v4430_v29 = vmax.f32 %v3952_v52, 0.0  ;;  %v3413_v40 = vadd.f32 %v8674_v18, %v7081_v2  ;;  %v3404_v55 = vpop.f32.mrb[13].mxu0 }
 0x3e0   : > { %v4428_v39 = vmax.f32 %v3944_v61, 0.0  ;;  %v3405_v20 = vadd.f32 %v8674_v18, %v3404_v55  ;;  %v7082_v58 = vpop.f32.mrb[14].mxu0 }
 0x3e1   : > { %v4552_v41 = vpack.c.bf16 %v4430_v29, %v4429_v35  ;;  %v3416_v42 = vadd.f32 %v8674_v18, %v7082_v58  ;;  %v3407_v19 = vpop.f32.mrb[15].mxu0  ;;  %v3689_v50 = vmax.f32 %v3413_v40, 0.0 }
 0x3e2   : > { %v4551_v5 = vpack.c.bf16 %v4428_v39, %v4427_v38  ;;  %v3408_v16 = vadd.f32 %v8674_v18, %v3407_v19  ;;  %v7161_v45 = vpop.f32.mrb[76].mxu1  ;;  %v3687_v51 = vmax.f32 %v3405_v20, 0.0 }
 0x3e3   : > { %v3690_v22 = vmax.f32 %v3416_v42, 0.0  ;;  %v3965_v57 = vadd.f32 %v7161_v45, %v8717_v48  ;;  %v3956_v30 = vpop.f32.mrb[77].mxu1 }
 0x3e4   : > { %v3688_v32 = vmax.f32 %v3408_v16, 0.0  ;;  %v3957_v10 = vadd.f32 %v8717_v48, %v3956_v30  ;;  %v7162_v54 = vpop.f32.mrb[78].mxu1  ;;  %7299 = vmatprep.mubr.bf16.mxu0 %v4551_v5 }
 0x3e5   : > { %v3778_v56 = vpack.c.bf16 %v3690_v22, %v3689_v50  ;;  %v3968_v15 = vadd.f32 %v7162_v54, %v8717_v48  ;;  %v3959_v11 = vpop.f32.mrb[79].mxu1  ;;  %7300 = vmatmul.mubr.bf16.gmra.mrb[72].mxu0 %v4552_v41  ;;  %v4433_v7 = vmax.f32 %v3965_v57, 0.0 }
 0x3e6   : > { %v3777_v3 = vpack.c.bf16 %v3688_v32, %v3687_v51  ;;  %v3960_v62 = vadd.f32 %v8717_v48, %v3959_v11  ;;  %v4431_v49 = vmax.f32 %v3957_v10, 0.0 }
 0x3e7   : > { %v4434_v6 = vmax.f32 %v3968_v15, 0.0 }
 0x3e8   : > { %v4432_v4 = vmax.f32 %v3960_v62, 0.0  ;;  %7223 = vmatprep.mubr.bf16.mxu1 %v3777_v3 }
 0x3e9   : > { %v4554_v28 = vpack.c.bf16 %v4434_v6, %v4433_v7  ;;  %7224 = vmatmul.mubr.bf16.gmra.mrb[140].mxu1 %v3778_v56 }
 0x3ea   : > { %v4553_v47 = vpack.c.bf16 %v4432_v4, %v4431_v49  ;;  %v7165_v60 = vpop.f32.mrb[80].mxu1 }
 0x3eb   : > { %v3981_v8 = vadd.f32 %v7165_v60, %v8717_v48  ;;  %v3972_v46 = vpop.f32.mrb[81].mxu1 }
 0x3ec   : > { %v3973_v9 = vadd.f32 %v8717_v48, %v3972_v46  ;;  %v7166_v63 = vpop.f32.mrb[82].mxu1  ;;  %7303 = vmatprep.mubr.bf16.mxu0 %v4553_v47 }
 0x3ed   : > { %v3984_v12 = vadd.f32 %v7166_v63, %v8717_v48  ;;  %v3975_v1 = vpop.f32.mrb[83].mxu1  ;;  %7304 = vmatmul.mubr.bf16.gmra.mrb[76].mxu0 %v4554_v28  ;;  %v4437_v59 = vmax.f32 %v3981_v8, 0.0 }
 0x3ee   : > { %v3976_v13 = vadd.f32 %v8717_v48, %v3975_v1  ;;  %v7085_v14 = vpop.f32.mrb[16].mxu0  ;;  %v4435_v43 = vmax.f32 %v3973_v9, 0.0 }
 0x3ef   : > { %v4438_v17 = vmax.f32 %v3984_v12, 0.0  ;;  %v3429_v31 = vadd.f32 %v8674_v18, %v7085_v14  ;;  %v3420_v26 = vpop.f32.mrb[17].mxu0 }
 0x3f0   : > { %v4436_v36 = vmax.f32 %v3976_v13, 0.0  ;;  %v3421_v21 = vadd.f32 %v8674_v18, %v3420_v26  ;;  %v7086_v44 = vpop.f32.mrb[18].mxu0 }
 0x3f1   : > { %v4556_v37 = vpack.c.bf16 %v4438_v17, %v4437_v59  ;;  %v3432_v24 = vadd.f32 %v8674_v18, %v7086_v44  ;;  %v3423_v27 = vpop.f32.mrb[19].mxu0  ;;  %v3693_v0 = vmax.f32 %v3429_v31, 0.0 }
 0x3f2   : > { %v4555_v23 = vpack.c.bf16 %v4436_v36, %v4435_v43  ;;  %v3424_v33 = vadd.f32 %v8674_v18, %v3423_v27  ;;  %v7169_v25 = vpop.f32.mrb[84].mxu1  ;;  %v3691_v61 = vmax.f32 %v3421_v21, 0.0 }
 0x3f3   : > { %v3694_v34 = vmax.f32 %v3432_v24, 0.0  ;;  %v3997_v52 = vadd.f32 %v7169_v25, %v8717_v48  ;;  %v3988_v53 = vpop.f32.mrb[85].mxu1 }
 0x3f4   : > { %v3692_v2 = vmax.f32 %v3424_v33, 0.0  ;;  %v3989_v35 = vadd.f32 %v8717_v48, %v3988_v53  ;;  %v7170_v29 = vpop.f32.mrb[86].mxu1  ;;  %7307 = vmatprep.mubr.bf16.mxu0 %v4555_v23 }
 0x3f5   : > { %v3780_v40 = vpack.c.bf16 %v3694_v34, %v3693_v0  ;;  %v4000_v55 = vadd.f32 %v7170_v29, %v8717_v48  ;;  %v3991_v38 = vpop.f32.mrb[87].mxu1  ;;  %7308 = vmatmul.mubr.bf16.gmra.mrb[80].mxu0 %v4556_v37  ;;  %v4441_v58 = vmax.f32 %v3997_v52, 0.0 }
 0x3f6   : > { %v3779_v39 = vpack.c.bf16 %v3692_v2, %v3691_v61  ;;  %v3992_v20 = vadd.f32 %v8717_v48, %v3991_v38  ;;  %v4439_v42 = vmax.f32 %v3989_v35, 0.0 }
 0x3f7   : > { %v4442_v41 = vmax.f32 %v4000_v55, 0.0 }
 0x3f8   : > { %v4440_v19 = vmax.f32 %v3992_v20, 0.0  ;;  %7227 = vmatprep.mubr.bf16.mxu1 %v3779_v39 }
 0x3f9   : > { %v4558_v5 = vpack.c.bf16 %v4442_v41, %v4441_v58  ;;  %7228 = vmatmul.mubr.bf16.gmra.mrb[144].mxu1 %v3780_v40 }
 0x3fa   : > { %v4557_v16 = vpack.c.bf16 %v4440_v19, %v4439_v42  ;;  %v7173_v45 = vpop.f32.mrb[88].mxu1 }
 0x3fb   : > { %v4013_v50 = vadd.f32 %v7173_v45, %v8717_v48  ;;  %v4004_v22 = vpop.f32.mrb[89].mxu1 }
 0x3fc   : > { %v4005_v57 = vadd.f32 %v8717_v48, %v4004_v22  ;;  %v7174_v30 = vpop.f32.mrb[90].mxu1  ;;  %7311 = vmatprep.mubr.bf16.mxu0 %v4557_v16 }
 0x3fd   : > { %v4016_v51 = vadd.f32 %v7174_v30, %v8717_v48  ;;  %v4007_v32 = vpop.f32.mrb[91].mxu1  ;;  %7312 = vmatmul.mubr.bf16.gmra.mrb[84].mxu0 %v4558_v5  ;;  %v4445_v56 = vmax.f32 %v4013_v50, 0.0 }
 0x3fe   : > { %v4008_v10 = vadd.f32 %v8717_v48, %v4007_v32  ;;  %v7089_v54 = vpop.f32.mrb[20].mxu0  ;;  %v4443_v62 = vmax.f32 %v4005_v57, 0.0 }
 0x3ff   : > { %v4446_v15 = vmax.f32 %v4016_v51, 0.0  ;;  %v3445_v11 = vadd.f32 %v8674_v18, %v7089_v54  ;;  %v3436_v3 = vpop.f32.mrb[21].mxu0 }
 0x400   : > { %v4444_v7 = vmax.f32 %v4008_v10, 0.0  ;;  %v3437_v6 = vadd.f32 %v8674_v18, %v3436_v3  ;;  %v7090_v49 = vpop.f32.mrb[22].mxu0 }
 0x401   : > { %v4560_v4 = vpack.c.bf16 %v4446_v15, %v4445_v56  ;;  %v3448_v28 = vadd.f32 %v8674_v18, %v7090_v49  ;;  %v3439_v47 = vpop.f32.mrb[23].mxu0  ;;  %v3697_v9 = vmax.f32 %v3445_v11, 0.0 }
 0x402   : > { %v4559_v60 = vpack.c.bf16 %v4444_v7, %v4443_v62  ;;  %v3440_v8 = vadd.f32 %v8674_v18, %v3439_v47  ;;  %v7177_v46 = vpop.f32.mrb[92].mxu1  ;;  %v3695_v13 = vmax.f32 %v3437_v6, 0.0 }
 0x403   : > { %v3698_v63 = vmax.f32 %v3448_v28, 0.0  ;;  %v4029_v12 = vadd.f32 %v7177_v46, %v8717_v48  ;;  %v4020_v1 = vpop.f32.mrb[93].mxu1 }
 0x404   : > { %v3696_v14 = vmax.f32 %v3440_v8, 0.0  ;;  %v4021_v59 = vadd.f32 %v8717_v48, %v4020_v1  ;;  %v7178_v17 = vpop.f32.mrb[94].mxu1  ;;  %7315 = vmatprep.mubr.bf16.mxu0 %v4559_v60 }
 0x405   : > { %v3782_v31 = vpack.c.bf16 %v3698_v63, %v3697_v9  ;;  %v4032_v26 = vadd.f32 %v7178_v17, %v8717_v48  ;;  %v4023_v43 = vpop.f32.mrb[95].mxu1  ;;  %7316 = vmatmul.mubr.bf16.gmra.mrb[88].mxu0 %v4560_v4  ;;  %v4449_v44 = vmax.f32 %v4029_v12, 0.0 }
 0x406   : > { %v3781_v36 = vpack.c.bf16 %v3696_v14, %v3695_v13  ;;  %v4024_v21 = vadd.f32 %v8717_v48, %v4023_v43  ;;  %v4447_v24 = vmax.f32 %v4021_v59, 0.0 }
 0x407   : > { %v4450_v37 = vmax.f32 %v4032_v26, 0.0 }
 0x408   : > { %v4448_v27 = vmax.f32 %v4024_v21, 0.0  ;;  %7231 = vmatprep.mubr.bf16.mxu1 %v3781_v36 }
 0x409   : > { %v4562_v23 = vpack.c.bf16 %v4450_v37, %v4449_v44  ;;  %7232 = vmatmul.mubr.bf16.gmra.mrb[148].mxu1 %v3782_v31 }
 0x40a   : > { %v4561_v33 = vpack.c.bf16 %v4448_v27, %v4447_v24 }
 0x40c   : > { %v7181_v25 = vpop.f32.mrb[96].mxu1  ;;  %7319 = vmatprep.mubr.bf16.mxu0 %v4561_v33 }
 0x40d   : > { %v4045_v0 = vadd.f32 %v7181_v25, %v8717_v48  ;;  %v4036_v34 = vpop.f32.mrb[97].mxu1  ;;  %7320 = vmatmul.mubr.bf16.gmra.mrb[92].mxu0 %v4562_v23 }
 0x40e   : > { %v4037_v52 = vadd.f32 %v8717_v48, %v4036_v34  ;;  %v7093_v53 = vpop.f32.mrb[24].mxu0  ;;  %v7182_v61 = vpop.f32.mrb[98].mxu1 }
 0x40f   : > { %v3461_v2 = vadd.f32 %v8674_v18, %v7093_v53  ;;  %v4048_v35 = vadd.f32 %v7182_v61, %v8717_v48  ;;  %v3452_v29 = vpop.f32.mrb[25].mxu0  ;;  %v4039_v40 = vpop.f32.mrb[99].mxu1  ;;  %v4453_v20 = vmax.f32 %v4045_v0, 0.0 }
 0x410   : > { %v3453_v55 = vadd.f32 %v8674_v18, %v3452_v29  ;;  %v4040_v38 = vadd.f32 %v8717_v48, %v4039_v40  ;;  %v7094_v39 = vpop.f32.mrb[26].mxu0  ;;  %v4451_v19 = vmax.f32 %v4037_v52, 0.0 }
 0x411   : > { %v4454_v58 = vmax.f32 %v4048_v35, 0.0  ;;  %v3464_v41 = vadd.f32 %v8674_v18, %v7094_v39  ;;  %v3455_v42 = vpop.f32.mrb[27].mxu0  ;;  %v3701_v45 = vmax.f32 %v3461_v2, 0.0 }
 0x412   : > { %v4452_v5 = vmax.f32 %v4040_v38, 0.0  ;;  %v3456_v16 = vadd.f32 %v8674_v18, %v3455_v42  ;;  %v3699_v57 = vmax.f32 %v3453_v55, 0.0 }
 0x413   : > { %v4564_v50 = vpack.c.bf16 %v4454_v58, %v4453_v20  ;;  %v3702_v22 = vmax.f32 %v3464_v41, 0.0 }
 0x414   : > { %v4563_v30 = vpack.c.bf16 %v4452_v5, %v4451_v19  ;;  %v3700_v51 = vmax.f32 %v3456_v16, 0.0 }
 0x415   : > { %v3784_v32 = vpack.c.bf16 %v3702_v22, %v3701_v45 }
 0x416   : > { %v3783_v10 = vpack.c.bf16 %v3700_v51, %v3699_v57  ;;  %7323 = vmatprep.mubr.bf16.mxu0 %v4563_v30 }
 0x417   : > { %7324 = vmatmul.mubr.bf16.gmra.mrb[96].mxu0 %v4564_v50 }
 0x418   : > { %7235 = vmatprep.mubr.bf16.mxu1 %v3783_v10 }
 0x419   : > { %7236 = vmatmul.mubr.bf16.gmra.mrb[152].mxu1 %v3784_v32 }
 0x41c   : > { %v7185_v54 = vpop.f32.mrb[100].mxu1 }
 0x41d   : > { %v4061_v56 = vadd.f32 %v7185_v54, %v8717_v48  ;;  %v4052_v15 = vpop.f32.mrb[101].mxu1 }
 0x41e   : > { %v4053_v11 = vadd.f32 %v8717_v48, %v4052_v15  ;;  %v7097_v3 = vpop.f32.mrb[28].mxu0  ;;  %v7186_v62 = vpop.f32.mrb[102].mxu1 }
 0x41f   : > { %v3477_v7 = vadd.f32 %v8674_v18, %v7097_v3  ;;  %v4064_v6 = vadd.f32 %v7186_v62, %v8717_v48  ;;  %v3468_v49 = vpop.f32.mrb[29].mxu0  ;;  %v4055_v4 = vpop.f32.mrb[103].mxu1  ;;  %v4457_v8 = vmax.f32 %v4061_v56, 0.0 }
 0x420   : > { %v3469_v28 = vadd.f32 %v8674_v18, %v3468_v49  ;;  %v4056_v47 = vadd.f32 %v8717_v48, %v4055_v4  ;;  %v7098_v60 = vpop.f32.mrb[30].mxu0  ;;  %v4455_v12 = vmax.f32 %v4053_v11, 0.0 }
 0x421   : > { %v4458_v46 = vmax.f32 %v4064_v6, 0.0  ;;  %v3480_v9 = vadd.f32 %v8674_v18, %v7098_v60  ;;  %v3471_v63 = vpop.f32.mrb[31].mxu0  ;;  %v3705_v14 = vmax.f32 %v3477_v7, 0.0 }
 0x422   : > { %v4456_v1 = vmax.f32 %v4056_v47, 0.0  ;;  %v3472_v13 = vadd.f32 %v8674_v18, %v3471_v63  ;;  %v3703_v31 = vmax.f32 %v3469_v28, 0.0 }
 0x423   : > { %v4566_v59 = vpack.c.bf16 %v4458_v46, %v4457_v8  ;;  %v3706_v17 = vmax.f32 %v3480_v9, 0.0 }
 0x424   : > { %v4565_v26 = vpack.c.bf16 %v4456_v1, %v4455_v12  ;;  %v3704_v43 = vmax.f32 %v3472_v13, 0.0 }
 0x425   : > { %v3786_v36 = vpack.c.bf16 %v3706_v17, %v3705_v14 }
 0x426   : > { %v3785_v21 = vpack.c.bf16 %v3704_v43, %v3703_v31  ;;  %7327 = vmatprep.mubr.bf16.mxu0 %v4565_v26 }
 0x427   : > { %7328 = vmatmul.mubr.bf16.gmra.mrb[100].mxu0 %v4566_v59 }
 0x428   : > { %7239 = vmatprep.mubr.bf16.mxu1 %v3785_v21 }
 0x429   : > { %7240 = vmatmul.mubr.bf16.gmra.mrb[156].mxu1 %v3786_v36 }
 0x42c   : > { %v7189_v44 = vpop.f32.mrb[104].mxu1 }
 0x42d   : > { %v4077_v37 = vadd.f32 %v7189_v44, %v8717_v48  ;;  %v4068_v24 = vpop.f32.mrb[105].mxu1 }
 0x42e   : > { %v4069_v27 = vadd.f32 %v8717_v48, %v4068_v24  ;;  %v7101_v23 = vpop.f32.mrb[32].mxu0  ;;  %v7190_v33 = vpop.f32.mrb[106].mxu1 }
 0x42f   : > { %v3493_v25 = vadd.f32 %v8674_v18, %v7101_v23  ;;  %v4080_v0 = vadd.f32 %v7190_v33, %v8717_v48  ;;  %v3484_v34 = vpop.f32.mrb[33].mxu0  ;;  %v4071_v52 = vpop.f32.mrb[107].mxu1  ;;  %v4461_v35 = vmax.f32 %v4077_v37, 0.0 }
 0x430   : > { %v3485_v53 = vadd.f32 %v8674_v18, %v3484_v34  ;;  %v4072_v61 = vadd.f32 %v8717_v48, %v4071_v52  ;;  %v7102_v2 = vpop.f32.mrb[34].mxu0  ;;  %v4459_v38 = vmax.f32 %v4069_v27, 0.0 }
 0x431   : > { %v4462_v29 = vmax.f32 %v4080_v0, 0.0  ;;  %v3496_v40 = vadd.f32 %v8674_v18, %v7102_v2  ;;  %v3487_v55 = vpop.f32.mrb[35].mxu0  ;;  %v3709_v58 = vmax.f32 %v3493_v25, 0.0 }
 0x432   : > { %v4460_v39 = vmax.f32 %v4072_v61, 0.0  ;;  %v3488_v20 = vadd.f32 %v8674_v18, %v3487_v55  ;;  %v3707_v19 = vmax.f32 %v3485_v53, 0.0 }
 0x433   : > { %v4568_v41 = vpack.c.bf16 %v4462_v29, %v4461_v35  ;;  %v3710_v42 = vmax.f32 %v3496_v40, 0.0 }
 0x434   : > { %v4567_v5 = vpack.c.bf16 %v4460_v39, %v4459_v38  ;;  %v3708_v16 = vmax.f32 %v3488_v20, 0.0 }
 0x435   : > { %v3788_v45 = vpack.c.bf16 %v3710_v42, %v3709_v58 }
 0x436   : > { %v3787_v50 = vpack.c.bf16 %v3708_v16, %v3707_v19  ;;  %7331 = vmatprep.mubr.bf16.mxu0 %v4567_v5 }
 0x437   : > { %7332 = vmatmul.mubr.bf16.gmra.mrb[104].mxu0 %v4568_v41 }
 0x438   : > { %7243 = vmatprep.mubr.bf16.mxu1 %v3787_v50  ;;  %v8812_v50 = vld [vmem:[%s9178_s6] ss:$0 sm:$0xff] }
 0x439   : > { %7244 = vmatmul.mubr.bf16.gmra.mrb[160].mxu1 %v3788_v45 }
 0x43c   : > { %v7193_v22 = vpop.f32.mrb[108].mxu1 }
 0x43d   : > { %v4093_v57 = vadd.f32 %v7193_v22, %v8717_v48  ;;  %v4084_v30 = vpop.f32.mrb[109].mxu1 }
 0x43e   : > { %v4085_v51 = vadd.f32 %v8717_v48, %v4084_v30  ;;  %v7105_v32 = vpop.f32.mrb[36].mxu0  ;;  %v7194_v10 = vpop.f32.mrb[110].mxu1 }
 0x43f   : > { %v3509_v54 = vadd.f32 %v8674_v18, %v7105_v32  ;;  %v4096_v56 = vadd.f32 %v7194_v10, %v8717_v48  ;;  %v3500_v15 = vpop.f32.mrb[37].mxu0  ;;  %v4087_v11 = vpop.f32.mrb[111].mxu1  ;;  %v4465_v6 = vmax.f32 %v4093_v57, 0.0 }
 0x440   : > { %v3501_v3 = vadd.f32 %v8674_v18, %v3500_v15  ;;  %v4088_v62 = vadd.f32 %v8717_v48, %v4087_v11  ;;  %v7106_v7 = vpop.f32.mrb[38].mxu0  ;;  %v4463_v47 = vmax.f32 %v4085_v51, 0.0 }
 0x441   : > { %v4466_v49 = vmax.f32 %v4096_v56, 0.0  ;;  %v3512_v4 = vadd.f32 %v8674_v18, %v7106_v7  ;;  %v3503_v28 = vpop.f32.mrb[39].mxu0  ;;  %v3713_v46 = vmax.f32 %v3509_v54, 0.0 }
 0x442   : > { %v4464_v60 = vmax.f32 %v4088_v62, 0.0  ;;  %v3504_v8 = vadd.f32 %v8674_v18, %v3503_v28  ;;  %v3711_v12 = vmax.f32 %v3501_v3, 0.0 }
 0x443   : > { %v4570_v9 = vpack.c.bf16 %v4466_v49, %v4465_v6  ;;  %v3714_v63 = vmax.f32 %v3512_v4, 0.0 }
 0x444   : > { %v4569_v1 = vpack.c.bf16 %v4464_v60, %v4463_v47  ;;  %v3712_v13 = vmax.f32 %v3504_v8, 0.0 }
 0x445   : > { %v3790_v14 = vpack.c.bf16 %v3714_v63, %v3713_v46 }
 0x446   : > { %v3789_v59 = vpack.c.bf16 %v3712_v13, %v3711_v12  ;;  %7335 = vmatprep.mubr.bf16.mxu0 %v4569_v1 }
 0x447   : > { %7336 = vmatmul.mubr.bf16.gmra.mrb[108].mxu0 %v4570_v9 }
 0x448   : > { %7247 = vmatprep.mubr.bf16.mxu1 %v3789_v59 }
 0x449   : > { %7248 = vmatmul.mubr.bf16.gmra.mrb[164].mxu1 %v3790_v14 }
 0x44c   : > { %v7197_v17 = vpop.f32.mrb[112].mxu1 }
 0x44d   : > { %v4109_v31 = vadd.f32 %v7197_v17, %v8717_v48  ;;  %v4100_v26 = vpop.f32.mrb[113].mxu1 }
 0x44e   : > { %v4101_v43 = vadd.f32 %v8717_v48, %v4100_v26  ;;  %v7109_v36 = vpop.f32.mrb[40].mxu0  ;;  %v7198_v21 = vpop.f32.mrb[114].mxu1 }
 0x44f   : > { %v3525_v44 = vadd.f32 %v8674_v18, %v7109_v36  ;;  %v4112_v37 = vadd.f32 %v7198_v21, %v8717_v48  ;;  %v3516_v24 = vpop.f32.mrb[41].mxu0  ;;  %v4103_v27 = vpop.f32.mrb[115].mxu1  ;;  %v4469_v0 = vmax.f32 %v4109_v31, 0.0 }
 0x450   : > { %v3517_v23 = vadd.f32 %v8674_v18, %v3516_v24  ;;  %v4104_v33 = vadd.f32 %v8717_v48, %v4103_v27  ;;  %v7110_v25 = vpop.f32.mrb[42].mxu0  ;;  %v4467_v61 = vmax.f32 %v4101_v43, 0.0 }
 0x451   : > { %v4470_v34 = vmax.f32 %v4112_v37, 0.0  ;;  %v3528_v52 = vadd.f32 %v8674_v18, %v7110_v25  ;;  %v3519_v53 = vpop.f32.mrb[43].mxu0  ;;  %v3717_v29 = vmax.f32 %v3525_v44, 0.0 }
 0x452   : > { %v4468_v2 = vmax.f32 %v4104_v33, 0.0  ;;  %v3520_v35 = vadd.f32 %v8674_v18, %v3519_v53  ;;  %v3715_v38 = vmax.f32 %v3517_v23, 0.0 }
 0x453   : > { %v4572_v40 = vpack.c.bf16 %v4470_v34, %v4469_v0  ;;  %v3718_v55 = vmax.f32 %v3528_v52, 0.0 }
 0x454   : > { %v4571_v39 = vpack.c.bf16 %v4468_v2, %v4467_v61  ;;  %v3716_v20 = vmax.f32 %v3520_v35, 0.0 }
 0x455   : > { %v3792_v58 = vpack.c.bf16 %v3718_v55, %v3717_v29 }
 0x456   : > { %v3791_v41 = vpack.c.bf16 %v3716_v20, %v3715_v38  ;;  %7339 = vmatprep.mubr.bf16.mxu0 %v4571_v39 }
 0x457   : > { %7340 = vmatmul.mubr.bf16.gmra.mrb[112].mxu0 %v4572_v40 }
 0x458   : > { %7251 = vmatprep.mubr.bf16.mxu1 %v3791_v41 }
 0x459   : > { %7252 = vmatmul.mubr.bf16.gmra.mrb[168].mxu1 %v3792_v58 }
 0x45c   : > { %v7201_v42 = vpop.f32.mrb[116].mxu1 }
 0x45d   : > { %v4125_v19 = vadd.f32 %v7201_v42, %v8717_v48  ;;  %v4116_v5 = vpop.f32.mrb[117].mxu1 }
 0x45e   : > { %v4117_v16 = vadd.f32 %v8717_v48, %v4116_v5  ;;  %v7113_v45 = vpop.f32.mrb[44].mxu0  ;;  %v7202_v18 = vpop.f32.mrb[118].mxu1 }
 0x45f   : > { %v3541_v22 = vadd.f32 %v8812_v50, %v7113_v45  ;;  %v4128_v57 = vadd.f32 %v7202_v18, %v8717_v48  ;;  %v3532_v30 = vpop.f32.mrb[45].mxu0  ;;  %v4119_v51 = vpop.f32.mrb[119].mxu1  ;;  %v4473_v56 = vmax.f32 %v4125_v19, 0.0 }
 0x460   : > { %v3533_v32 = vadd.f32 %v8812_v50, %v3532_v30  ;;  %v4120_v10 = vadd.f32 %v8717_v48, %v4119_v51  ;;  %v7114_v54 = vpop.f32.mrb[46].mxu0  ;;  %v4471_v62 = vmax.f32 %v4117_v16, 0.0 }
 0x461   : > { %v4474_v15 = vmax.f32 %v4128_v57, 0.0  ;;  %v3544_v11 = vadd.f32 %v8812_v50, %v7114_v54  ;;  %v3535_v3 = vpop.f32.mrb[47].mxu0  ;;  %v3721_v49 = vmax.f32 %v3541_v22, 0.0 }
 0x462   : > { %v4472_v7 = vmax.f32 %v4120_v10, 0.0  ;;  %v3536_v6 = vadd.f32 %v8812_v50, %v3535_v3  ;;  %v3719_v47 = vmax.f32 %v3533_v32, 0.0 }
 0x463   : > { %v4574_v4 = vpack.c.bf16 %v4474_v15, %v4473_v56  ;;  %v3722_v28 = vmax.f32 %v3544_v11, 0.0 }
 0x464   : > { %v4573_v60 = vpack.c.bf16 %v4472_v7, %v4471_v62  ;;  %v3720_v8 = vmax.f32 %v3536_v6, 0.0 }
 0x465   : > { %v3794_v46 = vpack.c.bf16 %v3722_v28, %v3721_v49 }
 0x466   : > { %v3793_v9 = vpack.c.bf16 %v3720_v8, %v3719_v47  ;;  %7343 = vmatprep.mubr.bf16.mxu0 %v4573_v60 }
 0x467   : > { %7344 = vmatmul.mubr.bf16.gmra.mrb[116].mxu0 %v4574_v4 }
 0x468   : > { %7255 = vmatprep.mubr.bf16.mxu1 %v3793_v9 }
 0x469   : > { %7256 = vmatmul.mubr.bf16.gmra.mrb[172].mxu1 %v3794_v46 }
 0x46c   : > { %v7205_v63 = vpop.f32.mrb[120].mxu1 }
 0x46d   : > { %v4141_v12 = vadd.f32 %v7205_v63, %v8717_v48  ;;  %v4132_v1 = vpop.f32.mrb[121].mxu1 }
 0x46e   : > { %v4133_v13 = vadd.f32 %v8717_v48, %v4132_v1  ;;  %v7117_v14 = vpop.f32.mrb[48].mxu0  ;;  %v7206_v59 = vpop.f32.mrb[122].mxu1 }
 0x46f   : > { %v3557_v17 = vadd.f32 %v8812_v50, %v7117_v14  ;;  %v4144_v31 = vadd.f32 %v7206_v59, %v8717_v48  ;;  %v3548_v26 = vpop.f32.mrb[49].mxu0  ;;  %v4135_v43 = vpop.f32.mrb[123].mxu1  ;;  %v4477_v37 = vmax.f32 %v4141_v12, 0.0 }
 0x470   : > { %v3549_v36 = vadd.f32 %v8812_v50, %v3548_v26  ;;  %v4136_v21 = vadd.f32 %v8717_v48, %v4135_v43  ;;  %v7118_v44 = vpop.f32.mrb[50].mxu0  ;;  %v4475_v33 = vmax.f32 %v4133_v13, 0.0 }
 0x471   : > { %v4478_v24 = vmax.f32 %v4144_v31, 0.0  ;;  %v3560_v27 = vadd.f32 %v8812_v50, %v7118_v44  ;;  %v3551_v23 = vpop.f32.mrb[51].mxu0  ;;  %v3725_v34 = vmax.f32 %v3557_v17, 0.0 }
 0x472   : > { %v4476_v25 = vmax.f32 %v4136_v21, 0.0  ;;  %v3552_v0 = vadd.f32 %v8812_v50, %v3551_v23  ;;  %v3723_v61 = vmax.f32 %v3549_v36, 0.0 }
 0x473   : > { %v4576_v52 = vpack.c.bf16 %v4478_v24, %v4477_v37  ;;  %v3726_v53 = vmax.f32 %v3560_v27, 0.0 }
 0x474   : > { %v4575_v2 = vpack.c.bf16 %v4476_v25, %v4475_v33  ;;  %v3724_v35 = vmax.f32 %v3552_v0, 0.0 }
 0x475   : > { %v3796_v29 = vpack.c.bf16 %v3726_v53, %v3725_v34 }
 0x476   : > { %v3795_v40 = vpack.c.bf16 %v3724_v35, %v3723_v61  ;;  %7347 = vmatprep.mubr.bf16.mxu0 %v4575_v2 }
 0x477   : > { %7348 = vmatmul.mubr.bf16.gmra.mrb[120].mxu0 %v4576_v52 }
 0x478   : > { %7259 = vmatprep.mubr.bf16.mxu1 %v3795_v40 }
 0x479   : > { %7260 = vmatmul.mubr.bf16.gmra.mrb[176].mxu1 %v3796_v29 }
 0x47c   : > { %v7209_v55 = vpop.f32.mrb[124].mxu1 }
 0x47d   : > { %v4157_v38 = vadd.f32 %v7209_v55, %v8717_v48  ;;  %v4148_v39 = vpop.f32.mrb[125].mxu1 }
 0x47e   : > { %v4149_v20 = vadd.f32 %v8717_v48, %v4148_v39  ;;  %v7121_v58 = vpop.f32.mrb[52].mxu0  ;;  %v7210_v41 = vpop.f32.mrb[126].mxu1 }
 0x47f   : > { %v3573_v42 = vadd.f32 %v8812_v50, %v7121_v58  ;;  %v4160_v19 = vadd.f32 %v7210_v41, %v8717_v48  ;;  %v3564_v5 = vpop.f32.mrb[53].mxu0  ;;  %v4151_v16 = vpop.f32.mrb[127].mxu1  ;;  %v4481_v57 = vmax.f32 %v4157_v38, 0.0 }
 0x480   : > { %v3565_v45 = vadd.f32 %v8812_v50, %v3564_v5  ;;  %v4152_v18 = vadd.f32 %v8717_v48, %v4151_v16  ;;  %v7122_v22 = vpop.f32.mrb[54].mxu0  ;;  %v4479_v10 = vmax.f32 %v4149_v20, 0.0 }
 0x481   : > { %v4482_v30 = vmax.f32 %v4160_v19, 0.0  ;;  %v3576_v51 = vadd.f32 %v8812_v50, %v7122_v22  ;;  %v3567_v32 = vpop.f32.mrb[55].mxu0  ;;  %v3729_v15 = vmax.f32 %v3573_v42, 0.0 }
 0x482   : > { %v4480_v54 = vmax.f32 %v4152_v18, 0.0  ;;  %v3568_v56 = vadd.f32 %v8812_v50, %v3567_v32  ;;  %v3727_v62 = vmax.f32 %v3565_v45, 0.0 }
 0x483   : > { %v4578_v11 = vpack.c.bf16 %v4482_v30, %v4481_v57  ;;  %v3730_v3 = vmax.f32 %v3576_v51, 0.0 }
 0x484   : > { %v4577_v7 = vpack.c.bf16 %v4480_v54, %v4479_v10  ;;  %v3728_v6 = vmax.f32 %v3568_v56, 0.0 }
 0x485   : > { %v3798_v49 = vpack.c.bf16 %v3730_v3, %v3729_v15  ;;  %v8856_v3 = vld [vmem:[%s9182_s10] ss:$0 sm:$0xff] }
 0x486   : > { %v3797_v4 = vpack.c.bf16 %v3728_v6, %v3727_v62  ;;  %7351 = vmatprep.mubr.bf16.mxu0 %v4577_v7 }
 0x487   : > { %7352 = vmatmul.mubr.bf16.gmra.mrb[124].mxu0 %v4578_v11 }
 0x488   : > { %7263 = vmatprep.mubr.bf16.mxu1 %v3797_v4 }
 0x489   : > { %7264 = vmatmul.mubr.bf16.gmra.mrb[180].mxu1 %v3798_v49 }
 0x48c   : > { %v7213_v28 = vpop.f32.mrb[128].mxu1 }
 0x48d   : > { %v4173_v47 = vadd.f32 %v7213_v28, %v8717_v48  ;;  %v4164_v60 = vpop.f32.mrb[129].mxu1 }
 0x48e   : > { %v4165_v8 = vadd.f32 %v8717_v48, %v4164_v60  ;;  %v7125_v46 = vpop.f32.mrb[56].mxu0  ;;  %v7214_v9 = vpop.f32.mrb[130].mxu1 }
 0x48f   : > { %v3589_v63 = vadd.f32 %v8812_v50, %v7125_v46  ;;  %v4176_v12 = vadd.f32 %v7214_v9, %v8717_v48  ;;  %v3580_v1 = vpop.f32.mrb[57].mxu0  ;;  %v4167_v13 = vpop.f32.mrb[131].mxu1  ;;  %v4485_v31 = vmax.f32 %v4173_v47, 0.0 }
 0x490   : > { %v3581_v14 = vadd.f32 %v8812_v50, %v3580_v1  ;;  %v4168_v59 = vadd.f32 %v8717_v48, %v4167_v13  ;;  %v7126_v17 = vpop.f32.mrb[58].mxu0  ;;  %v4483_v21 = vmax.f32 %v4165_v8, 0.0  ;;  %v8867_v8 = vld [vmem:[%s9180_s8] ss:$0 sm:$0xff] }
 0x491   : > { %v4486_v26 = vmax.f32 %v4176_v12, 0.0  ;;  %v3592_v43 = vadd.f32 %v8812_v50, %v7126_v17  ;;  %v3583_v36 = vpop.f32.mrb[59].mxu0  ;;  %v3733_v24 = vmax.f32 %v3589_v63, 0.0 }
 0x492   : > { %v4484_v44 = vmax.f32 %v4168_v59, 0.0  ;;  %v3584_v37 = vadd.f32 %v8812_v50, %v3583_v36  ;;  %v3731_v33 = vmax.f32 %v3581_v14, 0.0 }
 0x493   : > { %v4580_v27 = vpack.c.bf16 %v4486_v26, %v4485_v31  ;;  %v3734_v23 = vmax.f32 %v3592_v43, 0.0 }
 0x494   : > { %v4579_v25 = vpack.c.bf16 %v4484_v44, %v4483_v21  ;;  %v3732_v0 = vmax.f32 %v3584_v37, 0.0 }
 0x495   : > { %v3800_v34 = vpack.c.bf16 %v3734_v23, %v3733_v24 }
 0x496   : > { %v3799_v52 = vpack.c.bf16 %v3732_v0, %v3731_v33  ;;  %7355 = vmatprep.mubr.bf16.mxu0 %v4579_v25 }
 0x497   : > { %7356 = vmatmul.mubr.bf16.gmra.mrb[128].mxu0 %v4580_v27 }
 0x498   : > { %7267 = vmatprep.mubr.bf16.mxu1 %v3799_v52 }
 0x499   : > { %7268 = vmatmul.mubr.bf16.gmra.mrb[184].mxu1 %v3800_v34 }
 0x49c   : > { %v7217_v53 = vpop.f32.mrb[132].mxu1 }
 0x49d   : > { %v4189_v61 = vadd.f32 %v7217_v53, %v8717_v48  ;;  %v4180_v2 = vpop.f32.mrb[133].mxu1 }
 0x49e   : > { %v4181_v35 = vadd.f32 %v8717_v48, %v4180_v2  ;;  %v7129_v29 = vpop.f32.mrb[60].mxu0  ;;  %v7218_v40 = vpop.f32.mrb[134].mxu1 }
 0x49f   : > { %v3605_v55 = vadd.f32 %v8812_v50, %v7129_v29  ;;  %v4192_v38 = vadd.f32 %v7218_v40, %v8717_v48  ;;  %v3596_v39 = vpop.f32.mrb[61].mxu0  ;;  %v4183_v20 = vpop.f32.mrb[135].mxu1  ;;  %v4489_v19 = vmax.f32 %v4189_v61, 0.0 }
 0x4a0   : > { %v3597_v58 = vadd.f32 %v8812_v50, %v3596_v39  ;;  %v4184_v41 = vadd.f32 %v8717_v48, %v4183_v20  ;;  %v7130_v42 = vpop.f32.mrb[62].mxu0  ;;  %v4487_v18 = vmax.f32 %v4181_v35, 0.0 }
 0x4a1   : > { %v4490_v5 = vmax.f32 %v4192_v38, 0.0  ;;  %v3608_v16 = vadd.f32 %v8812_v50, %v7130_v42  ;;  %v3599_v45 = vpop.f32.mrb[63].mxu0  ;;  %v3737_v30 = vmax.f32 %v3605_v55, 0.0 }
 0x4a2   : > { %v4488_v22 = vmax.f32 %v4184_v41, 0.0  ;;  %v3600_v57 = vadd.f32 %v8812_v50, %v3599_v45  ;;  %v3735_v10 = vmax.f32 %v3597_v58, 0.0 }
 0x4a3   : > { %v4582_v51 = vpack.c.bf16 %v4490_v5, %v4489_v19  ;;  %v3738_v32 = vmax.f32 %v3608_v16, 0.0 }
 0x4a4   : > { %v4581_v54 = vpack.c.bf16 %v4488_v22, %v4487_v18  ;;  %v3736_v56 = vmax.f32 %v3600_v57, 0.0 }
 0x4a5   : > { %v3802_v15 = vpack.c.bf16 %v3738_v32, %v3737_v30 }
 0x4a6   : > { %v3801_v48 = vpack.c.bf16 %v3736_v56, %v3735_v10  ;;  %7359 = vmatprep.mubr.bf16.mxu0 %v4581_v54 }
 0x4a7   : > { %7360 = vmatmul.mubr.bf16.gmra.mrb[132].mxu0 %v4582_v51 }
 0x4a8   : > { %7271 = vmatprep.mubr.bf16.mxu1 %v3801_v48  ;;  %v7293_v11 = vpop.f32.mrb[64].mxu0 }
 0x4a9   : > { %7272 = vmatmul.mubr.bf16.gmra.mrb[188].mxu1 %v3802_v15  ;;  %v4716_v50 = vpop.f32.mrb[65].mxu0  ;;  %v4725_v7 = vadd.f32 %v7293_v11, %v8856_v3 }
 0x4aa   : > { %v7294_v62 = vpop.f32.mrb[66].mxu0  ;;  %v4717_v4 = vadd.f32 %v8856_v3, %v4716_v50 }
 0x4ab   : > { %v4728_v6 = vadd.f32 %v7294_v62, %v8856_v3  ;;  %v4719_v49 = vpop.f32.mrb[67].mxu0 }
 0x4ac   : > { %v4720_v28 = vadd.f32 %v8856_v3, %v4719_v49  ;;  %v7221_v47 = vpop.f32.mrb[136].mxu1 }
 0x4ad   : > { %v6396_v60 = vpack.c.bf16 %v4728_v6, %v4725_v7  ;;  %v4205_v46 = vadd.f32 %v8867_v8, %v7221_v47  ;;  %v4196_v9 = vpop.f32.mrb[137].mxu1 }
 0x4ae   : > { %v6391_v63 = vpack.c.bf16 %v4720_v28, %v4717_v4  ;;  %v4197_v12 = vadd.f32 %v8867_v8, %v4196_v9  ;;  %v7222_v1 = vpop.f32.mrb[138].mxu1 }
 0x4af   : > { %6708 = vst [vmem:[%s8871_s29 + $0x8] sm:$0xff] %v6396_v60   ;;  %v4208_v13 = vadd.f32 %v8867_v8, %v7222_v1  ;;  %v4199_v14 = vpop.f32.mrb[139].mxu1  ;;  %v4493_v31 = vmax.f32 %v4205_v46, 0.0 }
 0x4b0   : > { %6392 = vst [vmem:[%s8871_s29] sm:$0xff] %v6391_v63   ;;  %v4200_v59 = vadd.f32 %v8867_v8, %v4199_v14  ;;  %v7297_v17 = vpop.f32.mrb[68].mxu0  ;;  %v4491_v36 = vmax.f32 %v4197_v12, 0.0 }
 0x4b1   : > { %v4494_v26 = vmax.f32 %v4208_v13, 0.0  ;;  %v4732_v43 = vpop.f32.mrb[69].mxu0  ;;  %v4741_v24 = vadd.f32 %v7297_v17, %v8856_v3 }
 0x4b2   : > { %v4492_v21 = vmax.f32 %v4200_v59, 0.0  ;;  %v7298_v44 = vpop.f32.mrb[70].mxu0  ;;  %v4733_v25 = vadd.f32 %v8856_v3, %v4732_v43 }
 0x4b3   : > { %v4584_v37 = vpack.c.bf16 %v4494_v26, %v4493_v31  ;;  %v4744_v27 = vadd.f32 %v7298_v44, %v8856_v3  ;;  %v4735_v23 = vpop.f32.mrb[71].mxu0 }
 0x4b4   : > { %v4583_v33 = vpack.c.bf16 %v4492_v21, %v4491_v36  ;;  %v4736_v0 = vadd.f32 %v8856_v3, %v4735_v23 }
 0x4b5   : > { %v6406_v34 = vpack.c.bf16 %v4744_v27, %v4741_v24 }
 0x4b6   : > { %v6401_v52 = vpack.c.bf16 %v4736_v0, %v4733_v25  ;;  %7363 = vmatprep.mubr.bf16.mxu0 %v4583_v33 }
 0x4b7   : > { %6710 = vst [vmem:[%s8871_s29 + $0x18] sm:$0xff] %v6406_v34   ;;  %7364 = vmatmul.mubr.bf16.gmra.mrb[136].mxu0 %v4584_v37 }
 0x4b8   : > { %6709 = vst [vmem:[%s8871_s29 + $0x10] sm:$0xff] %v6401_v52   ;;  %v7301_v53 = vpop.f32.mrb[72].mxu0 }
 0x4b9   : > { %v4748_v61 = vpop.f32.mrb[73].mxu0  ;;  %v4757_v35 = vadd.f32 %v7301_v53, %v8856_v3 }
 0x4ba   : > { %v7302_v2 = vpop.f32.mrb[74].mxu0  ;;  %v4749_v55 = vadd.f32 %v8856_v3, %v4748_v61 }
 0x4bb   : > { %v4760_v29 = vadd.f32 %v7302_v2, %v8856_v3  ;;  %v4751_v40 = vpop.f32.mrb[75].mxu0 }
 0x4bc   : > { %v4752_v38 = vadd.f32 %v8856_v3, %v4751_v40  ;;  %v7225_v39 = vpop.f32.mrb[140].mxu1 }
 0x4bd   : > { %v6416_v20 = vpack.c.bf16 %v4760_v29, %v4757_v35  ;;  %v4221_v58 = vadd.f32 %v8867_v8, %v7225_v39  ;;  %v4212_v41 = vpop.f32.mrb[141].mxu1 }
 0x4be   : > { %v6411_v42 = vpack.c.bf16 %v4752_v38, %v4749_v55  ;;  %v4213_v19 = vadd.f32 %v8867_v8, %v4212_v41  ;;  %v7226_v5 = vpop.f32.mrb[142].mxu1 }
 0x4bf   : > { %6712 = vst [vmem:[%s8871_s29 + $0x28] sm:$0xff] %v6416_v20   ;;  %v4224_v16 = vadd.f32 %v8867_v8, %v7226_v5  ;;  %v4215_v45 = vpop.f32.mrb[143].mxu1  ;;  %v4497_v57 = vmax.f32 %v4221_v58, 0.0 }
 0x4c0   : > { %6711 = vst [vmem:[%s8871_s29 + $0x20] sm:$0xff] %v6411_v42   ;;  %v4216_v18 = vadd.f32 %v8867_v8, %v4215_v45  ;;  %v7305_v22 = vpop.f32.mrb[76].mxu0  ;;  %v4495_v32 = vmax.f32 %v4213_v19, 0.0 }
 0x4c1   : > { %v4498_v30 = vmax.f32 %v4224_v16, 0.0  ;;  %v4764_v51 = vpop.f32.mrb[77].mxu0  ;;  %v4773_v15 = vadd.f32 %v7305_v22, %v8856_v3 }
 0x4c2   : > { %v4496_v10 = vmax.f32 %v4216_v18, 0.0  ;;  %v7306_v54 = vpop.f32.mrb[78].mxu0  ;;  %v4765_v62 = vadd.f32 %v8856_v3, %v4764_v51 }
 0x4c3   : > { %v4586_v56 = vpack.c.bf16 %v4498_v30, %v4497_v57  ;;  %v4776_v48 = vadd.f32 %v7306_v54, %v8856_v3  ;;  %v4767_v11 = vpop.f32.mrb[79].mxu0 }
 0x4c4   : > { %v4585_v50 = vpack.c.bf16 %v4496_v10, %v4495_v32  ;;  %v4768_v7 = vadd.f32 %v8856_v3, %v4767_v11 }
 0x4c5   : > { %v6426_v6 = vpack.c.bf16 %v4776_v48, %v4773_v15 }
 0x4c6   : > { %v6421_v49 = vpack.c.bf16 %v4768_v7, %v4765_v62  ;;  %7367 = vmatprep.mubr.bf16.mxu0 %v4585_v50 }
 0x4c7   : > { %6714 = vst [vmem:[%s8871_s29 + $0x38] sm:$0xff] %v6426_v6   ;;  %7368 = vmatmul.mubr.bf16.gmra.mrb[140].mxu0 %v4586_v56 }
 0x4c8   : > { %6713 = vst [vmem:[%s8871_s29 + $0x30] sm:$0xff] %v6421_v49   ;;  %v7309_v4 = vpop.f32.mrb[80].mxu0 }
 0x4c9   : > { %v4780_v28 = vpop.f32.mrb[81].mxu0  ;;  %v4789_v60 = vadd.f32 %v7309_v4, %v8856_v3 }
 0x4ca   : > { %v7310_v47 = vpop.f32.mrb[82].mxu0  ;;  %v4781_v63 = vadd.f32 %v8856_v3, %v4780_v28 }
 0x4cb   : > { %v4792_v46 = vadd.f32 %v7310_v47, %v8856_v3  ;;  %v4783_v9 = vpop.f32.mrb[83].mxu0 }
 0x4cc   : > { %v4784_v12 = vadd.f32 %v8856_v3, %v4783_v9  ;;  %v7229_v1 = vpop.f32.mrb[144].mxu1 }
 0x4cd   : > { %v6436_v13 = vpack.c.bf16 %v4792_v46, %v4789_v60  ;;  %v4237_v14 = vadd.f32 %v8867_v8, %v7229_v1  ;;  %v4228_v59 = vpop.f32.mrb[145].mxu1 }
 0x4ce   : > { %v6431_v17 = vpack.c.bf16 %v4784_v12, %v4781_v63  ;;  %v4229_v31 = vadd.f32 %v8867_v8, %v4228_v59  ;;  %v7230_v26 = vpop.f32.mrb[146].mxu1 }
 0x4cf   : > { %6716 = vst [vmem:[%s8871_s29 + $0x48] sm:$0xff] %v6436_v13   ;;  %v4240_v43 = vadd.f32 %v8867_v8, %v7230_v26  ;;  %v4231_v36 = vpop.f32.mrb[147].mxu1  ;;  %v4501_v37 = vmax.f32 %v4237_v14, 0.0 }
 0x4d0   : > { %6715 = vst [vmem:[%s8871_s29 + $0x40] sm:$0xff] %v6431_v17   ;;  %v4232_v21 = vadd.f32 %v8867_v8, %v4231_v36  ;;  %v7313_v44 = vpop.f32.mrb[84].mxu0  ;;  %v4499_v23 = vmax.f32 %v4229_v31, 0.0 }
 0x4d1   : > { %v4502_v24 = vmax.f32 %v4240_v43, 0.0  ;;  %v4796_v27 = vpop.f32.mrb[85].mxu0  ;;  %v4805_v34 = vadd.f32 %v7313_v44, %v8856_v3 }
 0x4d2   : > { %v4500_v33 = vmax.f32 %v4232_v21, 0.0  ;;  %v7314_v25 = vpop.f32.mrb[86].mxu0  ;;  %v4797_v2 = vadd.f32 %v8856_v3, %v4796_v27 }
 0x4d3   : > { %v4588_v0 = vpack.c.bf16 %v4502_v24, %v4501_v37  ;;  %v4808_v52 = vadd.f32 %v7314_v25, %v8856_v3  ;;  %v4799_v53 = vpop.f32.mrb[87].mxu0 }
 0x4d4   : > { %v4587_v61 = vpack.c.bf16 %v4500_v33, %v4499_v23  ;;  %v4800_v35 = vadd.f32 %v8856_v3, %v4799_v53 }
 0x4d5   : > { %v6446_v29 = vpack.c.bf16 %v4808_v52, %v4805_v34 }
 0x4d6   : > { %v6441_v40 = vpack.c.bf16 %v4800_v35, %v4797_v2  ;;  %7371 = vmatprep.mubr.bf16.mxu0 %v4587_v61 }
 0x4d7   : > { %6718 = vst [vmem:[%s8871_s29 + $0x58] sm:$0xff] %v6446_v29   ;;  %7372 = vmatmul.mubr.bf16.gmra.mrb[144].mxu0 %v4588_v0 }
 0x4d8   : > { %6717 = vst [vmem:[%s8871_s29 + $0x50] sm:$0xff] %v6441_v40   ;;  %v7317_v55 = vpop.f32.mrb[88].mxu0 }
 0x4d9   : > { %v4812_v38 = vpop.f32.mrb[89].mxu0  ;;  %v4821_v20 = vadd.f32 %v7317_v55, %v8856_v3 }
 0x4da   : > { %v7318_v39 = vpop.f32.mrb[90].mxu0  ;;  %v4813_v42 = vadd.f32 %v8856_v3, %v4812_v38 }
 0x4db   : > { %v4824_v58 = vadd.f32 %v7318_v39, %v8856_v3  ;;  %v4815_v41 = vpop.f32.mrb[91].mxu0 }
 0x4dc   : > { %v4816_v19 = vadd.f32 %v8856_v3, %v4815_v41  ;;  %v7233_v5 = vpop.f32.mrb[148].mxu1 }
 0x4dd   : > { %v6456_v16 = vpack.c.bf16 %v4824_v58, %v4821_v20  ;;  %v4253_v45 = vadd.f32 %v8867_v8, %v7233_v5  ;;  %v4244_v18 = vpop.f32.mrb[149].mxu1 }
 0x4de   : > { %v6451_v22 = vpack.c.bf16 %v4816_v19, %v4813_v42  ;;  %v4245_v57 = vadd.f32 %v8867_v8, %v4244_v18  ;;  %v7234_v30 = vpop.f32.mrb[150].mxu1 }
 0x4df   : > { %6720 = vst [vmem:[%s8871_s29 + $0x68] sm:$0xff] %v6456_v16   ;;  %v4256_v51 = vadd.f32 %v8867_v8, %v7234_v30  ;;  %v4247_v32 = vpop.f32.mrb[151].mxu1  ;;  %v4505_v56 = vmax.f32 %v4253_v45, 0.0 }
 0x4e0   : > { %6719 = vst [vmem:[%s8871_s29 + $0x60] sm:$0xff] %v6451_v22   ;;  %v4248_v10 = vadd.f32 %v8867_v8, %v4247_v32  ;;  %v7321_v54 = vpop.f32.mrb[92].mxu0  ;;  %v4503_v11 = vmax.f32 %v4245_v57, 0.0 }
 0x4e1   : > { %v4506_v15 = vmax.f32 %v4256_v51, 0.0  ;;  %v4828_v48 = vpop.f32.mrb[93].mxu0  ;;  %v4837_v6 = vadd.f32 %v7321_v54, %v8856_v3 }
 0x4e2   : > { %v4504_v50 = vmax.f32 %v4248_v10, 0.0  ;;  %v7322_v62 = vpop.f32.mrb[94].mxu0  ;;  %v4829_v47 = vadd.f32 %v8856_v3, %v4828_v48 }
 0x4e3   : > { %v4590_v7 = vpack.c.bf16 %v4506_v15, %v4505_v56  ;;  %v4840_v49 = vadd.f32 %v7322_v62, %v8856_v3  ;;  %v4831_v4 = vpop.f32.mrb[95].mxu0 }
 0x4e4   : > { %v4589_v28 = vpack.c.bf16 %v4504_v50, %v4503_v11  ;;  %v4832_v60 = vadd.f32 %v8856_v3, %v4831_v4 }
 0x4e5   : > { %v6466_v46 = vpack.c.bf16 %v4840_v49, %v4837_v6 }
 0x4e6   : > { %v6461_v9 = vpack.c.bf16 %v4832_v60, %v4829_v47  ;;  %7375 = vmatprep.mubr.bf16.mxu0 %v4589_v28 }
 0x4e7   : > { %6722 = vst [vmem:[%s8871_s29 + $0x78] sm:$0xff] %v6466_v46   ;;  %7376 = vmatmul.mubr.bf16.gmra.mrb[148].mxu0 %v4590_v7 }
 0x4e8   : > { %6721 = vst [vmem:[%s8871_s29 + $0x70] sm:$0xff] %v6461_v9  }
 0x4ea   : > { %v7325_v63 = vpop.f32.mrb[96].mxu0 }
 0x4eb   : > { %v4844_v12 = vpop.f32.mrb[97].mxu0  ;;  %v4853_v14 = vadd.f32 %v7325_v63, %v8856_v3 }
 0x4ec   : > { %v7237_v1 = vpop.f32.mrb[152].mxu1  ;;  %v7326_v13 = vpop.f32.mrb[98].mxu0  ;;  %v4845_v43 = vadd.f32 %v8856_v3, %v4844_v12 }
 0x4ed   : > { %v4269_v59 = vadd.f32 %v8867_v8, %v7237_v1  ;;  %v4856_v17 = vadd.f32 %v7326_v13, %v8856_v3  ;;  %v4260_v31 = vpop.f32.mrb[153].mxu1  ;;  %v4847_v26 = vpop.f32.mrb[99].mxu0 }
 0x4ee   : > { %v4261_v36 = vadd.f32 %v8867_v8, %v4260_v31  ;;  %v4848_v21 = vadd.f32 %v8856_v3, %v4847_v26  ;;  %v7238_v44 = vpop.f32.mrb[154].mxu1 }
 0x4ef   : > { %v6476_v37 = vpack.c.bf16 %v4856_v17, %v4853_v14  ;;  %v4272_v24 = vadd.f32 %v8867_v8, %v7238_v44  ;;  %v4263_v27 = vpop.f32.mrb[155].mxu1  ;;  %v4509_v25 = vmax.f32 %v4269_v59, 0.0 }
 0x4f0   : > { %v6471_v23 = vpack.c.bf16 %v4848_v21, %v4845_v43  ;;  %v4264_v33 = vadd.f32 %v8867_v8, %v4263_v27  ;;  %v4507_v34 = vmax.f32 %v4261_v36, 0.0 }
 0x4f1   : > { %6724 = vst [vmem:[%s8871_s29 + $0x88] sm:$0xff] %v6476_v37   ;;  %v4510_v0 = vmax.f32 %v4272_v24, 0.0 }
 0x4f2   : > { %6723 = vst [vmem:[%s8871_s29 + $0x80] sm:$0xff] %v6471_v23   ;;  %v4508_v52 = vmax.f32 %v4264_v33, 0.0 }
 0x4f3   : > { %v4592_v53 = vpack.c.bf16 %v4510_v0, %v4509_v25 }
 0x4f4   : > { %v4591_v61 = vpack.c.bf16 %v4508_v52, %v4507_v34 }
 0x4f6   : > { %7379 = vmatprep.mubr.bf16.mxu0 %v4591_v61 }
 0x4f7   : > { %7380 = vmatmul.mubr.bf16.gmra.mrb[152].mxu0 %v4592_v53 }
 0x4fa   : > { %v7329_v2 = vpop.f32.mrb[100].mxu0 }
 0x4fb   : > { %v4860_v35 = vpop.f32.mrb[101].mxu0  ;;  %v4869_v55 = vadd.f32 %v7329_v2, %v8856_v3 }
 0x4fc   : > { %v7241_v29 = vpop.f32.mrb[156].mxu1  ;;  %v7330_v40 = vpop.f32.mrb[102].mxu0  ;;  %v4861_v41 = vadd.f32 %v8856_v3, %v4860_v35 }
 0x4fd   : > { %v4285_v38 = vadd.f32 %v8867_v8, %v7241_v29  ;;  %v4872_v39 = vadd.f32 %v7330_v40, %v8856_v3  ;;  %v4276_v20 = vpop.f32.mrb[157].mxu1  ;;  %v4863_v58 = vpop.f32.mrb[103].mxu0 }
 0x4fe   : > { %v4277_v42 = vadd.f32 %v8867_v8, %v4276_v20  ;;  %v4864_v19 = vadd.f32 %v8856_v3, %v4863_v58  ;;  %v7242_v5 = vpop.f32.mrb[158].mxu1 }
 0x4ff   : > { %v6486_v16 = vpack.c.bf16 %v4872_v39, %v4869_v55  ;;  %v4288_v45 = vadd.f32 %v8867_v8, %v7242_v5  ;;  %v4279_v18 = vpop.f32.mrb[159].mxu1  ;;  %v4513_v30 = vmax.f32 %v4285_v38, 0.0 }
 0x500   : > { %v6481_v22 = vpack.c.bf16 %v4864_v19, %v4861_v41  ;;  %v4280_v57 = vadd.f32 %v8867_v8, %v4279_v18  ;;  %v4511_v32 = vmax.f32 %v4277_v42, 0.0 }
 0x501   : > { %6726 = vst [vmem:[%s8871_s29 + $0x98] sm:$0xff] %v6486_v16   ;;  %v4514_v51 = vmax.f32 %v4288_v45, 0.0 }
 0x502   : > { %6725 = vst [vmem:[%s8871_s29 + $0x90] sm:$0xff] %v6481_v22   ;;  %v4512_v10 = vmax.f32 %v4280_v57, 0.0 }
 0x503   : > { %v4594_v54 = vpack.c.bf16 %v4514_v51, %v4513_v30 }
 0x504   : > { %v4593_v56 = vpack.c.bf16 %v4512_v10, %v4511_v32 }
 0x506   : > { %7383 = vmatprep.mubr.bf16.mxu0 %v4593_v56 }
 0x507   : > { %7384 = vmatmul.mubr.bf16.gmra.mrb[156].mxu0 %v4594_v54 }
 0x50a   : > { %v7333_v15 = vpop.f32.mrb[104].mxu0 }
 0x50b   : > { %v4876_v48 = vpop.f32.mrb[105].mxu0  ;;  %v4885_v62 = vadd.f32 %v7333_v15, %v8856_v3 }
 0x50c   : > { %v7245_v11 = vpop.f32.mrb[160].mxu1  ;;  %v7334_v50 = vpop.f32.mrb[106].mxu0  ;;  %v4877_v28 = vadd.f32 %v8856_v3, %v4876_v48 }
 0x50d   : > { %v4301_v7 = vadd.f32 %v8867_v8, %v7245_v11  ;;  %v4888_v6 = vadd.f32 %v7334_v50, %v8856_v3  ;;  %v4292_v49 = vpop.f32.mrb[161].mxu1  ;;  %v4879_v4 = vpop.f32.mrb[107].mxu0 }
 0x50e   : > { %v4293_v47 = vadd.f32 %v8867_v8, %v4292_v49  ;;  %v4880_v60 = vadd.f32 %v8856_v3, %v4879_v4  ;;  %v7246_v46 = vpop.f32.mrb[162].mxu1 }
 0x50f   : > { %v6496_v9 = vpack.c.bf16 %v4888_v6, %v4885_v62  ;;  %v4304_v63 = vadd.f32 %v8867_v8, %v7246_v46  ;;  %v4295_v12 = vpop.f32.mrb[163].mxu1  ;;  %v4517_v14 = vmax.f32 %v4301_v7, 0.0 }
 0x510   : > { %v6491_v1 = vpack.c.bf16 %v4880_v60, %v4877_v28  ;;  %v4296_v13 = vadd.f32 %v8867_v8, %v4295_v12  ;;  %v4515_v17 = vmax.f32 %v4293_v47, 0.0 }
 0x511   : > { %6728 = vst [vmem:[%s8871_s29 + $0xa8] sm:$0xff] %v6496_v9   ;;  %v4518_v59 = vmax.f32 %v4304_v63, 0.0 }
 0x512   : > { %6727 = vst [vmem:[%s8871_s29 + $0xa0] sm:$0xff] %v6491_v1   ;;  %v4516_v31 = vmax.f32 %v4296_v13, 0.0 }
 0x513   : > { %v4596_v26 = vpack.c.bf16 %v4518_v59, %v4517_v14 }
 0x514   : > { %v4595_v43 = vpack.c.bf16 %v4516_v31, %v4515_v17 }
 0x516   : > { %7387 = vmatprep.mubr.bf16.mxu0 %v4595_v43 }
 0x517   : > { %7388 = vmatmul.mubr.bf16.gmra.mrb[160].mxu0 %v4596_v26 }
 0x51a   : > { %v7337_v36 = vpop.f32.mrb[108].mxu0 }
 0x51b   : > { %v4892_v21 = vpop.f32.mrb[109].mxu0  ;;  %v4901_v24 = vadd.f32 %v7337_v36, %v8856_v3 }
 0x51c   : > { %v7249_v44 = vpop.f32.mrb[164].mxu1  ;;  %v7338_v37 = vpop.f32.mrb[110].mxu0  ;;  %v4893_v0 = vadd.f32 %v8856_v3, %v4892_v21 }
 0x51d   : > { %v4317_v27 = vadd.f32 %v8867_v8, %v7249_v44  ;;  %v4904_v23 = vadd.f32 %v7338_v37, %v8856_v3  ;;  %v4308_v33 = vpop.f32.mrb[165].mxu1  ;;  %v4895_v25 = vpop.f32.mrb[111].mxu0 }
 0x51e   : > { %v4309_v34 = vadd.f32 %v8867_v8, %v4308_v33  ;;  %v4896_v52 = vadd.f32 %v8856_v3, %v4895_v25  ;;  %v7250_v53 = vpop.f32.mrb[166].mxu1 }
 0x51f   : > { %v6506_v61 = vpack.c.bf16 %v4904_v23, %v4901_v24  ;;  %v4320_v2 = vadd.f32 %v8867_v8, %v7250_v53  ;;  %v4311_v35 = vpop.f32.mrb[167].mxu1  ;;  %v4521_v55 = vmax.f32 %v4317_v27, 0.0 }
 0x520   : > { %v6501_v29 = vpack.c.bf16 %v4896_v52, %v4893_v0  ;;  %v4312_v40 = vadd.f32 %v8867_v8, %v4311_v35  ;;  %v4519_v39 = vmax.f32 %v4309_v34, 0.0 }
 0x521   : > { %6730 = vst [vmem:[%s8871_s29 + $0xb8] sm:$0xff] %v6506_v61   ;;  %v4522_v38 = vmax.f32 %v4320_v2, 0.0 }
 0x522   : > { %6729 = vst [vmem:[%s8871_s29 + $0xb0] sm:$0xff] %v6501_v29   ;;  %v4520_v20 = vmax.f32 %v4312_v40, 0.0 }
 0x523   : > { %v4598_v58 = vpack.c.bf16 %v4522_v38, %v4521_v55 }
 0x524   : > { %v4597_v41 = vpack.c.bf16 %v4520_v20, %v4519_v39 }
 0x526   : > { %7391 = vmatprep.mubr.bf16.mxu0 %v4597_v41 }
 0x527   : > { %7392 = vmatmul.mubr.bf16.gmra.mrb[164].mxu0 %v4598_v58 }
 0x52a   : > { %v7341_v42 = vpop.f32.mrb[112].mxu0 }
 0x52b   : > { %v4908_v19 = vpop.f32.mrb[113].mxu0  ;;  %v4917_v45 = vadd.f32 %v7341_v42, %v8856_v3 }
 0x52c   : > { %v7253_v5 = vpop.f32.mrb[168].mxu1  ;;  %v7342_v16 = vpop.f32.mrb[114].mxu0  ;;  %v4909_v51 = vadd.f32 %v8856_v3, %v4908_v19 }
 0x52d   : > { %v4333_v18 = vadd.f32 %v8867_v8, %v7253_v5  ;;  %v4920_v22 = vadd.f32 %v7342_v16, %v8856_v3  ;;  %v4324_v57 = vpop.f32.mrb[169].mxu1  ;;  %v4911_v30 = vpop.f32.mrb[115].mxu0 }
 0x52e   : > { %v4325_v32 = vadd.f32 %v8867_v8, %v4324_v57  ;;  %v4912_v10 = vadd.f32 %v8856_v3, %v4911_v30  ;;  %v7254_v54 = vpop.f32.mrb[170].mxu1 }
 0x52f   : > { %v6516_v56 = vpack.c.bf16 %v4920_v22, %v4917_v45  ;;  %v4336_v15 = vadd.f32 %v8867_v8, %v7254_v54  ;;  %v4327_v48 = vpop.f32.mrb[171].mxu1  ;;  %v4525_v62 = vmax.f32 %v4333_v18, 0.0 }
 0x530   : > { %v6511_v11 = vpack.c.bf16 %v4912_v10, %v4909_v51  ;;  %v4328_v50 = vadd.f32 %v8867_v8, %v4327_v48  ;;  %v4523_v6 = vmax.f32 %v4325_v32, 0.0 }
 0x531   : > { %6732 = vst [vmem:[%s8871_s29 + $0xc8] sm:$0xff] %v6516_v56   ;;  %v4526_v7 = vmax.f32 %v4336_v15, 0.0 }
 0x532   : > { %6731 = vst [vmem:[%s8871_s29 + $0xc0] sm:$0xff] %v6511_v11   ;;  %v4524_v49 = vmax.f32 %v4328_v50, 0.0 }
 0x533   : > { %v4600_v4 = vpack.c.bf16 %v4526_v7, %v4525_v62 }
 0x534   : > { %v4599_v28 = vpack.c.bf16 %v4524_v49, %v4523_v6 }
 0x536   : > { %7395 = vmatprep.mubr.bf16.mxu0 %v4599_v28 }
 0x537   : > { %7396 = vmatmul.mubr.bf16.gmra.mrb[168].mxu0 %v4600_v4 }
 0x53a   : > { %v7345_v47 = vpop.f32.mrb[116].mxu0 }
 0x53b   : > { %v4924_v60 = vpop.f32.mrb[117].mxu0  ;;  %v4933_v63 = vadd.f32 %v7345_v47, %v8856_v3 }
 0x53c   : > { %v7257_v46 = vpop.f32.mrb[172].mxu1  ;;  %v7346_v9 = vpop.f32.mrb[118].mxu0  ;;  %v4925_v59 = vadd.f32 %v8856_v3, %v4924_v60 }
 0x53d   : > { %v4349_v12 = vadd.f32 %v8867_v8, %v7257_v46  ;;  %v4936_v1 = vadd.f32 %v7346_v9, %v8856_v3  ;;  %v4340_v13 = vpop.f32.mrb[173].mxu1  ;;  %v4927_v14 = vpop.f32.mrb[119].mxu0 }
 0x53e   : > { %v4341_v17 = vadd.f32 %v8867_v8, %v4340_v13  ;;  %v4928_v31 = vadd.f32 %v8856_v3, %v4927_v14  ;;  %v7258_v26 = vpop.f32.mrb[174].mxu1 }
 0x53f   : > { %v6526_v43 = vpack.c.bf16 %v4936_v1, %v4933_v63  ;;  %v4352_v36 = vadd.f32 %v8867_v8, %v7258_v26  ;;  %v4343_v21 = vpop.f32.mrb[175].mxu1  ;;  %v4529_v24 = vmax.f32 %v4349_v12, 0.0 }
 0x540   : > { %v6521_v44 = vpack.c.bf16 %v4928_v31, %v4925_v59  ;;  %v4344_v37 = vadd.f32 %v8867_v8, %v4343_v21  ;;  %v4527_v23 = vmax.f32 %v4341_v17, 0.0 }
 0x541   : > { %6734 = vst [vmem:[%s8871_s29 + $0xd8] sm:$0xff] %v6526_v43   ;;  %v4530_v27 = vmax.f32 %v4352_v36, 0.0 }
 0x542   : > { %6733 = vst [vmem:[%s8871_s29 + $0xd0] sm:$0xff] %v6521_v44   ;;  %v4528_v33 = vmax.f32 %v4344_v37, 0.0 }
 0x543   : > { %v4602_v25 = vpack.c.bf16 %v4530_v27, %v4529_v24 }
 0x544   : > { %v4601_v0 = vpack.c.bf16 %v4528_v33, %v4527_v23 }
 0x546   : > { %7399 = vmatprep.mubr.bf16.mxu0 %v4601_v0 }
 0x547   : > { %7400 = vmatmul.mubr.bf16.gmra.mrb[172].mxu0 %v4602_v25 }
 0x54a   : > { %v7349_v34 = vpop.f32.mrb[120].mxu0 }
 0x54b   : > { %v4940_v52 = vpop.f32.mrb[121].mxu0  ;;  %v4949_v2 = vadd.f32 %v7349_v34, %v8856_v3 }
 0x54c   : > { %v7261_v53 = vpop.f32.mrb[176].mxu1  ;;  %v7350_v61 = vpop.f32.mrb[122].mxu0  ;;  %v4941_v38 = vadd.f32 %v8856_v3, %v4940_v52 }
 0x54d   : > { %v4365_v35 = vadd.f32 %v8867_v8, %v7261_v53  ;;  %v4952_v29 = vadd.f32 %v7350_v61, %v8856_v3  ;;  %v4356_v40 = vpop.f32.mrb[177].mxu1  ;;  %v4943_v55 = vpop.f32.mrb[123].mxu0 }
 0x54e   : > { %v4357_v39 = vadd.f32 %v8867_v8, %v4356_v40  ;;  %v4944_v20 = vadd.f32 %v8856_v3, %v4943_v55  ;;  %v7262_v58 = vpop.f32.mrb[178].mxu1 }
 0x54f   : > { %v6536_v41 = vpack.c.bf16 %v4952_v29, %v4949_v2  ;;  %v4368_v42 = vadd.f32 %v8867_v8, %v7262_v58  ;;  %v4359_v19 = vpop.f32.mrb[179].mxu1  ;;  %v4533_v45 = vmax.f32 %v4365_v35, 0.0 }
 0x550   : > { %v6531_v5 = vpack.c.bf16 %v4944_v20, %v4941_v38  ;;  %v4360_v16 = vadd.f32 %v8867_v8, %v4359_v19  ;;  %v4531_v22 = vmax.f32 %v4357_v39, 0.0 }
 0x551   : > { %6736 = vst [vmem:[%s8871_s29 + $0xe8] sm:$0xff] %v6536_v41   ;;  %v4534_v18 = vmax.f32 %v4368_v42, 0.0 }
 0x552   : > { %6735 = vst [vmem:[%s8871_s29 + $0xe0] sm:$0xff] %v6531_v5   ;;  %v4532_v57 = vmax.f32 %v4360_v16, 0.0 }
 0x553   : > { %v4604_v30 = vpack.c.bf16 %v4534_v18, %v4533_v45 }
 0x554   : > { %v4603_v51 = vpack.c.bf16 %v4532_v57, %v4531_v22 }
 0x556   : > { %7403 = vmatprep.mubr.bf16.mxu0 %v4603_v51 }
 0x557   : > { %7404 = vmatmul.mubr.bf16.gmra.mrb[176].mxu0 %v4604_v30 }
 0x55a   : > { %v7353_v32 = vpop.f32.mrb[124].mxu0 }
 0x55b   : > { %v4956_v10 = vpop.f32.mrb[125].mxu0  ;;  %v4965_v15 = vadd.f32 %v7353_v32, %v8856_v3 }
 0x55c   : > { %v7265_v54 = vpop.f32.mrb[180].mxu1  ;;  %v7354_v56 = vpop.f32.mrb[126].mxu0  ;;  %v4957_v7 = vadd.f32 %v8856_v3, %v4956_v10 }
 0x55d   : > { %v4381_v48 = vadd.f32 %v8867_v8, %v7265_v54  ;;  %v4968_v11 = vadd.f32 %v7354_v56, %v8856_v3  ;;  %v4372_v50 = vpop.f32.mrb[181].mxu1  ;;  %v4959_v62 = vpop.f32.mrb[127].mxu0 }
 0x55e   : > { %v4373_v6 = vadd.f32 %v8867_v8, %v4372_v50  ;;  %v4960_v49 = vadd.f32 %v8856_v3, %v4959_v62  ;;  %v7266_v4 = vpop.f32.mrb[182].mxu1 }
 0x55f   : > { %v6546_v28 = vpack.c.bf16 %v4968_v11, %v4965_v15  ;;  %v4384_v47 = vadd.f32 %v8867_v8, %v7266_v4  ;;  %v4375_v60 = vpop.f32.mrb[183].mxu1  ;;  %v4537_v63 = vmax.f32 %v4381_v48, 0.0 }
 0x560   : > { %v6541_v46 = vpack.c.bf16 %v4960_v49, %v4957_v7  ;;  %v4376_v9 = vadd.f32 %v8867_v8, %v4375_v60  ;;  %v4535_v1 = vmax.f32 %v4373_v6, 0.0 }
 0x561   : > { %6738 = vst [vmem:[%s8871_s29 + $0xf8] sm:$0xff] %v6546_v28   ;;  %v4538_v12 = vmax.f32 %v4384_v47, 0.0 }
 0x562   : > { %6737 = vst [vmem:[%s8871_s29 + $0xf0] sm:$0xff] %v6541_v46   ;;  %v4536_v13 = vmax.f32 %v4376_v9, 0.0 }
 0x563   : > { %v4606_v14 = vpack.c.bf16 %v4538_v12, %v4537_v63 }
 0x564   : > { %v4605_v59 = vpack.c.bf16 %v4536_v13, %v4535_v1 }
 0x566   : > { %7407 = vmatprep.mubr.bf16.mxu0 %v4605_v59 }
 0x567   : > { %7408 = vmatmul.mubr.bf16.gmra.mrb[180].mxu0 %v4606_v14 }
 0x56a   : > { %v7357_v17 = vpop.f32.mrb[128].mxu0 }
 0x56b   : > { %v4972_v31 = vpop.f32.mrb[129].mxu0  ;;  %v4981_v36 = vadd.f32 %v7357_v17, %v8856_v3 }
 0x56c   : > { %v7269_v26 = vpop.f32.mrb[184].mxu1  ;;  %v7358_v43 = vpop.f32.mrb[130].mxu0  ;;  %v4973_v27 = vadd.f32 %v8856_v3, %v4972_v31 }
 0x56d   : > { %v4397_v21 = vadd.f32 %v8867_v8, %v7269_v26  ;;  %v4984_v44 = vadd.f32 %v7358_v43, %v8856_v3  ;;  %v4388_v37 = vpop.f32.mrb[185].mxu1  ;;  %v4975_v24 = vpop.f32.mrb[131].mxu0 }
 0x56e   : > { %v4389_v23 = vadd.f32 %v8867_v8, %v4388_v37  ;;  %v4976_v33 = vadd.f32 %v8856_v3, %v4975_v24  ;;  %v7270_v25 = vpop.f32.mrb[186].mxu1 }
 0x56f   : > { %v6556_v0 = vpack.c.bf16 %v4984_v44, %v4981_v36  ;;  %v4400_v34 = vadd.f32 %v8867_v8, %v7270_v25  ;;  %v4391_v52 = vpop.f32.mrb[187].mxu1  ;;  %v4541_v2 = vmax.f32 %v4397_v21, 0.0 }
 0x570   : > { %v6551_v53 = vpack.c.bf16 %v4976_v33, %v4973_v27  ;;  %v4392_v61 = vadd.f32 %v8867_v8, %v4391_v52  ;;  %v4539_v29 = vmax.f32 %v4389_v23, 0.0 }
 0x571   : > { %6740 = vst [vmem:[%s8871_s29 + $0x108] sm:$0xff] %v6556_v0   ;;  %v4542_v35 = vmax.f32 %v4400_v34, 0.0 }
 0x572   : > { %6739 = vst [vmem:[%s8871_s29 + $0x100] sm:$0xff] %v6551_v53   ;;  %v4540_v40 = vmax.f32 %v4392_v61, 0.0 }
 0x573   : > { %v4608_v55 = vpack.c.bf16 %v4542_v35, %v4541_v2 }
 0x574   : > { %v4607_v38 = vpack.c.bf16 %v4540_v40, %v4539_v29 }
 0x576   : > { %7411 = vmatprep.mubr.bf16.mxu0 %v4607_v38 }
 0x577   : > { %7412 = vmatmul.mubr.bf16.gmra.mrb[184].mxu0 %v4608_v55 }
 0x57a   : > { %v7361_v39 = vpop.f32.mrb[132].mxu0 }
 0x57b   : > { %v4988_v20 = vpop.f32.mrb[133].mxu0  ;;  %v4997_v42 = vadd.f32 %v7361_v39, %v8856_v3 }
 0x57c   : > { %v7273_v58 = vpop.f32.mrb[188].mxu1  ;;  %v7362_v41 = vpop.f32.mrb[134].mxu0  ;;  %v4989_v18 = vadd.f32 %v8856_v3, %v4988_v20 }
 0x57d   : > { %v4413_v19 = vadd.f32 %v8867_v8, %v7273_v58  ;;  %v5000_v5 = vadd.f32 %v7362_v41, %v8856_v3  ;;  %v4404_v16 = vpop.f32.mrb[189].mxu1  ;;  %v4991_v45 = vpop.f32.mrb[135].mxu0 }
 0x57e   : > { %v4405_v22 = vadd.f32 %v8867_v8, %v4404_v16  ;;  %v4992_v57 = vadd.f32 %v8856_v3, %v4991_v45  ;;  %v7274_v30 = vpop.f32.mrb[190].mxu1 }
 0x57f   : > { %v6566_v51 = vpack.c.bf16 %v5000_v5, %v4997_v42  ;;  %v4416_v32 = vadd.f32 %v8867_v8, %v7274_v30  ;;  %v4407_v10 = vpop.f32.mrb[191].mxu1  ;;  %v4545_v15 = vmax.f32 %v4413_v19, 0.0 }
 0x580   : > { %v6561_v54 = vpack.c.bf16 %v4992_v57, %v4989_v18  ;;  %v4408_v56 = vadd.f32 %v8867_v8, %v4407_v10  ;;  %v4543_v11 = vmax.f32 %v4405_v22, 0.0 }
 0x581   : > { %6742 = vst [vmem:[%s8871_s29 + $0x118] sm:$0xff] %v6566_v51   ;;  %v4546_v48 = vmax.f32 %v4416_v32, 0.0 }
 0x582   : > { %6741 = vst [vmem:[%s8871_s29 + $0x110] sm:$0xff] %v6561_v54   ;;  %v4544_v50 = vmax.f32 %v4408_v56, 0.0 }
 0x583   : > { %v4610_v62 = vpack.c.bf16 %v4546_v48, %v4545_v15 }
 0x584   : > { %v4609_v7 = vpack.c.bf16 %v4544_v50, %v4543_v11 }
 0x586   : > { %7415 = vmatprep.mubr.bf16.mxu0 %v4609_v7 }
 0x587   : > { %7416 = vmatmul.mubr.bf16.gmra.mrb[188].mxu0 %v4610_v62 }
 0x58a   : > { %v7365_v6 = vpop.f32.mrb[136].mxu0 }
 0x58b   : > { %v5004_v49 = vpop.f32.mrb[137].mxu0  ;;  %v5013_v28 = vadd.f32 %v7365_v6, %v8856_v3  ;;  %v9070_v6 = vld [vmem:[%s9182_s10] ss:$0 sm:$0xff] }
 0x58c   : > { %v7366_v4 = vpop.f32.mrb[138].mxu0  ;;  %v5005_v60 = vadd.f32 %v8856_v3, %v5004_v49 }
 0x58d   : > { %v5016_v47 = vadd.f32 %v7366_v4, %v8856_v3  ;;  %v5007_v8 = vpop.f32.mrb[139].mxu0 }
 0x58e   : > { %v5008_v46 = vadd.f32 %v8856_v3, %v5007_v8 }
 0x58f   : > { %v6576_v9 = vpack.c.bf16 %v5016_v47, %v5013_v28 }
 0x590   : > { %v6571_v63 = vpack.c.bf16 %v5008_v46, %v5005_v60 }
 0x591   : > { %6744 = vst [vmem:[%s8871_s29 + $0x128] sm:$0xff] %v6576_v9  }
 0x592   : > { %6743 = vst [vmem:[%s8871_s29 + $0x120] sm:$0xff] %v6571_v63  }
 0x59a   : > { %v7369_v12 = vpop.f32.mrb[140].mxu0 }
 0x59b   : > { %v5020_v1 = vpop.f32.mrb[141].mxu0  ;;  %v5029_v14 = vadd.f32 %v7369_v12, %v8856_v3 }
 0x59c   : > { %v7370_v13 = vpop.f32.mrb[142].mxu0  ;;  %v5021_v31 = vadd.f32 %v8856_v3, %v5020_v1 }
 0x59d   : > { %v5032_v59 = vadd.f32 %v7370_v13, %v8856_v3  ;;  %v5023_v17 = vpop.f32.mrb[143].mxu0 }
 0x59e   : > { %v5024_v26 = vadd.f32 %v8856_v3, %v5023_v17 }
 0x59f   : > { %v6586_v43 = vpack.c.bf16 %v5032_v59, %v5029_v14 }
 0x5a0   : > { %v6581_v36 = vpack.c.bf16 %v5024_v26, %v5021_v31 }
 0x5a1   : > { %6746 = vst [vmem:[%s8871_s29 + $0x138] sm:$0xff] %v6586_v43  }
 0x5a2   : > { %6745 = vst [vmem:[%s8871_s29 + $0x130] sm:$0xff] %v6581_v36  }
 0x5aa   : > { %v7373_v21 = vpop.f32.mrb[144].mxu0 }
 0x5ab   : > { %v5036_v44 = vpop.f32.mrb[145].mxu0  ;;  %v5045_v24 = vadd.f32 %v7373_v21, %v8856_v3 }
 0x5ac   : > { %v7374_v37 = vpop.f32.mrb[146].mxu0  ;;  %v5037_v33 = vadd.f32 %v8856_v3, %v5036_v44 }
 0x5ad   : > { %v5048_v27 = vadd.f32 %v7374_v37, %v8856_v3  ;;  %v5039_v23 = vpop.f32.mrb[147].mxu0 }
 0x5ae   : > { %v5040_v25 = vadd.f32 %v8856_v3, %v5039_v23 }
 0x5af   : > { %v6596_v0 = vpack.c.bf16 %v5048_v27, %v5045_v24 }
 0x5b0   : > { %v6591_v34 = vpack.c.bf16 %v5040_v25, %v5037_v33 }
 0x5b1   : > { %6748 = vst [vmem:[%s8871_s29 + $0x148] sm:$0xff] %v6596_v0  }
 0x5b2   : > { %6747 = vst [vmem:[%s8871_s29 + $0x140] sm:$0xff] %v6591_v34  }
 0x5ba   : > { %v7377_v52 = vpop.f32.mrb[148].mxu0 }
 0x5bb   : > { %v5052_v53 = vpop.f32.mrb[149].mxu0  ;;  %v5061_v2 = vadd.f32 %v7377_v52, %v8856_v3 }
 0x5bc   : > { %v7378_v61 = vpop.f32.mrb[150].mxu0  ;;  %v5053_v40 = vadd.f32 %v8856_v3, %v5052_v53 }
 0x5bd   : > { %v5064_v35 = vadd.f32 %v7378_v61, %v8856_v3  ;;  %v5055_v29 = vpop.f32.mrb[151].mxu0 }
 0x5be   : > { %v5056_v55 = vadd.f32 %v8856_v3, %v5055_v29 }
 0x5bf   : > { %v6606_v38 = vpack.c.bf16 %v5064_v35, %v5061_v2 }
 0x5c0   : > { %v6601_v39 = vpack.c.bf16 %v5056_v55, %v5053_v40 }
 0x5c1   : > { %6750 = vst [vmem:[%s8871_s29 + $0x158] sm:$0xff] %v6606_v38  }
 0x5c2   : > { %6749 = vst [vmem:[%s8871_s29 + $0x150] sm:$0xff] %v6601_v39  }
 0x5ca   : > { %v7381_v20 = vpop.f32.mrb[152].mxu0 }
 0x5cb   : > { %v5068_v58 = vpop.f32.mrb[153].mxu0  ;;  %v5077_v42 = vadd.f32 %v7381_v20, %v8856_v3 }
 0x5cc   : > { %v7382_v41 = vpop.f32.mrb[154].mxu0  ;;  %v5069_v16 = vadd.f32 %v8856_v3, %v5068_v58 }
 0x5cd   : > { %v5080_v19 = vadd.f32 %v7382_v41, %v8856_v3  ;;  %v5071_v5 = vpop.f32.mrb[155].mxu0 }
 0x5ce   : > { %v5072_v45 = vadd.f32 %v8856_v3, %v5071_v5 }
 0x5cf   : > { %v6616_v18 = vpack.c.bf16 %v5080_v19, %v5077_v42 }
 0x5d0   : > { %v6611_v22 = vpack.c.bf16 %v5072_v45, %v5069_v16 }
 0x5d1   : > { %6752 = vst [vmem:[%s8871_s29 + $0x168] sm:$0xff] %v6616_v18  }
 0x5d2   : > { %6751 = vst [vmem:[%s8871_s29 + $0x160] sm:$0xff] %v6611_v22  }
 0x5da   : > { %v7385_v57 = vpop.f32.mrb[156].mxu0 }
 0x5db   : > { %v5084_v30 = vpop.f32.mrb[157].mxu0  ;;  %v5093_v32 = vadd.f32 %v7385_v57, %v8856_v3 }
 0x5dc   : > { %v7386_v51 = vpop.f32.mrb[158].mxu0  ;;  %v5085_v56 = vadd.f32 %v8856_v3, %v5084_v30 }
 0x5dd   : > { %v5096_v10 = vadd.f32 %v7386_v51, %v8856_v3  ;;  %v5087_v54 = vpop.f32.mrb[159].mxu0 }
 0x5de   : > { %v5088_v15 = vadd.f32 %v8856_v3, %v5087_v54 }
 0x5df   : > { %v6626_v48 = vpack.c.bf16 %v5096_v10, %v5093_v32 }
 0x5e0   : > { %v6621_v11 = vpack.c.bf16 %v5088_v15, %v5085_v56 }
 0x5e1   : > { %6754 = vst [vmem:[%s8871_s29 + $0x178] sm:$0xff] %v6626_v48  }
 0x5e2   : > { %6753 = vst [vmem:[%s8871_s29 + $0x170] sm:$0xff] %v6621_v11  }
 0x5ea   : > { %v7389_v50 = vpop.f32.mrb[160].mxu0 }
 0x5eb   : > { %v5100_v62 = vpop.f32.mrb[161].mxu0  ;;  %v5109_v49 = vadd.f32 %v9070_v6, %v7389_v50 }
 0x5ec   : > { %v7390_v7 = vpop.f32.mrb[162].mxu0  ;;  %v5101_v3 = vadd.f32 %v9070_v6, %v5100_v62 }
 0x5ed   : > { %v5112_v4 = vadd.f32 %v9070_v6, %v7390_v7  ;;  %v5103_v28 = vpop.f32.mrb[163].mxu0 }
 0x5ee   : > { %v5104_v47 = vadd.f32 %v9070_v6, %v5103_v28 }
 0x5ef   : > { %v6636_v8 = vpack.c.bf16 %v5112_v4, %v5109_v49 }
 0x5f0   : > { %v6631_v60 = vpack.c.bf16 %v5104_v47, %v5101_v3 }
 0x5f1   : > { %6756 = vst [vmem:[%s8871_s29 + $0x188] sm:$0xff] %v6636_v8  }
 0x5f2   : > { %6755 = vst [vmem:[%s8871_s29 + $0x180] sm:$0xff] %v6631_v60  }
 0x5fa   : > { %v7393_v46 = vpop.f32.mrb[164].mxu0 }
 0x5fb   : > { %v5116_v9 = vpop.f32.mrb[165].mxu0  ;;  %v5125_v12 = vadd.f32 %v9070_v6, %v7393_v46 }
 0x5fc   : > { %v7394_v63 = vpop.f32.mrb[166].mxu0  ;;  %v5117_v14 = vadd.f32 %v9070_v6, %v5116_v9 }
 0x5fd   : > { %v5128_v1 = vadd.f32 %v9070_v6, %v7394_v63  ;;  %v5119_v13 = vpop.f32.mrb[167].mxu0 }
 0x5fe   : > { %v5120_v59 = vadd.f32 %v9070_v6, %v5119_v13 }
 0x5ff   : > { %v6646_v17 = vpack.c.bf16 %v5128_v1, %v5125_v12 }
 0x600   : > { %v6641_v31 = vpack.c.bf16 %v5120_v59, %v5117_v14 }
 0x601   : > { %6758 = vst [vmem:[%s8871_s29 + $0x198] sm:$0xff] %v6646_v17  }
 0x602   : > { %6757 = vst [vmem:[%s8871_s29 + $0x190] sm:$0xff] %v6641_v31  }
 0x60a   : > { %v7397_v26 = vpop.f32.mrb[168].mxu0 }
 0x60b   : > { %v5132_v43 = vpop.f32.mrb[169].mxu0  ;;  %v5141_v21 = vadd.f32 %v9070_v6, %v7397_v26 }
 0x60c   : > { %v7398_v36 = vpop.f32.mrb[170].mxu0  ;;  %v5133_v24 = vadd.f32 %v9070_v6, %v5132_v43 }
 0x60d   : > { %v5144_v44 = vadd.f32 %v9070_v6, %v7398_v36  ;;  %v5135_v37 = vpop.f32.mrb[171].mxu0 }
 0x60e   : > { %v5136_v27 = vadd.f32 %v9070_v6, %v5135_v37 }
 0x60f   : > { %v6656_v23 = vpack.c.bf16 %v5144_v44, %v5141_v21 }
 0x610   : > { %v6651_v33 = vpack.c.bf16 %v5136_v27, %v5133_v24 }
 0x611   : > { %6760 = vst [vmem:[%s8871_s29 + $0x1a8] sm:$0xff] %v6656_v23  }
 0x612   : > { %6759 = vst [vmem:[%s8871_s29 + $0x1a0] sm:$0xff] %v6651_v33  }
 0x61a   : > { %v7401_v25 = vpop.f32.mrb[172].mxu0 }
 0x61b   : > { %v5148_v0 = vpop.f32.mrb[173].mxu0  ;;  %v5157_v52 = vadd.f32 %v9070_v6, %v7401_v25 }
 0x61c   : > { %v7402_v34 = vpop.f32.mrb[174].mxu0  ;;  %v5149_v2 = vadd.f32 %v9070_v6, %v5148_v0 }
 0x61d   : > { %v5160_v53 = vadd.f32 %v9070_v6, %v7402_v34  ;;  %v5151_v61 = vpop.f32.mrb[175].mxu0 }
 0x61e   : > { %v5152_v35 = vadd.f32 %v9070_v6, %v5151_v61 }
 0x61f   : > { %v6666_v29 = vpack.c.bf16 %v5160_v53, %v5157_v52 }
 0x620   : > { %v6661_v40 = vpack.c.bf16 %v5152_v35, %v5149_v2 }
 0x621   : > { %6762 = vst [vmem:[%s8871_s29 + $0x1b8] sm:$0xff] %v6666_v29  }
 0x622   : > { %6761 = vst [vmem:[%s8871_s29 + $0x1b0] sm:$0xff] %v6661_v40  }
 0x62a   : > { %v7405_v55 = vpop.f32.mrb[176].mxu0 }
 0x62b   : > { %v5164_v38 = vpop.f32.mrb[177].mxu0  ;;  %v5173_v20 = vadd.f32 %v9070_v6, %v7405_v55 }
 0x62c   : > { %v7406_v39 = vpop.f32.mrb[178].mxu0  ;;  %v5165_v42 = vadd.f32 %v9070_v6, %v5164_v38 }
 0x62d   : > { %v5176_v58 = vadd.f32 %v9070_v6, %v7406_v39  ;;  %v5167_v41 = vpop.f32.mrb[179].mxu0 }
 0x62e   : > { %v5168_v19 = vadd.f32 %v9070_v6, %v5167_v41 }
 0x62f   : > { %v6676_v5 = vpack.c.bf16 %v5176_v58, %v5173_v20 }
 0x630   : > { %v6671_v16 = vpack.c.bf16 %v5168_v19, %v5165_v42 }
 0x631   : > { %6764 = vst [vmem:[%s8871_s29 + $0x1c8] sm:$0xff] %v6676_v5  }
 0x632   : > { %6763 = vst [vmem:[%s8871_s29 + $0x1c0] sm:$0xff] %v6671_v16  }
 0x63a   : > { %v7409_v45 = vpop.f32.mrb[180].mxu0 }
 0x63b   : > { %v5180_v18 = vpop.f32.mrb[181].mxu0  ;;  %v5189_v57 = vadd.f32 %v9070_v6, %v7409_v45 }
 0x63c   : > { %v7410_v22 = vpop.f32.mrb[182].mxu0  ;;  %v5181_v32 = vadd.f32 %v9070_v6, %v5180_v18 }
 0x63d   : > { %v5192_v30 = vadd.f32 %v9070_v6, %v7410_v22  ;;  %v5183_v51 = vpop.f32.mrb[183].mxu0 }
 0x63e   : > { %v5184_v10 = vadd.f32 %v9070_v6, %v5183_v51 }
 0x63f   : > { %v6686_v54 = vpack.c.bf16 %v5192_v30, %v5189_v57 }
 0x640   : > { %v6681_v56 = vpack.c.bf16 %v5184_v10, %v5181_v32 }
 0x641   : > { %6766 = vst [vmem:[%s8871_s29 + $0x1d8] sm:$0xff] %v6686_v54  }
 0x642   : > { %6765 = vst [vmem:[%s8871_s29 + $0x1d0] sm:$0xff] %v6681_v56  }
 0x64a   : > { %v7413_v15 = vpop.f32.mrb[184].mxu0 }
 0x64b   : > { %v5196_v48 = vpop.f32.mrb[185].mxu0  ;;  %v5205_v50 = vadd.f32 %v9070_v6, %v7413_v15 }
 0x64c   : > { %v7414_v11 = vpop.f32.mrb[186].mxu0  ;;  %v5197_v49 = vadd.f32 %v9070_v6, %v5196_v48 }
 0x64d   : > { %v5208_v62 = vadd.f32 %v9070_v6, %v7414_v11  ;;  %v5199_v7 = vpop.f32.mrb[187].mxu0 }
 0x64e   : > { %v5200_v4 = vadd.f32 %v9070_v6, %v5199_v7 }
 0x64f   : > { %v6696_v28 = vpack.c.bf16 %v5208_v62, %v5205_v50 }
 0x650   : > { %v6691_v3 = vpack.c.bf16 %v5200_v4, %v5197_v49 }
 0x651   : > { %6768 = vst [vmem:[%s8871_s29 + $0x1e8] sm:$0xff] %v6696_v28  }
 0x652   : > { %6767 = vst [vmem:[%s8871_s29 + $0x1e0] sm:$0xff] %v6691_v3  }
 0x65a   : > { %v7417_v47 = vpop.f32.mrb[188].mxu0 }
 0x65b   : > { %v5212_v8 = vpop.f32.mrb[189].mxu0  ;;  %v5221_v46 = vadd.f32 %v9070_v6, %v7417_v47 }
 0x65c   : > { %v7418_v60 = vpop.f32.mrb[190].mxu0  ;;  %v5213_v12 = vadd.f32 %v9070_v6, %v5212_v8 }
 0x65d   : > { %v5224_v9 = vadd.f32 %v9070_v6, %v7418_v60  ;;  %v5215_v63 = vpop.f32.mrb[191].mxu0 }
 0x65e   : > { %v5216_v1 = vadd.f32 %v9070_v6, %v5215_v63 }
 0x65f   : > { %v6706_v13 = vpack.c.bf16 %v5224_v9, %v5221_v46 }
 0x660   : > { %v6701_v14 = vpack.c.bf16 %v5216_v1, %v5213_v12 }
 0x661   : > { %6770 = vst [vmem:[%s8871_s29 + $0x1f8] sm:$0xff] %v6706_v13  }
 0x662   : > { %6769 = vst [vmem:[%s8871_s29 + $0x1f0] sm:$0xff] %v6701_v14  }
 0x663   : > { %7594 = shalt.err (!%p7591_p3)
}
 0x664   : > { %s7595_s14 = scalar_lea.hbm %s9123_s24, 8192  ;;  %s7599_s22 = scalar_lea.hbm %s9183_s11, 16384 }
 0x665   : > { %p7596_p4 = scmp.ne.s32.totalorder %s9123_s24, %s7595_s14  ;;  %p7600_p9 = scmp.lt.u32.totalorder %s9123_s24, %s9183_s11 }
 0x666   : > { %p7601_p10 = scmp.lt.u32.totalorder %s7599_s22, %s7595_s14  ;;  %p7603_p12 = scmp.lt.u32.totalorder %s7595_s14, %s9123_s24 }
 0x667   : > { %p7597_p7 = pnand %p7596_p4, %p7747_p5 }
 0x668   : > { %p7602_p11 = por %p7601_p10, %p7600_p9 }
 0x669   : > { %p7598_p8 = pneg %p7597_p7 }
 0x66a   : > { %p7604_p13 = por %p7603_p12, %p7602_p11 }
 0x66c   : > { %p7605_p0 = pnand %p7604_p13, %p7598_p8 }
 0x66e   : > { %7608 = shalt.err (!%p7605_p0)
}
 0x66f   : > { %s7647_s25 = smov 64   ;;  %s7648_s12 = smov 4  }
 0x670   : > { %7423 = dma.vmem_to_hbm [thread:$0]  (%p7747_p5), %s9125_s15, 8192, %s9123_s24, %s9131_s21, %s7647_s25, %s7647_s25, %s7648_s12  }
 0x671 PF: > { %p7429_p1 = scmp.ge.s32.totalorder %s7643_s20, 2  ;;  %s5896_s29 = sand.u32 1, %s7631_s17  }
 0x672   : > { %s5897_s14 = scalar_lea.sflag [#allocation3], %s5896_s29 }
 0x673   : > { %p7426_p2 = pnand %p7429_p1, %p7751_p6 }
 0x675   : > { %7626 = dma.done.wait (!%p7426_p2), %s5897_s14, 8192  }
 0x676   : > { %7628 = vsyncadd (!%p7426_p2), %s5897_s14, 4294959104  ;;  %p21_p3 = scmp.ge.s32.totalorder %s7734_s23, 4   ;;  %s9186_s17 = smov %s7635_s18 }
 0x677   : > { %s9187_s18 = smov %s7639_s19  ;;  %s9188_s19 = smov %s7745_s26 }
 0x678   : > { %s9189_s20 = smov %s7734_s23  ;;  %23 = sbr.rel (!%p21_p3) target bundleno = 3 (0x3), region = 99 }
 0x67f   :  { %5902 = vsyncpa [#allocation3], 1 }
 0x680   :  { %5904 = vsyncpa [#allocation3 + $0x1], 1 }

</bundles_post_ra>
